<compile_context>
chip_gen: v7x
topology: tpu7x:2x2x1
jax: 0.10.0
libtpu: 0.0.40
codegen_flags: <defaults>
</compile_context>

<pallas_src>
import jax
import jax.numpy as jnp
from jax.experimental import pallas as pl
from jax.experimental.pallas import tpu as pltpu

IN_FEATURES = 768
HIDDEN = 256 * 2      # 512
OUT_FEATURES = 256


def _round_up(a, m):
    return ((a + m - 1) // m) * m


def mlp_kernel(x_ref, w1_ref, b1_ref, w2_ref, b2_ref, o_ref):
    # First linear + bias + ReLU (MXU matmul, f32 accumulate).
    h = jnp.dot(x_ref[...], w1_ref[...], preferred_element_type=jnp.float32)
    h = jnp.maximum(h + b1_ref[...], 0.0)
    # Dropout(p=0.4): identity in eval mode.
    # TODO(synk): training-mode dropout (pltpu.prng_seed/prng_random_bits mask
    # with 1/(1-p) scaling) not emitted.
    y = jnp.dot(h.astype(w2_ref.dtype), w2_ref[...],
                preferred_element_type=jnp.float32)
    y = y + b2_ref[...]
    o_ref[...] = y.astype(o_ref.dtype)


def ttl_emb_forward(x, w1, b1, w2, b2, *, tile_n=256):
    """Fused MLP forward.  x: (N, F).  Returns (N, OUT_FEATURES) in x.dtype."""
    N, F = x.shape
    assert F == w1.shape[0]
    H = w1.shape[1]
    O = w2.shape[1]

    # Clamp the row tile for tiny batches; keep it a multiple of 16 so both
    # f32 (8-row sublane tiles) and bf16 (16-row) layouts are happy.
    tile_n = min(tile_n, _round_up(N, 16))
    grid = (pl.cdiv(N, tile_n),)

    # Advisory cost model for XLA's scheduler around this custom call.
    itm = jnp.dtype(x.dtype).itemsize
    cost = pl.CostEstimate(
        flops=2 * N * (F * H + H * O),
        transcendentals=0,
        bytes_accessed=(N * F * itm                      # x
                        + N * O * itm                    # out
                        + F * H * jnp.dtype(w1.dtype).itemsize
                        + H * O * jnp.dtype(w2.dtype).itemsize
                        + H * jnp.dtype(b1.dtype).itemsize
                        + O * jnp.dtype(b2.dtype).itemsize),
    )

    return pl.pallas_call(
        mlp_kernel,
        out_shape=jax.ShapeDtypeStruct((N, O), x.dtype),
        grid_spec=pltpu.PrefetchScalarGridSpec(
            num_scalar_prefetch=0,
            grid=grid,
            in_specs=[
                pl.BlockSpec((tile_n, F), lambda i: (i, 0)),   # x row tile
                # Constant block index -> weights/biases DMA'd once, resident
                # in VMEM for the whole grid.
                pl.BlockSpec((F, H),      lambda i: (0, 0)),   # W1
                pl.BlockSpec((1, H),      lambda i: (0, 0)),   # b1
                pl.BlockSpec((H, O),      lambda i: (0, 0)),   # W2
                pl.BlockSpec((1, O),      lambda i: (0, 0)),   # b2
            ],
            out_specs=pl.BlockSpec((tile_n, O), lambda i: (i, 0)),
        ),
        compiler_params=pltpu.CompilerParams(
            dimension_semantics=("parallel",),
            vmem_limit_bytes=32 * 1024 * 1024,
        ),
        cost_estimate=cost,
    )(x, w1, b1, w2, b2)


def init_params(key, in_features=IN_FEATURES, hidden=HIDDEN,
                out_features=OUT_FEATURES):
    # Deterministic init mimicking PyTorch Linear default (U[+/- 1/sqrt(fan_in)]).
    k1, k2, k3, k4 = jax.random.split(key, 4)
    bound1 = 1.0 / jnp.sqrt(in_features)
    bound2 = 1.0 / jnp.sqrt(hidden)
    w1 = jax.random.uniform(k1, (in_features, hidden), jnp.float32, -bound1, bound1)
    b1 = jax.random.uniform(k2, (1, hidden), jnp.float32, -bound1, bound1)
    w2 = jax.random.uniform(k3, (hidden, out_features), jnp.float32, -bound2, bound2)
    b2 = jax.random.uniform(k4, (1, out_features), jnp.float32, -bound2, bound2)
    return w1, b1, w2, b2


def reference_forward(x, w1, b1, w2, b2):
    # Mirrors the kernel's mixed-precision recipe (f32 accumulate, bias/ReLU in
    # f32, result cast back to x.dtype) so it is a valid reference for both the
    # f32 and bf16 input paths.
    h = jnp.dot(x, w1, preferred_element_type=jnp.float32) + b1
    h = jnp.maximum(h, 0.0)
    y = jnp.dot(h.astype(w2.dtype), w2, preferred_element_type=jnp.float32) + b2
    return y.astype(x.dtype)


if __name__ == "__main__":
    key = jax.random.PRNGKey(0)
    kx, kp = jax.random.split(key)

    # N deliberately NOT a multiple of tile_n: exercises the multi-step grid,
    # the padded partial last block, and gives >=2 parallel steps (v7x 2 TCs).
    N = 300
    x = jax.random.normal(kx, (N, IN_FEATURES), dtype=jnp.float32)
    w1, b1, w2, b2 = init_params(kp)

    # f32 path
    out = jax.block_until_ready(ttl_emb_forward(x, w1, b1, w2, b2, tile_n=256))
    ref = reference_forward(x, w1, b1, w2, b2)
    assert out.shape == (N, OUT_FEATURES)
    assert jnp.allclose(out, ref, atol=1e-3, rtol=1e-3), \
        float(jnp.max(jnp.abs(out - ref)))

    # bf16 inputs/weights (f32 biases + f32 accumulation): v6e/v7x fast path.
    xb = x.astype(jnp.bfloat16)
    w1b = w1.astype(jnp.bfloat16)
    w2b = w2.astype(jnp.bfloat16)
    out_bf = jax.block_until_ready(ttl_emb_forward(xb, w1b, b1, w2b, b2, tile_n=256))
    ref_bf = reference_forward(xb, w1b, b1, w2b, b2)
    assert out_bf.shape == (N, OUT_FEATURES) and out_bf.dtype == jnp.bfloat16
    assert jnp.allclose(out_bf.astype(jnp.float32), ref_bf.astype(jnp.float32),
                        atol=5e-2, rtol=5e-2)

    print("KERNEL_OK")
</pallas_src>

<mosaic_0001>
module attributes {stable_mosaic.version = 11 : i64} {
  func.func @mlp_kernel(%arg0: i32, %arg1: memref<256x768xf32, #tpu.memory_space<vmem>>, %arg2: memref<768x512xf32, #tpu.memory_space<vmem>>, %arg3: memref<1x512xf32, #tpu.memory_space<vmem>>, %arg4: memref<512x256xf32, #tpu.memory_space<vmem>>, %arg5: memref<1x256xf32, #tpu.memory_space<vmem>>, %arg6: memref<256x256xf32, #tpu.memory_space<vmem>>) attributes {dimension_semantics = [#tpu.dimension_semantics<parallel>], iteration_bounds = array<i64: 2>, scalar_prefetch = 0 : i64, scratch_operands = 0 : i64, tpu.core_type = #tpu.core_type<tc>, window_params = [{transform_indices = @transform_0, window_bounds = array<i64: 256, 768>}, {pipeline_mode = #tpu.pipeline_mode<synchronous>, transform_indices = @transform_1, window_bounds = array<i64: 768, 512>}, {pipeline_mode = #tpu.pipeline_mode<synchronous>, transform_indices = @transform_2, window_bounds = array<i64: 1, 512>}, {pipeline_mode = #tpu.pipeline_mode<synchronous>, transform_indices = @transform_3, window_bounds = array<i64: 512, 256>}, {pipeline_mode = #tpu.pipeline_mode<synchronous>, transform_indices = @transform_4, window_bounds = array<i64: 1, 256>}, {transform_indices = @transform_5, window_bounds = array<i64: 256, 256>}]} {
    %c0 = arith.constant 0 : index
    %c0_0 = arith.constant 0 : index
    %0 = vector.load %arg1[%c0, %c0_0] : memref<256x768xf32, #tpu.memory_space<vmem>>, vector<256x768xf32>
    %c0_1 = arith.constant 0 : index
    %c0_2 = arith.constant 0 : index
    %1 = vector.load %arg2[%c0_1, %c0_2] : memref<768x512xf32, #tpu.memory_space<vmem>>, vector<768x512xf32>
    %cst = arith.constant dense<0.000000e+00> : vector<256x512xf32>
    %2 = tpu.matmul %0, %1, %cst {dimension_numbers = #tpu.dot_dimension_numbers<[1], [0], [0], [1], [0, 0, 1, 1], [], []>} : vector<256x768xf32>, vector<768x512xf32>, vector<256x512xf32> -> vector<256x512xf32>
    %c0_3 = arith.constant 0 : index
    %c0_4 = arith.constant 0 : index
    %3 = vector.load %arg3[%c0_3, %c0_4] : memref<1x512xf32, #tpu.memory_space<vmem>>, vector<1x512xf32>
    %4 = vector.broadcast %3 : vector<1x512xf32> to vector<256x512xf32>
    %5 = arith.addf %2, %4 : vector<256x512xf32>
    %cst_5 = arith.constant 0.000000e+00 : f32
    %6 = vector.broadcast %cst_5 : f32 to vector<256x512xf32>
    %7 = arith.maximumf %5, %6 : vector<256x512xf32>
    %c0_6 = arith.constant 0 : index
    %c0_7 = arith.constant 0 : index
    %8 = vector.load %arg4[%c0_6, %c0_7] : memref<512x256xf32, #tpu.memory_space<vmem>>, vector<512x256xf32>
    %cst_8 = arith.constant dense<0.000000e+00> : vector<256x256xf32>
    %9 = tpu.matmul %7, %8, %cst_8 {dimension_numbers = #tpu.dot_dimension_numbers<[1], [0], [0], [1], [0, 0, 1, 1], [], []>} : vector<256x512xf32>, vector<512x256xf32>, vector<256x256xf32> -> vector<256x256xf32>
    %c0_9 = arith.constant 0 : index
    %c0_10 = arith.constant 0 : index
    %10 = vector.load %arg5[%c0_9, %c0_10] : memref<1x256xf32, #tpu.memory_space<vmem>>, vector<1x256xf32>
    %11 = vector.broadcast %10 : vector<1x256xf32> to vector<256x256xf32>
    %12 = arith.addf %9, %11 : vector<256x256xf32>
    %c0_11 = arith.constant 0 : index
    %c0_12 = arith.constant 0 : index
    %13 = vector.load %arg6[%c0_11, %c0_12] : memref<256x256xf32, #tpu.memory_space<vmem>>, vector<256x256xf32>
    tpu.vector_store %arg6[%c0_11, %c0_12], %12 {strides = array<i32>} : memref<256x256xf32, #tpu.memory_space<vmem>>, vector<256x256xf32>,
    return
  }
  func.func @transform_0(%arg0: i32) -> (i32, i32) {
    %c0_i32 = arith.constant 0 : i32
    %c0_i32_0 = arith.constant 0 : i32
    return %arg0, %c0_i32 : i32, i32
  }
  func.func @transform_1(%arg0: i32) -> (i32, i32) {
    %c0_i32 = arith.constant 0 : i32
    %c0_i32_0 = arith.constant 0 : i32
    %c0_i32_1 = arith.constant 0 : i32
    return %c0_i32, %c0_i32_0 : i32, i32
  }
  func.func @transform_2(%arg0: i32) -> (i32, i32) {
    %c0_i32 = arith.constant 0 : i32
    %c0_i32_0 = arith.constant 0 : i32
    %c0_i32_1 = arith.constant 0 : i32
    return %c0_i32, %c0_i32_0 : i32, i32
  }
  func.func @transform_3(%arg0: i32) -> (i32, i32) {
    %c0_i32 = arith.constant 0 : i32
    %c0_i32_0 = arith.constant 0 : i32
    %c0_i32_1 = arith.constant 0 : i32
    return %c0_i32, %c0_i32_0 : i32, i32
  }
  func.func @transform_4(%arg0: i32) -> (i32, i32) {
    %c0_i32 = arith.constant 0 : i32
    %c0_i32_0 = arith.constant 0 : i32
    %c0_i32_1 = arith.constant 0 : i32
    return %c0_i32, %c0_i32_0 : i32, i32
  }
  func.func @transform_5(%arg0: i32) -> (i32, i32) {
    %c0_i32 = arith.constant 0 : i32
    %c0_i32_0 = arith.constant 0 : i32
    return %arg0, %c0_i32 : i32, i32
  }
}

</mosaic_0001>

<bundles_post_ra>
// kernel: tpu_custom_call.1
= control target key start
LH: loop header
LB: loop body
LE: loop exit
PB: predicated region body
PF: predicated region fallthrough
CT: control target
= control target key end

     0   :  { %s6295_s0 = inlined_call_operand.hbm [shape: f32[300,768], index: 0, kind: input, shape index: {}]   ;;  %s6296_s1 = inlined_call_operand.hbm [shape: f32[768,512], index: 1, kind: input, shape index: {}]   ;;  %s6297_s2 = inlined_call_operand.hbm [shape: f32[1,512], index: 2, kind: input, shape index: {}]   ;;  %s6298_s3 = inlined_call_operand.hbm [shape: f32[512,256], index: 3, kind: input, shape index: {}]   ;;  %s6299_s4 = inlined_call_operand.hbm [shape: f32[1,256], index: 4, kind: input, shape index: {}]   ;;  %s6300_s5 = inlined_call_operand.hbm [shape: f32[300,256], index: 5, kind: output, shape index: {}]  }
   0x1   :  { %6320 = sst [smem:[#allocation38_spill]] %s6296_s1 }
   0x2   :  { %10 = vsyncpa [#allocation3], 0 }
   0x3   :  { %12 = vsyncpa [#allocation3 + $0x1], 0 }
   0x4   :  { %13 = vsyncpa [#allocation6], 0 }
   0x5   :  { %14 = vsyncpa [#allocation9], 0 }
   0x6   :  { %15 = vsyncpa [#allocation4], 0 }
   0x7   :  { %17 = vsyncpa [#allocation4 + $0x1], 0  ;;  %s4984_s18 = smov 0   ;;  %s4986_s19 = smov 0  }
   0x8   :  { %s4988_s20 = smov 0   ;;  %s4990_s21 = smov 0  }
   0x9 LB: > { %6321 = sst [smem:[#allocation16_spill]] %s4926_s18  ;;  %s5005_s22 = sadd.s32 4294967295, %s4938_s21   ;;  %s4938_s21 = sphi %s4990_s21, %s6398_s21   ;;  %s4934_s20 = sphi %s4988_s20, %s6402_s20   ;;  %s4930_s19 = sphi %s4986_s19, %s6401_s19   ;;  %s4926_s18 = sphi %s4984_s18, %s6400_s18  }
   0xa   : > { %s3436_s23 = sadd.s32 4294967294, %s4938_s21   ;;  %s5009_s24 = sadd.s32 1, %s4938_s21  }
   0xb   : > { %6322 = sst [smem:[#allocation17_spill]] %s5009_s24  ;;  %s30_s25 = sadd.s32 1, %s4934_s20 }
   0xc   : > { %s27_s26 = ssub.s32 %s4938_s21, %s5009_s24  ;;  %p37_p0 = scmp.ne.s32.totalorder %s4934_s20, %s4930_s19 }
   0xd   : > { %p28_p1 = scmp.eq.s32.totalorder %s27_s26, 0  ;;  %p38_p2 = scmp.eq.s32.totalorder %s4938_s21, 0 }
   0xe   : > { %p43_p3 = scmp.ne.s32.totalorder %s4930_s19, %s4926_s18  ;;  %p6301_p4 = scmp.eq.s32.totalorder %s5005_s22, 0 }
   0xf   : > { %s5021_s27 = scalar_select %p28_p1, %s4934_s20, %s30_s25  }
  0x10   : > { %p5023_p5 = por %p38_p2, %p37_p0  ;;  %p5029_p6 = por %p6301_p4, %p43_p3 }
  0x11   : > { %6323 = sst [smem:[#allocation18_spill]] %s5021_s27  ;;  %p151_p7 = scmp.eq.s32.totalorder %s5005_s22, 1 }
  0x12   : > { %s6324_s28 = scalar_select %p5023_p5, 1, 0 }
  0x13   : > { %s6325_s29 = scalar_select %p5029_p6, 1, 0 }
  0x14   : > { %p157_p8 = scmp.eq.s32.totalorder %s3436_s23, 1  ;;  %p3437_p9 = scmp.ge.s32.totalorder %s4938_s21, 1 }
  0x15   : > { %p164_p10 = scmp.lt.s32.totalorder %s4938_s21, 3  ;;  %p5036_p11 = por %p151_p7, %p37_p0 }
  0x16   : > { %p5040_p12 = por %p157_p8, %p43_p3  ;;  %s4940_s8 = smov [#allocation5]  }
  0x17   : > { %s6326_s30 = scalar_select %p5036_p11, 1, 0 }
  0x18   : > { %s6327_s6 = scalar_select %p5040_p12, 1, 0 }
  0x19   : > { %p5044_p13 = pnand %p3437_p9, %p164_p10  ;;  %s176_s9 = sshll.u32 %s4940_s8, 4  ;;  %s177_s9 = int_to_ptr.vmem [resolvable:$true] %s176_s9 }
  0x1a   : > { %6328 = sst [smem:[#allocation19_spill]] %s6327_s6  ;;  %s4941_s11 = smov [#allocation8]  }
  0x1b   : > { %s6329_s7 = scalar_select %p5044_p13, 1, 0 }
  0x1c   : > { %p4515_p1 = pneg %p5044_p13  ;;  %s200_s12 = sshll.u32 %s4941_s11, 4  ;;  %s5056_s12 = int_to_ptr.vmem [resolvable:$true] %s200_s12 }
  0x1d   : > { %s6331_s1 = sld [smem:[#allocation38_spill]] }
  0x1e   : > { %p5052_p2 = pnand %p4515_p1, %p6301_p4 }
  0x20   : > { %p5066_p3 = pneg %p5052_p2 }
  0x23   : > { %s4724_s15 = scalar_lea.hbm %s6331_s1, 49152 }
  0x24   : > { %p4725_p0 = scmp.ne.s32.totalorder %s6331_s1, %s4724_s15  ;;  %p4731_p9 = scmp.lt.u32.totalorder %s4724_s15, %s6331_s1 }
  0x26   : > { %p4727_p7 = pnand %p5066_p3, %p4725_p0 }
  0x28   : > { %p4728_p8 = pneg %p4727_p7 }
  0x2a   : > { %p4733_p10 = pnand %p4731_p9, %p4728_p8 }
  0x2c   : > { %4736 = shalt.err (!%p4733_p10)
}
  0x2d   : > { %s4737_s8 = scalar_lea.vmem %s177_s9, 49152  ;;  %p4745_p11 = scmp.lt.s32.totalorder %s177_s9, %s177_s9 }
  0x2e   : > { %p4738_p1 = scmp.ne.s32.totalorder %s177_s9, %s4737_s8  ;;  %p4746_p6 = scmp.lt.s32.totalorder %s4737_s8, %s4737_s8 }
  0x30   : > { %p4740_p4 = pnand %p4738_p1, %p5066_p3  ;;  %p4747_p13 = por %p4746_p6, %p4745_p11 }
  0x32   : > { %p4741_p12 = pneg %p4740_p4 }
  0x34   : > { %p4748_p5 = pnand %p4747_p13, %p4741_p12 }
  0x36   : > { %4751 = shalt.err (!%p4748_p5)
}
  0x37   : > { %s4942_s11 = smov 512   ;;  %s4943_s13 = smov 32  }
  0x38   : > { %4518 = dma.hbm_to_vmem [thread:$0]  (!%p5052_p2), %s6331_s1, 49152, %s177_s9, [#allocation6], %s4942_s11, %s4942_s11, %s4943_s13  }
  0x39   : > { %s4752_s25 = scalar_lea.hbm %s6298_s3, 16384 }
  0x3a   : > { %p4753_p4 = scmp.ne.s32.totalorder %s6298_s3, %s4752_s25  ;;  %p4759_p11 = scmp.lt.u32.totalorder %s4752_s25, %s6298_s3 }
  0x3c   : > { %p4755_p6 = pnand %p4753_p4, %p5066_p3 }
  0x3e   : > { %p4756_p5 = pneg %p4755_p6 }
  0x40   : > { %p4761_p12 = pnand %p4759_p11, %p4756_p5 }
  0x42   : > { %4764 = shalt.err (!%p4761_p12)
}
  0x43   : > { %s4765_s9 = scalar_lea.vmem %s5056_s12, 16384  ;;  %p4773_p8 = scmp.lt.s32.totalorder %s5056_s12, %s5056_s12 }
  0x44   : > { %p4766_p13 = scmp.ne.s32.totalorder %s5056_s12, %s4765_s9  ;;  %p4774_p9 = scmp.lt.s32.totalorder %s4765_s9, %s4765_s9 }
  0x46   : > { %p4768_p0 = pnand %p4766_p13, %p5066_p3  ;;  %p4775_p10 = por %p4774_p9, %p4773_p8 }
  0x48   : > { %p4769_p7 = pneg %p4768_p0 }
  0x4a   : > { %p4776_p1 = pnand %p4775_p10, %p4769_p7 }
  0x4c   : > { %4779 = shalt.err (!%p4776_p1)
}
  0x4d   : > { %s4944_s27 = smov 256   ;;  %s4945_s24 = smov 16  }
  0x4e   : > { %4524 = dma.hbm_to_vmem [thread:$0]  (!%p5052_p2), %s6298_s3, 16384, %s5056_s12, [#allocation9], %s4944_s27, %s4944_s27, %s4945_s24  }
  0x4f   : > { %s4946_s14 = smov [#allocation7]   ;;  %s4947_s16 = smov [#allocation10]  }
  0x50   : > { %s190_s15 = sshll.u32 %s4946_s14, 4  ;;  %s214_s17 = sshll.u32 %s4947_s16, 4  ;;  %s191_s15 = int_to_ptr.vmem [resolvable:$true] %s190_s15  ;;  %s215_s17 = int_to_ptr.vmem [resolvable:$true] %s214_s17 }
  0x51   : > { %s4780_s8 = scalar_lea.hbm %s6297_s2, 64 }
  0x52   : > { %p4781_p4 = scmp.ne.s32.totalorder %s6297_s2, %s4780_s8  ;;  %p4787_p11 = scmp.lt.u32.totalorder %s4780_s8, %s6297_s2 }
  0x54   : > { %p4783_p6 = pnand %p4781_p4, %p5066_p3 }
  0x56   : > { %p4784_p5 = pneg %p4783_p6 }
  0x58   : > { %p4789_p12 = pnand %p4787_p11, %p4784_p5 }
  0x5a   : > { %4792 = shalt.err (!%p4789_p12)
}
  0x5b   : > { %s4793_s12 = scalar_lea.vmem %s191_s15, 64  ;;  %p4801_p8 = scmp.lt.s32.totalorder %s191_s15, %s191_s15 }
  0x5c   : > { %p4794_p13 = scmp.ne.s32.totalorder %s191_s15, %s4793_s12  ;;  %p4802_p9 = scmp.lt.s32.totalorder %s4793_s12, %s4793_s12 }
  0x5e   : > { %p4796_p0 = pnand %p4794_p13, %p5066_p3  ;;  %p4803_p10 = por %p4802_p9, %p4801_p8 }
  0x60   : > { %p4797_p7 = pneg %p4796_p0 }
  0x62   : > { %p4804_p1 = pnand %p4803_p10, %p4797_p7 }
  0x64   : > { %4807 = shalt.err (!%p4804_p1)
}
  0x65   : > { %4521 = dma.hbm_to_vmem [thread:$0]  (!%p5052_p2), %s6297_s2, 64, %s191_s15, [#allocation6]  }
  0x66   : > { %s4808_s24 = scalar_lea.hbm %s6299_s4, 32 }
  0x67   : > { %p4809_p4 = scmp.ne.s32.totalorder %s6299_s4, %s4808_s24  ;;  %p4815_p11 = scmp.lt.u32.totalorder %s4808_s24, %s6299_s4 }
  0x69   : > { %p4811_p6 = pnand %p4809_p4, %p5066_p3 }
  0x6b   : > { %p4812_p5 = pneg %p4811_p6 }
  0x6d   : > { %p4817_p12 = pnand %p4815_p11, %p4812_p5 }
  0x6f   : > { %4820 = shalt.err (!%p4817_p12)
}
  0x70   : > { %s4821_s25 = scalar_lea.vmem %s215_s17, 32  ;;  %p4829_p8 = scmp.lt.s32.totalorder %s215_s17, %s215_s17 }
  0x71   : > { %p4822_p13 = scmp.ne.s32.totalorder %s215_s17, %s4821_s25  ;;  %p4830_p9 = scmp.lt.s32.totalorder %s4821_s25, %s4821_s25 }
  0x73   : > { %p4824_p0 = pnand %p4822_p13, %p5066_p3  ;;  %p4831_p10 = por %p4830_p9, %p4829_p8 }
  0x75   : > { %p4825_p7 = pneg %p4824_p0 }
  0x77   : > { %p4832_p1 = pnand %p4831_p10, %p4825_p7 }
  0x79   : > { %4835 = shalt.err (!%p4832_p1)
}
  0x7a   : > { %4527 = dma.hbm_to_vmem [thread:$0]  (!%p5052_p2), %s6299_s4, 32, %s215_s17, [#allocation9]  }
  0x7b   : > { %p3442_p4 = scmp.ge.s32.totalorder %s4938_s21, 2 }
  0x7c   : > { %p6333_p6 = scmp.ne.s32.totalorder (!%p3442_p4), %s6324_s28, 0 }
  0x7d   : > { %221 = sbr.rel (%p3442_p4) target bundleno = 168 (0xa8), region = 32 }
  0x84   : > { %224 = sbr.rel (!%p6333_p6) target bundleno = 168 (0xa8), region = 36  ;;  %s225_s23 = sand.u32 (%p6333_p6), 1, %s4934_s20  }
  0x85   : > { %s3443_s8 = sshll.u32 (%p6333_p6), %s4938_s21, 5  ;;  %s4494_s9 = smul.u32 (%p6333_p6), 1536, %s225_s23 }
  0x86   : > { %s231_s12 = ssub.s32 (%p6333_p6), 38, %s3443_s8  ;;  %s5151_s1 = scalar_lea.sflag (%p6333_p6), [#allocation3], %s225_s23 }
  0x87   : > { %p232_p3 = scmp.lt.s32.totalorder (%p6333_p6), %s231_s12, 32  ;;  %s229_s27 = scalar_lea.vmem (%p6333_p6), [#allocation2], %s4494_s9 }
  0x8b   : > { %s6404_s12 = smov (!%p232_p3, %s231_s12), 32 }
  0x8c   : > { %s5148_s10 = smul.u32 768, %s6404_s12 }
  0x8e   : > { %s237_s17 = ssub.s32 24576, %s5148_s10 }
  0x8f   : > { %238 = vsyncadd %s5151_s1, %s237_s17  ;;  %p3446_p2 = scmp.ne.s32.totalorder %s5148_s10, 0  ;;  %s4495_s28 = smul.u32 24576, %s4938_s21 }
  0x90   : > { %s244_s18 = sshll.u32 %s229_s27, 4  ;;  %s4840_s25 = scalar_lea.hbm %s6295_s0, 29184  ;;  %s5161_s18 = int_to_ptr.vmem [resolvable:$true] %s244_s18 }
  0x91   : > { %s5159_s11 = scalar_lea.hbm %s6295_s0, %s4495_s28 }
  0x92   : > { %s4836_s13 = scalar_lea.hbm %s5159_s11, %s5148_s10  ;;  %p4841_p13 = scmp.lt.u32.totalorder %s5159_s11, %s6295_s0 }
  0x93   : > { %p4837_p5 = scmp.ne.s32.totalorder %s5159_s11, %s4836_s13  ;;  %p4842_p0 = scmp.lt.u32.totalorder %s4840_s25, %s4836_s13 }
  0x94   : > { %p4844_p8 = scmp.lt.u32.totalorder %s4836_s13, %s5159_s11 }
  0x95   : > { %p4838_p11 = pnand %p4837_p5, %p3446_p2  ;;  %p4843_p7 = por %p4842_p0, %p4841_p13 }
  0x97   : > { %p4839_p12 = pneg %p4838_p11  ;;  %p4845_p9 = por %p4844_p8, %p4843_p7 }
  0x99   : > { %p4846_p10 = pnand %p4845_p9, %p4839_p12 }
  0x9b   : > { %4849 = shalt.err (!%p4846_p10)
}
  0x9c   : > { %s4850_s23 = scalar_lea.vmem %s5161_s18, %s5148_s10  ;;  %s4948_s8 = smov [#allocation2]  }
  0x9d   : > { %p4851_p1 = scmp.ne.s32.totalorder %s5161_s18, %s4850_s23  ;;  %s4854_s9 = sshll.u32 %s4948_s8, 4  ;;  %s4855_s9 = int_to_ptr.vmem [resolvable:$false] %s4854_s9 }
  0x9e   : > { %s4856_s12 = scalar_lea.vmem %s4855_s9, 49152  ;;  %p4857_p5 = scmp.lt.s32.totalorder %s5161_s18, %s4855_s9 }
  0x9f   : > { %p4852_p6 = pnand %p4851_p1, %p3446_p2  ;;  %p4858_p11 = scmp.lt.s32.totalorder %s4856_s12, %s4850_s23 }
  0xa1   : > { %p4853_p3 = pneg %p4852_p6  ;;  %p4859_p13 = por %p4858_p11, %p4857_p5 }
  0xa3   : > { %p4860_p0 = pnand %p4859_p13, %p4853_p3 }
  0xa5   : > { %4863 = shalt.err (!%p4860_p0)
}
  0xa6   : > { %s4949_s17 = smov 768   ;;  %s4950_s27 = smov 48  }
  0xa7   : > { %250 = dma.hbm_to_vmem [thread:$0]  (%p3446_p2), %s5159_s11, %s5148_s10, %s5161_s18, %s5151_s1, %s4949_s17, %s4949_s17, %s4950_s27  }
  0xa8 PF: > { %p6334_p12 = scmp.ne.s32.totalorder %s6329_s7, 0 }
  0xaa   : > { %256 = sbr.rel (%p6334_p12) target bundleno = 1227 (0x4cb), region = 40 }
  0xb1   : > { %s5191_s28 = sand.u32 1, %s4930_s19   ;;  %p6335_p7 = scmp.ne.s32.totalorder %s6325_s29, 0 }
  0xb2   : > { %s4496_s6 = smul.u32 1536, %s5191_s28  ;;  %s259_s24 = scalar_lea.sflag [#allocation3], %s5191_s28 }
  0xb4   : > { %s5195_s13 = scalar_lea.vmem [#allocation2], %s4496_s6 }
  0xb5   : > { %4909 = dma.done.wait (%p6335_p7), %s259_s24, 24576  }
  0xb6   : > { %4911 = vsyncadd (%p6335_p7), %s259_s24, 4294942720  ;;  %p6336_p2 = scmp.eq.s32.totalorder %s5005_s22, 0 }
  0xb8   : > { %4913 = dma.done.wait (%p6336_p2), [#allocation6], 49216   ;;  %p6337_p8 = pmov %p6336_p2 }
  0xb9   : > { %p6338_p9 = pmov %p6336_p2 }
  0xba   : > { %4915 = vsyncadd (%p6337_p8), [#allocation6], 4294918080 }
  0xbb   : > { %4917 = dma.done.wait (%p6338_p9), [#allocation9], 16416   ;;  %p6339_p10 = pmov %p6336_p2 }
  0xbc   : > { %v510_v0 = vld [vmem:[#allocation5 + $0x8] sm:$0xff]  ;;  %v509_v5 = vld [vmem:[#allocation5] sm:$0xff]  ;;  %s3455_s29 = sshll.u32 %s5191_s28, 9  ;;  %s3304_s10 = scalar_lea.sflag [#allocation4], %s5191_s28 }
  0xbd   : > { %4919 = vsyncadd (%p6339_p10), [#allocation9], 4294950880  ;;  %v514_v1 = vld [vmem:[#allocation5 + $0x28] sm:$0xff]  ;;  %v513_v6 = vld [vmem:[#allocation5 + $0x20] sm:$0xff]  ;;  %s6104_s7 = scalar_lea.vmem [#allocation11], %s3455_s29  ;;  %p6394_p1 = scmp.ne.s32.totalorder %s6326_s30, 0 }
  0xbe   : > { %v638_v2 = vld [vmem:[#allocation5 + $0x408] sm:$0xff]  ;;  %v3470_v3 = vpack.c.bf16 %v514_v1, %v510_v0  ;;  %v3472_v8 = vpack.c.bf16 %v513_v6, %v509_v5  ;;  %v637_v9 = vld [vmem:[#allocation5 + $0x400] sm:$0xff]  ;;  %s3457_s1 = sshll.u32 (%p6394_p1), %s5005_s22, 5 }
  0xbf   : > { %v642_v4 = vld [vmem:[#allocation5 + $0x428] sm:$0xff]  ;;  %v641_v10 = vld [vmem:[#allocation5 + $0x420] sm:$0xff]  ;;  %s3312_s18 = ssub.s32 (%p6394_p1), 38, %s3457_s1 }
  0xc0   : > { %v3534_v7 = vpack.c.bf16 %v642_v4, %v638_v2  ;;  %v518_v11 = vld [vmem:[#allocation5 + $0x48] sm:$0xff]  ;;  %3471 = vmatprep.subr.bf16.mxu1 %v3470_v3  ;;  %v3536_v12 = vpack.c.bf16 %v641_v10, %v637_v9  ;;  %v517_v18 = vld [vmem:[#allocation5 + $0x40] sm:$0xff]  ;;  %p3313_p6 = scmp.lt.s32.totalorder (%p6394_p1), %s3312_s18, 32 }
  0xc1   : > { %v522_v13 = vld [vmem:[#allocation5 + $0x68] sm:$0xff]  ;;  %3473 = vmatpush1.bf16.msra.mxu1 %v3472_v8  ;;  %v521_v19 = vld [vmem:[#allocation5 + $0x60] sm:$0xff] }
  0xc2   : > { %v646_v14 = vld [vmem:[#allocation5 + $0x448] sm:$0xff]  ;;  %3535 = vmatprep.subr.bf16.mxu0 %v3534_v7  ;;  %v3474_v16 = vpack.c.bf16 %v522_v13, %v518_v11  ;;  %v645_v20 = vld [vmem:[#allocation5 + $0x440] sm:$0xff]  ;;  %v3476_v21 = vpack.c.bf16 %v521_v19, %v517_v18 }
  0xc3   : > { %v650_v15 = vld [vmem:[#allocation5 + $0x468] sm:$0xff]  ;;  %3537 = vmatpush1.bf16.msra.mxu0 %v3536_v12  ;;  %v649_v22 = vld [vmem:[#allocation5 + $0x460] sm:$0xff] }
  0xc4   : > { %v3538_v17 = vpack.c.bf16 %v650_v15, %v646_v14  ;;  %v526_v23 = vld [vmem:[#allocation5 + $0x88] sm:$0xff]  ;;  %3475 = vmatprep.subr.bf16.mxu1 %v3474_v16  ;;  %v3540_v25 = vpack.c.bf16 %v649_v22, %v645_v20  ;;  %v525_v29 = vld [vmem:[#allocation5 + $0x80] sm:$0xff] }
  0xc5   : > { %v530_v24 = vld [vmem:[#allocation5 + $0xa8] sm:$0xff]  ;;  %v529_v31 = vld [vmem:[#allocation5 + $0xa0] sm:$0xff]  ;;  %3477 = vmatpush1.bf16.msra.mxu1 %v3476_v21 }
  0xc6   : > { %3539 = vmatprep.subr.bf16.mxu0 %v3538_v17  ;;  %v3478_v26 = vpack.c.bf16 %v530_v24, %v526_v23  ;;  %v654_v27 = vld [vmem:[#allocation5 + $0x488] sm:$0xff]  ;;  %v653_v32 = vld [vmem:[#allocation5 + $0x480] sm:$0xff]  ;;  %v3480_v34 = vpack.c.bf16 %v529_v31, %v525_v29 }
  0xc7   : > { %v658_v28 = vld [vmem:[#allocation5 + $0x4a8] sm:$0xff]  ;;  %v657_v33 = vld [vmem:[#allocation5 + $0x4a0] sm:$0xff]  ;;  %3541 = vmatpush1.bf16.msra.mxu0 %v3540_v25 }
  0xc8   : > { %v3542_v30 = vpack.c.bf16 %v658_v28, %v654_v27  ;;  %v534_v35 = vld [vmem:[#allocation5 + $0xc8] sm:$0xff]  ;;  %3479 = vmatprep.subr.bf16.mxu1 %v3478_v26  ;;  %v3544_v38 = vpack.c.bf16 %v657_v33, %v653_v32  ;;  %v533_v41 = vld [vmem:[#allocation5 + $0xc0] sm:$0xff] }
  0xc9   : > { %v538_v36 = vld [vmem:[#allocation5 + $0xe8] sm:$0xff]  ;;  %v537_v42 = vld [vmem:[#allocation5 + $0xe0] sm:$0xff]  ;;  %3481 = vmatpush1.bf16.msra.mxu1 %v3480_v34 }
  0xca   : > { %v662_v37 = vld [vmem:[#allocation5 + $0x4c8] sm:$0xff]  ;;  %v3482_v39 = vpack.c.bf16 %v538_v36, %v534_v35  ;;  %3543 = vmatprep.subr.bf16.mxu0 %v3542_v30  ;;  %v661_v44 = vld [vmem:[#allocation5 + $0x4c0] sm:$0xff]  ;;  %v3484_v50 = vpack.c.bf16 %v537_v42, %v533_v41 }
  0xcb   : > { %v666_v40 = vld [vmem:[#allocation5 + $0x4e8] sm:$0xff]  ;;  %v665_v45 = vld [vmem:[#allocation5 + $0x4e0] sm:$0xff]  ;;  %3545 = vmatpush1.bf16.msra.mxu0 %v3544_v38 }
  0xcc   : > { %v3546_v43 = vpack.c.bf16 %v666_v40, %v662_v37  ;;  %v542_v46 = vld [vmem:[#allocation5 + $0x108] sm:$0xff]  ;;  %3483 = vmatprep.subr.bf16.mxu1 %v3482_v39  ;;  %v3548_v51 = vpack.c.bf16 %v665_v45, %v661_v44  ;;  %v541_v53 = vld [vmem:[#allocation5 + $0x100] sm:$0xff] }
  0xcd   : > { %v546_v47 = vld [vmem:[#allocation5 + $0x128] sm:$0xff]  ;;  %v545_v54 = vld [vmem:[#allocation5 + $0x120] sm:$0xff]  ;;  %3485 = vmatpush1.bf16.msra.mxu1 %v3484_v50 }
  0xce   : > { %v670_v48 = vld [vmem:[#allocation5 + $0x508] sm:$0xff]  ;;  %v3486_v52 = vpack.c.bf16 %v546_v47, %v542_v46  ;;  %v669_v55 = vld [vmem:[#allocation5 + $0x500] sm:$0xff]  ;;  %3547 = vmatprep.subr.bf16.mxu0 %v3546_v43  ;;  %v3488_v62 = vpack.c.bf16 %v545_v54, %v541_v53 }
  0xcf   : > { %v674_v49 = vld [vmem:[#allocation5 + $0x528] sm:$0xff]  ;;  %v673_v57 = vld [vmem:[#allocation5 + $0x520] sm:$0xff]  ;;  %3549 = vmatpush1.bf16.msra.mxu0 %v3548_v51 }
  0xd0   : > { %v3550_v56 = vpack.c.bf16 %v674_v49, %v670_v48  ;;  %v550_v58 = vld [vmem:[#allocation5 + $0x148] sm:$0xff]  ;;  %3487 = vmatprep.subr.bf16.mxu1 %v3486_v52  ;;  %v3552_v63 = vpack.c.bf16 %v673_v57, %v669_v55  ;;  %v549_v1 = vld [vmem:[#allocation5 + $0x140] sm:$0xff] }
  0xd1   : > { %v554_v59 = vld [vmem:[#allocation5 + $0x168] sm:$0xff]  ;;  %v553_v2 = vld [vmem:[#allocation5 + $0x160] sm:$0xff]  ;;  %3489 = vmatpush1.bf16.msra.mxu1 %v3488_v62 }
  0xd2   : > { %v678_v60 = vld [vmem:[#allocation5 + $0x548] sm:$0xff]  ;;  %v3490_v0 = vpack.c.bf16 %v554_v59, %v550_v58  ;;  %v677_v3 = vld [vmem:[#allocation5 + $0x540] sm:$0xff]  ;;  %3551 = vmatprep.subr.bf16.mxu0 %v3550_v56  ;;  %v3492_v10 = vpack.c.bf16 %v553_v2, %v549_v1 }
  0xd3   : > { %v682_v61 = vld [vmem:[#allocation5 + $0x568] sm:$0xff]  ;;  %v681_v5 = vld [vmem:[#allocation5 + $0x560] sm:$0xff]  ;;  %3553 = vmatpush1.bf16.msra.mxu0 %v3552_v63 }
  0xd4   : > { %v3554_v4 = vpack.c.bf16 %v682_v61, %v678_v60  ;;  %v558_v6 = vld [vmem:[#allocation5 + $0x188] sm:$0xff]  ;;  %3491 = vmatprep.subr.bf16.mxu1 %v3490_v0  ;;  %v3556_v11 = vpack.c.bf16 %v681_v5, %v677_v3  ;;  %v557_v13 = vld [vmem:[#allocation5 + $0x180] sm:$0xff] }
  0xd5   : > { %v562_v7 = vld [vmem:[#allocation5 + $0x1a8] sm:$0xff]  ;;  %v561_v14 = vld [vmem:[#allocation5 + $0x1a0] sm:$0xff]  ;;  %3493 = vmatpush1.bf16.msra.mxu1 %v3492_v10 }
  0xd6   : > { %v686_v8 = vld [vmem:[#allocation5 + $0x588] sm:$0xff]  ;;  %v3494_v12 = vpack.c.bf16 %v562_v7, %v558_v6  ;;  %v685_v15 = vld [vmem:[#allocation5 + $0x580] sm:$0xff]  ;;  %3555 = vmatprep.subr.bf16.mxu0 %v3554_v4  ;;  %v3496_v22 = vpack.c.bf16 %v561_v14, %v557_v13 }
  0xd7   : > { %v690_v9 = vld [vmem:[#allocation5 + $0x5a8] sm:$0xff]  ;;  %v689_v17 = vld [vmem:[#allocation5 + $0x5a0] sm:$0xff]  ;;  %3557 = vmatpush1.bf16.msra.mxu0 %v3556_v11 }
  0xd8   : > { %v3558_v16 = vpack.c.bf16 %v690_v9, %v686_v8  ;;  %v566_v18 = vld [vmem:[#allocation5 + $0x1c8] sm:$0xff]  ;;  %3495 = vmatprep.subr.bf16.mxu1 %v3494_v12  ;;  %v3560_v23 = vpack.c.bf16 %v689_v17, %v685_v15  ;;  %v565_v25 = vld [vmem:[#allocation5 + $0x1c0] sm:$0xff] }
  0xd9   : > { %v570_v19 = vld [vmem:[#allocation5 + $0x1e8] sm:$0xff]  ;;  %v569_v26 = vld [vmem:[#allocation5 + $0x1e0] sm:$0xff]  ;;  %3497 = vmatpush1.bf16.msra.mxu1 %v3496_v22 }
  0xda   : > { %v694_v20 = vld [vmem:[#allocation5 + $0x5c8] sm:$0xff]  ;;  %v3498_v24 = vpack.c.bf16 %v570_v19, %v566_v18  ;;  %v693_v27 = vld [vmem:[#allocation5 + $0x5c0] sm:$0xff]  ;;  %3559 = vmatprep.subr.bf16.mxu0 %v3558_v16  ;;  %v3500_v34 = vpack.c.bf16 %v569_v26, %v565_v25  ;;  %v320_v19 = vld [vmem:[%s5195_s13 + $0x18] sm:$0xff] }
  0xdb   : > { %v698_v21 = vld [vmem:[#allocation5 + $0x5e8] sm:$0xff]  ;;  %v697_v29 = vld [vmem:[#allocation5 + $0x5e0] sm:$0xff]  ;;  %3561 = vmatpush1.bf16.msra.mxu0 %v3560_v23  ;;  %1236 = vmatprep.mubr.f32.mxu0 %v320_v19  ;;  %v323_v19 = vld [vmem:[%s5195_s13 + $0x30] sm:$0xff] }
  0xdc   : > { %v3562_v28 = vpack.c.bf16 %v698_v21, %v694_v20  ;;  %v574_v30 = vld [vmem:[#allocation5 + $0x208] sm:$0xff]  ;;  %3499 = vmatprep.subr.bf16.mxu1 %v3498_v24  ;;  %v3564_v35 = vpack.c.bf16 %v697_v29, %v693_v27  ;;  %v573_v37 = vld [vmem:[#allocation5 + $0x200] sm:$0xff] }
  0xdd   : > { %v578_v31 = vld [vmem:[#allocation5 + $0x228] sm:$0xff]  ;;  %v577_v38 = vld [vmem:[#allocation5 + $0x220] sm:$0xff]  ;;  %3501 = vmatpush1.bf16.msra.mxu1 %v3500_v34 }
  0xde   : > { %v702_v32 = vld [vmem:[#allocation5 + $0x608] sm:$0xff]  ;;  %v3502_v36 = vpack.c.bf16 %v578_v31, %v574_v30  ;;  %v701_v39 = vld [vmem:[#allocation5 + $0x600] sm:$0xff]  ;;  %3563 = vmatprep.subr.bf16.mxu0 %v3562_v28  ;;  %v3504_v46 = vpack.c.bf16 %v577_v38, %v573_v37 }
  0xdf   : > { %v706_v33 = vld [vmem:[#allocation5 + $0x628] sm:$0xff]  ;;  %v705_v41 = vld [vmem:[#allocation5 + $0x620] sm:$0xff]  ;;  %3565 = vmatpush1.bf16.msra.mxu0 %v3564_v35 }
  0xe0   : > { %v3566_v40 = vpack.c.bf16 %v706_v33, %v702_v32  ;;  %v582_v42 = vld [vmem:[#allocation5 + $0x248] sm:$0xff]  ;;  %3503 = vmatprep.subr.bf16.mxu1 %v3502_v36  ;;  %v3568_v47 = vpack.c.bf16 %v705_v41, %v701_v39  ;;  %v581_v49 = vld [vmem:[#allocation5 + $0x240] sm:$0xff] }
  0xe1   : > { %v586_v43 = vld [vmem:[#allocation5 + $0x268] sm:$0xff]  ;;  %v585_v50 = vld [vmem:[#allocation5 + $0x260] sm:$0xff]  ;;  %3505 = vmatpush1.bf16.msra.mxu1 %v3504_v46 }
  0xe2   : > { %v710_v44 = vld [vmem:[#allocation5 + $0x648] sm:$0xff]  ;;  %v3506_v48 = vpack.c.bf16 %v586_v43, %v582_v42  ;;  %v709_v51 = vld [vmem:[#allocation5 + $0x640] sm:$0xff]  ;;  %3567 = vmatprep.subr.bf16.mxu0 %v3566_v40  ;;  %v3508_v58 = vpack.c.bf16 %v585_v50, %v581_v49 }
  0xe3   : > { %v714_v45 = vld [vmem:[#allocation5 + $0x668] sm:$0xff]  ;;  %v713_v53 = vld [vmem:[#allocation5 + $0x660] sm:$0xff]  ;;  %3569 = vmatpush1.bf16.msra.mxu0 %v3568_v47 }
  0xe4   : > { %v3570_v52 = vpack.c.bf16 %v714_v45, %v710_v44  ;;  %v590_v54 = vld [vmem:[#allocation5 + $0x288] sm:$0xff]  ;;  %3507 = vmatprep.subr.bf16.mxu1 %v3506_v48  ;;  %v3572_v59 = vpack.c.bf16 %v713_v53, %v709_v51  ;;  %v589_v61 = vld [vmem:[#allocation5 + $0x280] sm:$0xff] }
  0xe5   : > { %v594_v55 = vld [vmem:[#allocation5 + $0x2a8] sm:$0xff]  ;;  %v593_v62 = vld [vmem:[#allocation5 + $0x2a0] sm:$0xff]  ;;  %3509 = vmatpush1.bf16.msra.mxu1 %v3508_v58 }
  0xe6   : > { %v718_v56 = vld [vmem:[#allocation5 + $0x688] sm:$0xff]  ;;  %v3510_v60 = vpack.c.bf16 %v594_v55, %v590_v54  ;;  %v717_v63 = vld [vmem:[#allocation5 + $0x680] sm:$0xff]  ;;  %3571 = vmatprep.subr.bf16.mxu0 %v3570_v52  ;;  %v3512_v6 = vpack.c.bf16 %v593_v62, %v589_v61 }
  0xe7   : > { %v722_v57 = vld [vmem:[#allocation5 + $0x6a8] sm:$0xff]  ;;  %v721_v1 = vld [vmem:[#allocation5 + $0x6a0] sm:$0xff]  ;;  %3573 = vmatpush1.bf16.msra.mxu0 %v3572_v59 }
  0xe8   : > { %v3574_v0 = vpack.c.bf16 %v722_v57, %v718_v56  ;;  %v598_v2 = vld [vmem:[#allocation5 + $0x2c8] sm:$0xff]  ;;  %v597_v7 = vld [vmem:[#allocation5 + $0x2c0] sm:$0xff]  ;;  %3511 = vmatprep.subr.bf16.mxu1 %v3510_v60  ;;  %v3576_v8 = vpack.c.bf16 %v721_v1, %v717_v63  ;;  %v516_v1 = vld [vmem:[#allocation5 + $0x38] sm:$0xff] }
  0xe9   : > { %v602_v3 = vld [vmem:[#allocation5 + $0x2e8] sm:$0xff]  ;;  %v601_v10 = vld [vmem:[#allocation5 + $0x2e0] sm:$0xff]  ;;  %3513 = vmatpush1.bf16.msra.mxu1 %v3512_v6  ;;  %v515_v6 = vld [vmem:[#allocation5 + $0x30] sm:$0xff] }
  0xea   : > { %v726_v4 = vld [vmem:[#allocation5 + $0x6c8] sm:$0xff]  ;;  %v3514_v9 = vpack.c.bf16 %v602_v3, %v598_v2  ;;  %v725_v11 = vld [vmem:[#allocation5 + $0x6c0] sm:$0xff]  ;;  %3575 = vmatprep.subr.bf16.mxu0 %v3574_v0  ;;  %v3516_v20 = vpack.c.bf16 %v601_v10, %v597_v7  ;;  %v512_v0 = vld [vmem:[#allocation5 + $0x18] sm:$0xff] }
  0xeb   : > { %v730_v5 = vld [vmem:[#allocation5 + $0x6e8] sm:$0xff]  ;;  %v729_v12 = vld [vmem:[#allocation5 + $0x6e0] sm:$0xff]  ;;  %3577 = vmatpush1.bf16.msra.mxu0 %v3576_v8  ;;  %v520_v7 = vld [vmem:[#allocation5 + $0x58] sm:$0xff] }
  0xec   : > { %v3578_v13 = vpack.c.bf16 %v730_v5, %v726_v4  ;;  %v606_v14 = vld [vmem:[#allocation5 + $0x308] sm:$0xff]  ;;  %3515 = vmatprep.subr.bf16.mxu1 %v3514_v9  ;;  %v3580_v21 = vpack.c.bf16 %v729_v12, %v725_v11  ;;  %v605_v23 = vld [vmem:[#allocation5 + $0x300] sm:$0xff]  ;;  %v3662_v4 = vpack.c.bf16 %v516_v1, %v512_v0  ;;  %v511_v5 = vld [vmem:[#allocation5 + $0x10] sm:$0xff] }
  0xed   : > { %v610_v15 = vld [vmem:[#allocation5 + $0x328] sm:$0xff]  ;;  %v609_v24 = vld [vmem:[#allocation5 + $0x320] sm:$0xff]  ;;  %3517 = vmatpush1.bf16.msra.mxu1 %v3516_v20  ;;  %v524_v8 = vld [vmem:[#allocation5 + $0x78] sm:$0xff]  ;;  %v3664_v10 = vpack.c.bf16 %v515_v6, %v511_v5 }
  0xee   : > { %v318_v16 = vld [vmem:[%s5195_s13 + $0x8] sm:$0xff]  ;;  %v3518_v22 = vpack.c.bf16 %v610_v15, %v606_v14  ;;  %v733_v25 = vld [vmem:[#allocation5 + $0x700] sm:$0xff]  ;;  %3579 = vmatprep.subr.bf16.mxu0 %v3578_v13  ;;  %v3520_v32 = vpack.c.bf16 %v609_v24, %v605_v23  ;;  %v319_v11 = vld [vmem:[%s5195_s13 + $0x10] sm:$0xff]  ;;  %v3666_v14 = vpack.c.bf16 %v524_v8, %v520_v7 }
  0xef   : > { %v734_v17 = vld [vmem:[#allocation5 + $0x708] sm:$0xff]  ;;  %979 = vmatprep.mubr.f32.mxu1 %v318_v16  ;;  %v737_v27 = vld [vmem:[#allocation5 + $0x720] sm:$0xff]  ;;  %3581 = vmatpush1.bf16.msra.mxu0 %v3580_v21  ;;  %v324_v12 = vld [vmem:[%s5195_s13 + $0x38] sm:$0xff] }
  0xf0   : > { %v738_v18 = vld [vmem:[#allocation5 + $0x728] sm:$0xff]  ;;  %3519 = vmatprep.subr.bf16.mxu1 %v3518_v22  ;;  %v3584_v33 = vpack.c.bf16 %v737_v27, %v733_v25  ;;  %v613_v35 = vld [vmem:[#allocation5 + $0x340] sm:$0xff]  ;;  %v519_v15 = vld [vmem:[#allocation5 + $0x50] sm:$0xff] }
  0xf1   : > { %v3582_v26 = vpack.c.bf16 %v738_v18, %v734_v17  ;;  %v614_v28 = vld [vmem:[#allocation5 + $0x348] sm:$0xff]  ;;  %v617_v36 = vld [vmem:[#allocation5 + $0x360] sm:$0xff]  ;;  %3521 = vmatpush1.bf16.msra.mxu1 %v3520_v32  ;;  %v523_v16 = vld [vmem:[#allocation5 + $0x70] sm:$0xff] }
  0xf2   : > { %v618_v29 = vld [vmem:[#allocation5 + $0x368] sm:$0xff]  ;;  %v741_v37 = vld [vmem:[#allocation5 + $0x740] sm:$0xff]  ;;  %v3524_v44 = vpack.c.bf16 %v617_v36, %v613_v35  ;;  %v528_v17 = vld [vmem:[#allocation5 + $0x98] sm:$0xff]  ;;  %v3668_v22 = vpack.c.bf16 %v523_v16, %v519_v15 }
  0xf3   : > { %v742_v30 = vld [vmem:[#allocation5 + $0x748] sm:$0xff]  ;;  %v3522_v34 = vpack.c.bf16 %v618_v29, %v614_v28  ;;  %3583 = vmatprep.subr.bf16.mxu0 %v3582_v26  ;;  %v745_v39 = vld [vmem:[#allocation5 + $0x760] sm:$0xff]  ;;  %v532_v18 = vld [vmem:[#allocation5 + $0xb8] sm:$0xff] }
  0xf4   : > { %v746_v31 = vld [vmem:[#allocation5 + $0x768] sm:$0xff]  ;;  %3585 = vmatpush1.bf16.msra.mxu0 %v3584_v33  ;;  %v3588_v45 = vpack.c.bf16 %v745_v39, %v741_v37  ;;  %v621_v47 = vld [vmem:[#allocation5 + $0x380] sm:$0xff]  ;;  %v332_v23 = vld [vmem:[%s5195_s13 + $0x78] sm:$0xff]  ;;  %v3670_v24 = vpack.c.bf16 %v532_v18, %v528_v17 }
  0xf5   : > { %v3586_v38 = vpack.c.bf16 %v746_v31, %v742_v30  ;;  %v622_v40 = vld [vmem:[#allocation5 + $0x388] sm:$0xff]  ;;  %3523 = vmatprep.subr.bf16.mxu1 %v3522_v34  ;;  %v625_v48 = vld [vmem:[#allocation5 + $0x3a0] sm:$0xff]  ;;  %v527_v25 = vld [vmem:[#allocation5 + $0x90] sm:$0xff] }
  0xf6   : > { %v626_v41 = vld [vmem:[#allocation5 + $0x3a8] sm:$0xff]  ;;  %v749_v49 = vld [vmem:[#allocation5 + $0x780] sm:$0xff]  ;;  %3525 = vmatpush1.bf16.msra.mxu1 %v3524_v44  ;;  %v3528_v56 = vpack.c.bf16 %v625_v48, %v621_v47  ;;  %v531_v26 = vld [vmem:[#allocation5 + $0xb0] sm:$0xff] }
  0xf7   : > { %v750_v42 = vld [vmem:[#allocation5 + $0x788] sm:$0xff]  ;;  %v3526_v46 = vpack.c.bf16 %v626_v41, %v622_v40  ;;  %3587 = vmatprep.subr.bf16.mxu0 %v3586_v38  ;;  %v753_v51 = vld [vmem:[#allocation5 + $0x7a0] sm:$0xff]  ;;  %v536_v27 = vld [vmem:[#allocation5 + $0xd8] sm:$0xff]  ;;  %v3672_v33 = vpack.c.bf16 %v531_v26, %v527_v25 }
  0xf8   : > { %v754_v43 = vld [vmem:[#allocation5 + $0x7a8] sm:$0xff]  ;;  %3589 = vmatpush1.bf16.msra.mxu0 %v3588_v45  ;;  %v3592_v57 = vpack.c.bf16 %v753_v51, %v749_v49  ;;  %v629_v59 = vld [vmem:[#allocation5 + $0x3c0] sm:$0xff]  ;;  %v540_v28 = vld [vmem:[#allocation5 + $0xf8] sm:$0xff] }
  0xf9   : > { %v3590_v50 = vpack.c.bf16 %v754_v43, %v750_v42  ;;  %v630_v52 = vld [vmem:[#allocation5 + $0x3c8] sm:$0xff]  ;;  %3527 = vmatprep.subr.bf16.mxu1 %v3526_v46  ;;  %v633_v60 = vld [vmem:[#allocation5 + $0x3e0] sm:$0xff]  ;;  %v331_v30 = vld [vmem:[%s5195_s13 + $0x70] sm:$0xff]  ;;  %v3674_v35 = vpack.c.bf16 %v540_v28, %v536_v27 }
  0xfa   : > { %v634_v53 = vld [vmem:[#allocation5 + $0x3e8] sm:$0xff]  ;;  %v757_v61 = vld [vmem:[#allocation5 + $0x7c0] sm:$0xff]  ;;  %3529 = vmatpush1.bf16.msra.mxu1 %v3528_v56  ;;  %v3532_v2 = vpack.c.bf16 %v633_v60, %v629_v59  ;;  %v336_v31 = vld [vmem:[%s5195_s13 + $0x98] sm:$0xff] }
  0xfb   : > { %v758_v54 = vld [vmem:[#allocation5 + $0x7c8] sm:$0xff]  ;;  %v3530_v58 = vpack.c.bf16 %v634_v53, %v630_v52  ;;  %3591 = vmatprep.subr.bf16.mxu0 %v3590_v50  ;;  %v761_v63 = vld [vmem:[#allocation5 + $0x7e0] sm:$0xff]  ;;  %v335_v34 = vld [vmem:[%s5195_s13 + $0x90] sm:$0xff] }
  0xfc   : > { %v762_v55 = vld [vmem:[#allocation5 + $0x7e8] sm:$0xff]  ;;  %3593 = vmatpush1.bf16.msra.mxu0 %v3592_v57  ;;  %v3596_v3 = vpack.c.bf16 %v761_v63, %v757_v61  ;;  %v317_v9 = vld [vmem:[%s5195_s13] sm:$0xff]  ;;  %v535_v36 = vld [vmem:[#allocation5 + $0xd0] sm:$0xff] }
  0xfd   : > { %v3594_v62 = vpack.c.bf16 %v762_v55, %v758_v54  ;;  %3531 = vmatprep.subr.bf16.mxu1 %v3530_v58  ;;  %v326_v13 = vld [vmem:[%s5195_s13 + $0x48] sm:$0xff]  ;;  %v325_v20 = vld [vmem:[%s5195_s13 + $0x40] sm:$0xff]  ;;  %v539_v37 = vld [vmem:[#allocation5 + $0xf0] sm:$0xff] }
  0xfe   : > { %3533 = vmatpush1.bf16.msra.mxu1 %v3532_v2  ;;  %v330_v21 = vld [vmem:[%s5195_s13 + $0x68] sm:$0xff]  ;;  %v329_v29 = vld [vmem:[%s5195_s13 + $0x60] sm:$0xff]  ;;  %v544_v39 = vld [vmem:[#allocation5 + $0x118] sm:$0xff]  ;;  %v3676_v45 = vpack.c.bf16 %v539_v37, %v535_v36 }
  0xff   : > { %3595 = vmatprep.subr.bf16.mxu0 %v3594_v62  ;;  %3663 = vmatprep.subr.bf16.mxu1 %v3662_v4  ;;  %v338_v32 = vld [vmem:[%s5195_s13 + $0xa8] sm:$0xff]  ;;  %v337_v38 = vld [vmem:[%s5195_s13 + $0xa0] sm:$0xff]  ;;  %v548_v40 = vld [vmem:[#allocation5 + $0x138] sm:$0xff] }
 0x100   : > { %3597 = vmatpush1.bf16.msra.mxu0 %v3596_v3  ;;  %v342_v41 = vld [vmem:[%s5195_s13 + $0xc8] sm:$0xff]  ;;  %v344_v44 = vld [vmem:[%s5195_s13 + $0xd8] sm:$0xff]  ;;  %v765_v47 = vld [vmem:[#allocation5 + $0x800] sm:$0xff]  ;;  %v3678_v50 = vpack.c.bf16 %v548_v40, %v544_v39 }
 0x101   : > { %980 = vmatmul.mubr.f32.vlgmr.msra.gmra.mrb[0].mxu1 %v317_v9  ;;  %v766_v42 = vld [vmem:[#allocation5 + $0x808] sm:$0xff]  ;;  %v769_v48 = vld [vmem:[#allocation5 + $0x820] sm:$0xff]  ;;  %v543_v51 = vld [vmem:[#allocation5 + $0x110] sm:$0xff] }
 0x102   : > { %3665 = vmatpush1.bf16.msra.mxu1 %v3664_v10  ;;  %985 = vmatprep.mubr.f32.mxu1 %v324_v12  ;;  %v770_v43 = vld [vmem:[#allocation5 + $0x828] sm:$0xff]  ;;  %v341_v49 = vld [vmem:[%s5195_s13 + $0xc0] sm:$0xff]  ;;  %v547_v52 = vld [vmem:[#allocation5 + $0x130] sm:$0xff]  ;;  %v3600_v53 = vpack.c.bf16 %v769_v48, %v765_v47 }
 0x103   : > { %1237 = vmatmul.mubr.f32.vlgmr.msra.gmra.mrb[0].mxu0 %v319_v11  ;;  %3667 = vmatprep.subr.bf16.mxu1 %v3666_v14  ;;  %v3598_v46 = vpack.c.bf16 %v770_v43, %v766_v42  ;;  %v343_v54 = vld [vmem:[%s5195_s13 + $0xd0] sm:$0xff]  ;;  %v552_v55 = vld [vmem:[#allocation5 + $0x158] sm:$0xff]  ;;  %v774_v57 = vld [vmem:[#allocation5 + $0x848] sm:$0xff]  ;;  %v3680_v62 = vpack.c.bf16 %v547_v52, %v543_v51 }
 0x104   : > { %1242 = vmatprep.mubr.f32.mxu0 %v326_v13  ;;  %v556_v56 = vld [vmem:[#allocation5 + $0x178] sm:$0xff]  ;;  %v778_v58 = vld [vmem:[#allocation5 + $0x868] sm:$0xff]  ;;  %v773_v59 = vld [vmem:[#allocation5 + $0x840] sm:$0xff] }
 0x105   : > { %986 = vmatmul.mubr.f32.gmra.mrb[2].mxu1 %v323_v19  ;;  %3599 = vmatprep.subr.bf16.mxu0 %v3598_v46  ;;  %v5230_v60 = vld [vmem:[%s5195_s13 + $0xf8] sm:$0xff]  ;;  %v350_v61 = vld [vmem:[%s5195_s13 + $0x108] sm:$0xff]  ;;  %v3602_v63 = vpack.c.bf16 %v778_v58, %v774_v57  ;;  %v777_v0 = vld [vmem:[#allocation5 + $0x860] sm:$0xff]  ;;  %v3682_v2 = vpack.c.bf16 %v556_v56, %v552_v55 }
 0x106   : > { %991 = vmatprep.mubr.f32.mxu1 %v330_v21  ;;  %3669 = vmatpush1.bf16.msra.mxu1 %v3668_v22  ;;  %v5234_v1 = vld [vmem:[%s5195_s13 + $0xf0] sm:$0xff]  ;;  %v3604_v5 = vpack.c.bf16 %v777_v0, %v773_v59  ;;  %v782_v6 = vld [vmem:[#allocation5 + $0x888] sm:$0xff]  ;;  %v349_v7 = vld [vmem:[%s5195_s13 + $0x100] sm:$0xff] }
 0x107   : > { %1243 = vmatmul.mubr.f32.gmra.mrb[2].mxu0 %v325_v20  ;;  %3671 = vmatprep.subr.bf16.mxu1 %v3670_v24  ;;  %v551_v3 = vld [vmem:[#allocation5 + $0x150] sm:$0xff]  ;;  %v560_v8 = vld [vmem:[#allocation5 + $0x198] sm:$0xff]  ;;  %v786_v10 = vld [vmem:[#allocation5 + $0x8a8] sm:$0xff] }
 0x108   : > { %1248 = vmatprep.mubr.f32.mxu0 %v332_v23  ;;  %v555_v4 = vld [vmem:[#allocation5 + $0x170] sm:$0xff]  ;;  %3601 = vmatpush1.bf16.msra.mxu0 %v3600_v53  ;;  %v564_v9 = vld [vmem:[#allocation5 + $0x1b8] sm:$0xff]  ;;  %v5239_v11 = vld [vmem:[%s5195_s13 + $0x128] sm:$0xff]  ;;  %v3606_v12 = vpack.c.bf16 %v786_v10, %v782_v6 }
 0x109   : > { %992 = vmatmul.mubr.f32.gmra.mrb[4].mxu1 %v329_v29  ;;  %3603 = vmatprep.subr.bf16.mxu0 %v3602_v63  ;;  %v781_v13 = vld [vmem:[#allocation5 + $0x880] sm:$0xff]  ;;  %v356_v15 = vld [vmem:[%s5195_s13 + $0x138] sm:$0xff]  ;;  %v3684_v16 = vpack.c.bf16 %v555_v4, %v551_v3  ;;  %v559_v17 = vld [vmem:[#allocation5 + $0x190] sm:$0xff]  ;;  %v3686_v19 = vpack.c.bf16 %v564_v9, %v560_v8 }
 0x10a   : > { %997 = vmatprep.mubr.f32.mxu1 %v336_v31  ;;  %3673 = vmatpush1.bf16.msra.mxu1 %v3672_v33  ;;  %v785_v14 = vld [vmem:[#allocation5 + $0x8a0] sm:$0xff]  ;;  %v563_v18 = vld [vmem:[#allocation5 + $0x1b0] sm:$0xff]  ;;  %v568_v20 = vld [vmem:[#allocation5 + $0x1d8] sm:$0xff] }
 0x10b   : > { %1249 = vmatmul.mubr.f32.gmra.mrb[4].mxu0 %v331_v30  ;;  %3675 = vmatprep.subr.bf16.mxu1 %v3674_v35  ;;  %v572_v21 = vld [vmem:[#allocation5 + $0x1f8] sm:$0xff]  ;;  %v3608_v22 = vpack.c.bf16 %v785_v14, %v781_v13  ;;  %v790_v23 = vld [vmem:[#allocation5 + $0x8c8] sm:$0xff]  ;;  %v789_v25 = vld [vmem:[#allocation5 + $0x8c0] sm:$0xff] }
 0x10c   : > { %1254 = vmatprep.mubr.f32.mxu0 %v338_v32  ;;  %3605 = vmatpush1.bf16.msra.mxu0 %v3604_v5  ;;  %v794_v24 = vld [vmem:[#allocation5 + $0x8e8] sm:$0xff]  ;;  %v793_v26 = vld [vmem:[#allocation5 + $0x8e0] sm:$0xff]  ;;  %v355_v28 = vld [vmem:[%s5195_s13 + $0x130] sm:$0xff]  ;;  %v3688_v32 = vpack.c.bf16 %v563_v18, %v559_v17  ;;  %v3690_v35 = vpack.c.bf16 %v572_v21, %v568_v20 }
 0x10d   : > { %998 = vmatmul.mubr.f32.gmra.mrb[6].mxu1 %v335_v34  ;;  %3607 = vmatprep.subr.bf16.mxu0 %v3606_v12  ;;  %v5245_v27 = vld [vmem:[%s5195_s13 + $0x120] sm:$0xff]  ;;  %v5249_v29 = vld [vmem:[%s5195_s13 + $0x158] sm:$0xff]  ;;  %v3610_v30 = vpack.c.bf16 %v794_v24, %v790_v23  ;;  %v362_v31 = vld [vmem:[%s5195_s13 + $0x168] sm:$0xff]  ;;  %v3612_v39 = vpack.c.bf16 %v793_v26, %v789_v25 }
 0x10e   : > { %1003 = vmatprep.mubr.f32.mxu1 %v342_v41  ;;  %3677 = vmatpush1.bf16.msra.mxu1 %v3676_v45  ;;  %v798_v33 = vld [vmem:[#allocation5 + $0x908] sm:$0xff]  ;;  %v567_v36 = vld [vmem:[#allocation5 + $0x1d0] sm:$0xff]  ;;  %v580_v40 = vld [vmem:[#allocation5 + $0x238] sm:$0xff] }
 0x10f   : > { %1255 = vmatmul.mubr.f32.gmra.mrb[6].mxu0 %v337_v38  ;;  %3679 = vmatprep.subr.bf16.mxu1 %v3678_v50  ;;  %v802_v34 = vld [vmem:[#allocation5 + $0x928] sm:$0xff]  ;;  %v571_v37 = vld [vmem:[#allocation5 + $0x1f0] sm:$0xff]  ;;  %v576_v38 = vld [vmem:[#allocation5 + $0x218] sm:$0xff] }
 0x110   : > { %1260 = vmatprep.mubr.f32.mxu0 %v344_v44  ;;  %3609 = vmatpush1.bf16.msra.mxu0 %v3608_v22  ;;  %v3614_v41 = vpack.c.bf16 %v802_v34, %v798_v33  ;;  %v797_v42 = vld [vmem:[#allocation5 + $0x900] sm:$0xff]  ;;  %v5255_v44 = vld [vmem:[%s5195_s13 + $0x150] sm:$0xff]  ;;  %v5259_v46 = vld [vmem:[%s5195_s13 + $0x188] sm:$0xff]  ;;  %v3692_v48 = vpack.c.bf16 %v571_v37, %v567_v36  ;;  %v3694_v51 = vpack.c.bf16 %v580_v40, %v576_v38 }
 0x111   : > { %1004 = vmatmul.mubr.f32.gmra.mrb[8].mxu1 %v341_v49  ;;  %3611 = vmatprep.subr.bf16.mxu0 %v3610_v30  ;;  %v801_v43 = vld [vmem:[#allocation5 + $0x920] sm:$0xff]  ;;  %v368_v47 = vld [vmem:[%s5195_s13 + $0x198] sm:$0xff]  ;;  %v806_v49 = vld [vmem:[#allocation5 + $0x948] sm:$0xff] }
 0x112   : > { %1009 = vmatprep.mubr.f32.mxu1 %v5230_v60  ;;  %3681 = vmatpush1.bf16.msra.mxu1 %v3680_v62  ;;  %v361_v45 = vld [vmem:[%s5195_s13 + $0x160] sm:$0xff]  ;;  %v810_v50 = vld [vmem:[#allocation5 + $0x968] sm:$0xff]  ;;  %v575_v52 = vld [vmem:[#allocation5 + $0x210] sm:$0xff]  ;;  %v3616_v55 = vpack.c.bf16 %v801_v43, %v797_v42 }
 0x113   : > { %1261 = vmatmul.mubr.f32.gmra.mrb[8].mxu0 %v343_v54  ;;  %3683 = vmatprep.subr.bf16.mxu1 %v3682_v2  ;;  %v579_v53 = vld [vmem:[#allocation5 + $0x230] sm:$0xff]  ;;  %v584_v54 = vld [vmem:[#allocation5 + $0x258] sm:$0xff]  ;;  %v3618_v57 = vpack.c.bf16 %v810_v50, %v806_v49  ;;  %v805_v58 = vld [vmem:[#allocation5 + $0x940] sm:$0xff] }
 0x114   : > { %1266 = vmatprep.mubr.f32.mxu0 %v350_v61  ;;  %3613 = vmatpush1.bf16.msra.mxu0 %v3612_v39  ;;  %v588_v56 = vld [vmem:[#allocation5 + $0x278] sm:$0xff]  ;;  %v809_v59 = vld [vmem:[#allocation5 + $0x960] sm:$0xff]  ;;  %v814_v62 = vld [vmem:[#allocation5 + $0x988] sm:$0xff]  ;;  %v3696_v4 = vpack.c.bf16 %v579_v53, %v575_v52 }
 0x115   : > { %1010 = vmatmul.mubr.f32.gmra.mrb[10].mxu1 %v5234_v1  ;;  %3615 = vmatprep.subr.bf16.mxu0 %v3614_v41  ;;  %v5265_v61 = vld [vmem:[%s5195_s13 + $0x180] sm:$0xff]  ;;  %v818_v63 = vld [vmem:[#allocation5 + $0x9a8] sm:$0xff]  ;;  %v367_v0 = vld [vmem:[%s5195_s13 + $0x190] sm:$0xff]  ;;  %v3698_v5 = vpack.c.bf16 %v588_v56, %v584_v54  ;;  %v3620_v9 = vpack.c.bf16 %v809_v59, %v805_v58 }
 0x116   : > { %1015 = vmatprep.mubr.f32.mxu1 %v5239_v11  ;;  %3685 = vmatpush1.bf16.msra.mxu1 %v3684_v16  ;;  %v5269_v2 = vld [vmem:[%s5195_s13 + $0x1b8] sm:$0xff]  ;;  %v374_v3 = vld [vmem:[%s5195_s13 + $0x1c8] sm:$0xff]  ;;  %v583_v6 = vld [vmem:[#allocation5 + $0x250] sm:$0xff]  ;;  %v3622_v12 = vpack.c.bf16 %v818_v63, %v814_v62 }
 0x117   : > { %1267 = vmatmul.mubr.f32.gmra.mrb[10].mxu0 %v349_v7  ;;  %3687 = vmatprep.subr.bf16.mxu1 %v3686_v19  ;;  %v587_v7 = vld [vmem:[#allocation5 + $0x270] sm:$0xff]  ;;  %v592_v8 = vld [vmem:[#allocation5 + $0x298] sm:$0xff]  ;;  %v813_v13 = vld [vmem:[#allocation5 + $0x980] sm:$0xff] }
 0x118   : > { %1272 = vmatprep.mubr.f32.mxu0 %v356_v15  ;;  %3617 = vmatpush1.bf16.msra.mxu0 %v3616_v55  ;;  %v596_v10 = vld [vmem:[#allocation5 + $0x2b8] sm:$0xff]  ;;  %v817_v14 = vld [vmem:[#allocation5 + $0x9a0] sm:$0xff]  ;;  %v5275_v15 = vld [vmem:[%s5195_s13 + $0x1b0] sm:$0xff]  ;;  %v3700_v21 = vpack.c.bf16 %v587_v7, %v583_v6 }
 0x119   : > { %1016 = vmatmul.mubr.f32.gmra.mrb[12].mxu1 %v5245_v27  ;;  %3619 = vmatprep.subr.bf16.mxu0 %v3618_v57  ;;  %v822_v16 = vld [vmem:[#allocation5 + $0x9c8] sm:$0xff]  ;;  %v373_v18 = vld [vmem:[%s5195_s13 + $0x1c0] sm:$0xff]  ;;  %v380_v20 = vld [vmem:[%s5195_s13 + $0x1f8] sm:$0xff]  ;;  %v3702_v22 = vpack.c.bf16 %v596_v10, %v592_v8  ;;  %v3624_v26 = vpack.c.bf16 %v817_v14, %v813_v13 }
 0x11a   : > { %1021 = vmatprep.mubr.f32.mxu1 %v5249_v29  ;;  %3689 = vmatpush1.bf16.msra.mxu1 %v3688_v32  ;;  %v826_v17 = vld [vmem:[#allocation5 + $0x9e8] sm:$0xff]  ;;  %v591_v23 = vld [vmem:[#allocation5 + $0x290] sm:$0xff]  ;;  %v600_v25 = vld [vmem:[#allocation5 + $0x2d8] sm:$0xff] }
 0x11b   : > { %1273 = vmatmul.mubr.f32.gmra.mrb[12].mxu0 %v355_v28  ;;  %3691 = vmatprep.subr.bf16.mxu1 %v3690_v35  ;;  %v5279_v19 = vld [vmem:[%s5195_s13 + $0x1e8] sm:$0xff]  ;;  %v595_v24 = vld [vmem:[#allocation5 + $0x2b0] sm:$0xff]  ;;  %v604_v28 = vld [vmem:[#allocation5 + $0x2f8] sm:$0xff]  ;;  %v3626_v30 = vpack.c.bf16 %v826_v17, %v822_v16 }
 0x11c   : > { %1278 = vmatprep.mubr.f32.mxu0 %v362_v31  ;;  %3621 = vmatpush1.bf16.msra.mxu0 %v3620_v9  ;;  %v821_v31 = vld [vmem:[#allocation5 + $0x9c0] sm:$0xff]  ;;  %v830_v34 = vld [vmem:[#allocation5 + $0xa08] sm:$0xff]  ;;  %v379_v36 = vld [vmem:[%s5195_s13 + $0x1f0] sm:$0xff]  ;;  %v3704_v39 = vpack.c.bf16 %v595_v24, %v591_v23  ;;  %v3706_v40 = vpack.c.bf16 %v604_v28, %v600_v25 }
 0x11d   : > { %1022 = vmatmul.mubr.f32.gmra.mrb[14].mxu1 %v5255_v44  ;;  %3623 = vmatprep.subr.bf16.mxu0 %v3622_v12  ;;  %v825_v32 = vld [vmem:[#allocation5 + $0x9e0] sm:$0xff]  ;;  %v834_v35 = vld [vmem:[#allocation5 + $0xa28] sm:$0xff]  ;;  %v5289_v37 = vld [vmem:[%s5195_s13 + $0x218] sm:$0xff] }
 0x11e   : > { %1027 = vmatprep.mubr.f32.mxu1 %v5259_v46  ;;  %3693 = vmatpush1.bf16.msra.mxu1 %v3692_v48  ;;  %v5285_v33 = vld [vmem:[%s5195_s13 + $0x1e0] sm:$0xff]  ;;  %v386_v38 = vld [vmem:[%s5195_s13 + $0x228] sm:$0xff]  ;;  %v599_v41 = vld [vmem:[#allocation5 + $0x2d0] sm:$0xff]  ;;  %v3628_v43 = vpack.c.bf16 %v825_v32, %v821_v31 }
 0x11f   : > { %1279 = vmatmul.mubr.f32.gmra.mrb[14].mxu0 %v361_v45  ;;  %3695 = vmatprep.subr.bf16.mxu1 %v3694_v51  ;;  %v603_v42 = vld [vmem:[#allocation5 + $0x2f0] sm:$0xff]  ;;  %v608_v45 = vld [vmem:[#allocation5 + $0x318] sm:$0xff]  ;;  %v829_v49 = vld [vmem:[#allocation5 + $0xa00] sm:$0xff] }
 0x120   : > { %1284 = vmatprep.mubr.f32.mxu0 %v368_v47  ;;  %3625 = vmatpush1.bf16.msra.mxu0 %v3624_v26  ;;  %v3630_v47 = vpack.c.bf16 %v834_v35, %v830_v34  ;;  %v612_v48 = vld [vmem:[#allocation5 + $0x338] sm:$0xff]  ;;  %v833_v50 = vld [vmem:[#allocation5 + $0xa20] sm:$0xff]  ;;  %v5295_v51 = vld [vmem:[%s5195_s13 + $0x210] sm:$0xff]  ;;  %v3708_v57 = vpack.c.bf16 %v603_v42, %v599_v41 }
 0x121   : > { %1028 = vmatmul.mubr.f32.gmra.mrb[16].mxu1 %v5265_v61  ;;  %3627 = vmatprep.subr.bf16.mxu0 %v3626_v30  ;;  %v838_v52 = vld [vmem:[#allocation5 + $0xa48] sm:$0xff]  ;;  %v385_v54 = vld [vmem:[%s5195_s13 + $0x220] sm:$0xff]  ;;  %v392_v56 = vld [vmem:[%s5195_s13 + $0x258] sm:$0xff]  ;;  %v3710_v58 = vpack.c.bf16 %v612_v48, %v608_v45  ;;  %v3632_v59 = vpack.c.bf16 %v833_v50, %v829_v49 }
 0x122   : > { %1033 = vmatprep.mubr.f32.mxu1 %v5269_v2  ;;  %3697 = vmatpush1.bf16.msra.mxu1 %v3696_v4  ;;  %v842_v53 = vld [vmem:[#allocation5 + $0xa68] sm:$0xff]  ;;  %v607_v62 = vld [vmem:[#allocation5 + $0x310] sm:$0xff]  ;;  %v841_v4 = vld [vmem:[#allocation5 + $0xa60] sm:$0xff] }
 0x123   : > { %1285 = vmatmul.mubr.f32.gmra.mrb[16].mxu0 %v367_v0  ;;  %3699 = vmatprep.subr.bf16.mxu1 %v3698_v5  ;;  %v5299_v55 = vld [vmem:[%s5195_s13 + $0x248] sm:$0xff]  ;;  %v611_v63 = vld [vmem:[#allocation5 + $0x330] sm:$0xff]  ;;  %v837_v0 = vld [vmem:[#allocation5 + $0xa40] sm:$0xff] }
 0x124   : > { %1290 = vmatprep.mubr.f32.mxu0 %v374_v3  ;;  %3629 = vmatpush1.bf16.msra.mxu0 %v3628_v43  ;;  %v3634_v3 = vpack.c.bf16 %v842_v53, %v838_v52  ;;  %v616_v5 = vld [vmem:[#allocation5 + $0x358] sm:$0xff]  ;;  %v5305_v7 = vld [vmem:[%s5195_s13 + $0x240] sm:$0xff]  ;;  %v846_v8 = vld [vmem:[#allocation5 + $0xa88] sm:$0xff]  ;;  %v3712_v13 = vpack.c.bf16 %v611_v63, %v607_v62  ;;  %v3636_v16 = vpack.c.bf16 %v841_v4, %v837_v0 }
 0x125   : > { %1034 = vmatmul.mubr.f32.gmra.mrb[18].mxu1 %v5275_v15  ;;  %3631 = vmatprep.subr.bf16.mxu0 %v3630_v47  ;;  %v620_v6 = vld [vmem:[#allocation5 + $0x378] sm:$0xff]  ;;  %v850_v9 = vld [vmem:[#allocation5 + $0xaa8] sm:$0xff]  ;;  %v391_v10 = vld [vmem:[%s5195_s13 + $0x250] sm:$0xff] }
 0x126   : > { %1039 = vmatprep.mubr.f32.mxu1 %v5279_v19  ;;  %3701 = vmatpush1.bf16.msra.mxu1 %v3700_v21  ;;  %v5309_v12 = vld [vmem:[%s5195_s13 + $0x278] sm:$0xff]  ;;  %v398_v14 = vld [vmem:[%s5195_s13 + $0x288] sm:$0xff]  ;;  %v3714_v17 = vpack.c.bf16 %v620_v6, %v616_v5  ;;  %v5314_v21 = vld [vmem:[%s5195_s13 + $0x270] sm:$0xff] }
 0x127   : > { %1291 = vmatmul.mubr.f32.gmra.mrb[18].mxu0 %v373_v18  ;;  %3703 = vmatprep.subr.bf16.mxu1 %v3702_v22  ;;  %v615_v18 = vld [vmem:[#allocation5 + $0x350] sm:$0xff]  ;;  %v3638_v22 = vpack.c.bf16 %v850_v9, %v846_v8  ;;  %v845_v23 = vld [vmem:[#allocation5 + $0xa80] sm:$0xff]  ;;  %v854_v25 = vld [vmem:[#allocation5 + $0xac8] sm:$0xff] }
 0x128   : > { %1296 = vmatprep.mubr.f32.mxu0 %v380_v20  ;;  %3633 = vmatpush1.bf16.msra.mxu0 %v3632_v59  ;;  %v619_v20 = vld [vmem:[#allocation5 + $0x370] sm:$0xff]  ;;  %v849_v24 = vld [vmem:[#allocation5 + $0xaa0] sm:$0xff]  ;;  %v858_v26 = vld [vmem:[#allocation5 + $0xae8] sm:$0xff] }
 0x129   : > { %1040 = vmatmul.mubr.f32.gmra.mrb[20].mxu1 %v5285_v33  ;;  %3635 = vmatprep.subr.bf16.mxu0 %v3634_v3  ;;  %v624_v28 = vld [vmem:[#allocation5 + $0x398] sm:$0xff]  ;;  %v397_v30 = vld [vmem:[%s5195_s13 + $0x280] sm:$0xff]  ;;  %v5319_v31 = vld [vmem:[%s5195_s13 + $0x2a8] sm:$0xff]  ;;  %v3716_v32 = vpack.c.bf16 %v619_v20, %v615_v18  ;;  %v3642_v41 = vpack.c.bf16 %v858_v26, %v854_v25 }
 0x12a   : > { %1045 = vmatprep.mubr.f32.mxu1 %v5289_v37  ;;  %3705 = vmatpush1.bf16.msra.mxu1 %v3704_v39  ;;  %v628_v34 = vld [vmem:[#allocation5 + $0x3b8] sm:$0xff]  ;;  %v623_v39 = vld [vmem:[#allocation5 + $0x390] sm:$0xff]  ;;  %v853_v42 = vld [vmem:[#allocation5 + $0xac0] sm:$0xff] }
 0x12b   : > { %1297 = vmatmul.mubr.f32.gmra.mrb[20].mxu0 %v379_v36  ;;  %3707 = vmatprep.subr.bf16.mxu1 %v3706_v40  ;;  %v404_v35 = vld [vmem:[%s5195_s13 + $0x2b8] sm:$0xff]  ;;  %v3640_v36 = vpack.c.bf16 %v849_v24, %v845_v23  ;;  %v627_v40 = vld [vmem:[#allocation5 + $0x3b0] sm:$0xff]  ;;  %v857_v43 = vld [vmem:[#allocation5 + $0xae0] sm:$0xff] }
 0x12c   : > { %1302 = vmatprep.mubr.f32.mxu0 %v386_v38  ;;  %3637 = vmatpush1.bf16.msra.mxu0 %v3636_v16  ;;  %v3718_v38 = vpack.c.bf16 %v628_v34, %v624_v28  ;;  %v5325_v45 = vld [vmem:[%s5195_s13 + $0x2a0] sm:$0xff]  ;;  %v862_v47 = vld [vmem:[#allocation5 + $0xb08] sm:$0xff]  ;;  %v403_v49 = vld [vmem:[%s5195_s13 + $0x2b0] sm:$0xff]  ;;  %v3720_v52 = vpack.c.bf16 %v627_v40, %v623_v39 }
 0x12d   : > { %1046 = vmatmul.mubr.f32.gmra.mrb[22].mxu1 %v5295_v51  ;;  %3639 = vmatprep.subr.bf16.mxu0 %v3638_v22  ;;  %v866_v48 = vld [vmem:[#allocation5 + $0xb28] sm:$0xff]  ;;  %v5329_v50 = vld [vmem:[%s5195_s13 + $0x2d8] sm:$0xff]  ;;  %v865_v59 = vld [vmem:[#allocation5 + $0xb20] sm:$0xff] }
 0x12e   : > { %1051 = vmatprep.mubr.f32.mxu1 %v5299_v55  ;;  %3709 = vmatpush1.bf16.msra.mxu1 %v3708_v57  ;;  %v410_v53 = vld [vmem:[%s5195_s13 + $0x2e8] sm:$0xff]  ;;  %v861_v57 = vld [vmem:[#allocation5 + $0xb00] sm:$0xff]  ;;  %v632_v62 = vld [vmem:[#allocation5 + $0x3d8] sm:$0xff] }
 0x12f   : > { %1303 = vmatmul.mubr.f32.gmra.mrb[22].mxu0 %v385_v54  ;;  %3711 = vmatprep.subr.bf16.mxu1 %v3710_v58  ;;  %v5333_v54 = vld [vmem:[%s5195_s13 + $0x2d0] sm:$0xff]  ;;  %v3646_v58 = vpack.c.bf16 %v866_v48, %v862_v47  ;;  %v636_v63 = vld [vmem:[#allocation5 + $0x3f8] sm:$0xff]  ;;  %v870_v0 = vld [vmem:[#allocation5 + $0xb48] sm:$0xff] }
 0x130   : > { %1308 = vmatprep.mubr.f32.mxu0 %v392_v56  ;;  %3641 = vmatpush1.bf16.msra.mxu0 %v3640_v36  ;;  %v3644_v56 = vpack.c.bf16 %v857_v43, %v853_v42  ;;  %v874_v3 = vld [vmem:[#allocation5 + $0xb68] sm:$0xff]  ;;  %v3722_v4 = vpack.c.bf16 %v636_v63, %v632_v62  ;;  %v631_v5 = vld [vmem:[#allocation5 + $0x3d0] sm:$0xff]  ;;  %v409_v6 = vld [vmem:[%s5195_s13 + $0x2e0] sm:$0xff] }
 0x131   : > { %1052 = vmatmul.mubr.f32.gmra.mrb[24].mxu1 %v5305_v7  ;;  %3643 = vmatprep.subr.bf16.mxu0 %v3642_v41  ;;  %v5339_v8 = vld [vmem:[%s5195_s13 + $0x308] sm:$0xff]  ;;  %v635_v9 = vld [vmem:[#allocation5 + $0x3f0] sm:$0xff]  ;;  %v5344_v16 = vld [vmem:[%s5195_s13 + $0x300] sm:$0xff] }
 0x132   : > { %1057 = vmatprep.mubr.f32.mxu1 %v5309_v12  ;;  %3713 = vmatpush1.bf16.msra.mxu1 %v3712_v13  ;;  %v3648_v13 = vpack.c.bf16 %v865_v59, %v861_v57  ;;  %v869_v18 = vld [vmem:[#allocation5 + $0xb40] sm:$0xff]  ;;  %v878_v22 = vld [vmem:[#allocation5 + $0xb88] sm:$0xff]  ;;  %v640_v24 = vld [vmem:[#allocation5 + $0x418] sm:$0xff] }
 0x133   : > { %1309 = vmatmul.mubr.f32.gmra.mrb[24].mxu0 %v391_v10  ;;  %3715 = vmatprep.subr.bf16.mxu1 %v3714_v17  ;;  %v416_v10 = vld [vmem:[%s5195_s13 + $0x318] sm:$0xff]  ;;  %v3650_v17 = vpack.c.bf16 %v874_v3, %v870_v0  ;;  %v873_v20 = vld [vmem:[#allocation5 + $0xb60] sm:$0xff]  ;;  %v882_v23 = vld [vmem:[#allocation5 + $0xba8] sm:$0xff] }
 0x134   : > { %1314 = vmatprep.mubr.f32.mxu0 %v398_v14  ;;  %3645 = vmatpush1.bf16.msra.mxu0 %v3644_v56  ;;  %v3724_v14 = vpack.c.bf16 %v635_v9, %v631_v5  ;;  %v415_v25 = vld [vmem:[%s5195_s13 + $0x310] sm:$0xff]  ;;  %v5349_v26 = vld [vmem:[%s5195_s13 + $0x338] sm:$0xff]  ;;  %v877_v36 = vld [vmem:[#allocation5 + $0xb80] sm:$0xff] }
 0x135   : > { %1058 = vmatmul.mubr.f32.gmra.mrb[26].mxu1 %v5314_v21  ;;  %3647 = vmatprep.subr.bf16.mxu0 %v3646_v58  ;;  %v644_v28 = vld [vmem:[#allocation5 + $0x438] sm:$0xff]  ;;  %v5355_v39 = vld [vmem:[%s5195_s13 + $0x330] sm:$0xff]  ;;  %v886_v40 = vld [vmem:[#allocation5 + $0xbc8] sm:$0xff] }
 0x136   : > { %1063 = vmatprep.mubr.f32.mxu1 %v5319_v31  ;;  %3717 = vmatpush1.bf16.msra.mxu1 %v3716_v32  ;;  %v3652_v32 = vpack.c.bf16 %v873_v20, %v869_v18  ;;  %v3726_v34 = vpack.c.bf16 %v644_v28, %v640_v24  ;;  %v890_v41 = vld [vmem:[#allocation5 + $0xbe8] sm:$0xff]  ;;  %v421_v42 = vld [vmem:[%s5195_s13 + $0x340] sm:$0xff]  ;;  %v428_v47 = vld [vmem:[%s5195_s13 + $0x378] sm:$0xff] }
 0x137   : > { %1315 = vmatmul.mubr.f32.gmra.mrb[26].mxu0 %v397_v30  ;;  %3719 = vmatprep.subr.bf16.mxu1 %v3718_v38  ;;  %v422_v30 = vld [vmem:[%s5195_s13 + $0x348] sm:$0xff]  ;;  %v881_v38 = vld [vmem:[#allocation5 + $0xba0] sm:$0xff]  ;;  %v427_v57 = vld [vmem:[%s5195_s13 + $0x370] sm:$0xff] }
 0x138   : > { %1320 = vmatprep.mubr.f32.mxu0 %v404_v35  ;;  %3649 = vmatpush1.bf16.msra.mxu0 %v3648_v13  ;;  %v3654_v35 = vpack.c.bf16 %v882_v23, %v878_v22  ;;  %v5359_v43 = vld [vmem:[%s5195_s13 + $0x368] sm:$0xff]  ;;  %v3656_v48 = vpack.c.bf16 %v881_v38, %v877_v36  ;;  %v5365_v56 = vld [vmem:[%s5195_s13 + $0x360] sm:$0xff]  ;;  %v5369_v58 = vld [vmem:[%s5195_s13 + $0x398] sm:$0xff] }
 0x139   : > { %1064 = vmatmul.mubr.f32.gmra.mrb[28].mxu1 %v5325_v45  ;;  %3651 = vmatprep.subr.bf16.mxu0 %v3650_v17  ;;  %v434_v59 = vld [vmem:[%s5195_s13 + $0x3a8] sm:$0xff]  ;;  %v5375_v63 = vld [vmem:[%s5195_s13 + $0x390] sm:$0xff]  ;;  %v433_v0 = vld [vmem:[%s5195_s13 + $0x3a0] sm:$0xff] }
 0x13a   : > { %1069 = vmatprep.mubr.f32.mxu1 %v5329_v50  ;;  %3721 = vmatpush1.bf16.msra.mxu1 %v3720_v52  ;;  %v885_v52 = vld [vmem:[#allocation5 + $0xbc0] sm:$0xff]  ;;  %v5379_v3 = vld [vmem:[%s5195_s13 + $0x3c8] sm:$0xff]  ;;  %v5389_v9 = vld [vmem:[%s5195_s13 + $0x3f8] sm:$0xff] }
 0x13b   : > { %1321 = vmatmul.mubr.f32.gmra.mrb[28].mxu0 %v403_v49  ;;  %3723 = vmatprep.subr.bf16.mxu1 %v3722_v4  ;;  %v3658_v49 = vpack.c.bf16 %v890_v41, %v886_v40  ;;  %v440_v4 = vld [vmem:[%s5195_s13 + $0x3d8] sm:$0xff]  ;;  %v5385_v5 = vld [vmem:[%s5195_s13 + $0x3c0] sm:$0xff]  ;;  %v5395_v13 = vld [vmem:[%s5195_s13 + $0x3f0] sm:$0xff] }
 0x13c   : > { %1326 = vmatprep.mubr.f32.mxu0 %v410_v53  ;;  %3653 = vmatpush1.bf16.msra.mxu0 %v3652_v32  ;;  %v889_v53 = vld [vmem:[#allocation5 + $0xbe0] sm:$0xff]  ;;  %v5399_v17 = vld [vmem:[%s5195_s13 + $0x428] sm:$0xff]  ;;  %v452_v18 = vld [vmem:[%s5195_s13 + $0x438] sm:$0xff] }
 0x13d   : > { %1070 = vmatmul.mubr.f32.gmra.mrb[30].mxu1 %v5333_v54  ;;  %3655 = vmatprep.subr.bf16.mxu0 %v3654_v35  ;;  %v3660_v62 = vpack.c.bf16 %v889_v53, %v885_v52  ;;  %v5405_v20 = vld [vmem:[%s5195_s13 + $0x420] sm:$0xff]  ;;  %v451_v22 = vld [vmem:[%s5195_s13 + $0x430] sm:$0xff]  ;;  %v5409_v23 = vld [vmem:[%s5195_s13 + $0x458] sm:$0xff] }
 0x13e   : > { %1075 = vmatprep.mubr.f32.mxu1 %v5339_v8  ;;  %3725 = vmatpush1.bf16.msra.mxu1 %v3724_v14  ;;  %v445_v14 = vld [vmem:[%s5195_s13 + $0x400] sm:$0xff]  ;;  %v458_v24 = vld [vmem:[%s5195_s13 + $0x468] sm:$0xff]  ;;  %v464_v32 = vld [vmem:[%s5195_s13 + $0x498] sm:$0xff] }
 0x13f   : > { %1327 = vmatmul.mubr.f32.gmra.mrb[30].mxu0 %v409_v6  ;;  %3727 = vmatprep.subr.bf16.mxu1 %v3726_v34  ;;  %v439_v6 = vld [vmem:[%s5195_s13 + $0x3d0] sm:$0xff]  ;;  %v457_v28 = vld [vmem:[%s5195_s13 + $0x460] sm:$0xff]  ;;  %v5429_v36 = vld [vmem:[%s5195_s13 + $0x4b8] sm:$0xff] }
 0x140   : > { %1332 = vmatprep.mubr.f32.mxu0 %v416_v10  ;;  %3657 = vmatpush1.bf16.msra.mxu0 %v3656_v48  ;;  %v446_v10 = vld [vmem:[%s5195_s13 + $0x408] sm:$0xff]  ;;  %v5425_v34 = vld [vmem:[%s5195_s13 + $0x480] sm:$0xff]  ;;  %v463_v35 = vld [vmem:[%s5195_s13 + $0x490] sm:$0xff] }
 0x141   : > { %1076 = vmatmul.mubr.f32.gmra.mrb[32].mxu1 %v5344_v16  ;;  %3659 = vmatprep.subr.bf16.mxu0 %v3658_v49  ;;  %v470_v38 = vld [vmem:[%s5195_s13 + $0x4c8] sm:$0xff]  ;;  %v5435_v40 = vld [vmem:[%s5195_s13 + $0x4b0] sm:$0xff]  ;;  %v469_v41 = vld [vmem:[%s5195_s13 + $0x4c0] sm:$0xff] }
 0x142   : > { %1081 = vmatprep.mubr.f32.mxu1 %v5349_v26  ;;  %v5445_v48 = vld [vmem:[%s5195_s13 + $0x4e0] sm:$0xff]  ;;  %v475_v49 = vld [vmem:[%s5195_s13 + $0x4f0] sm:$0xff]  ;;  %v5449_v52 = vld [vmem:[%s5195_s13 + $0x518] sm:$0xff] }
 0x143   : > { %1333 = vmatmul.mubr.f32.gmra.mrb[32].mxu0 %v415_v25  ;;  %v5415_v25 = vld [vmem:[%s5195_s13 + $0x450] sm:$0xff]  ;;  %v482_v53 = vld [vmem:[%s5195_s13 + $0x528] sm:$0xff] }
 0x144   : > { %1338 = vmatprep.mubr.f32.mxu0 %v422_v30  ;;  %3661 = vmatpush1.bf16.msra.mxu0 %v3660_v62  ;;  %v5419_v30 = vld [vmem:[%s5195_s13 + $0x488] sm:$0xff] }
 0x145   : > { %1082 = vmatmul.mubr.f32.gmra.mrb[34].mxu1 %v5355_v39  ;;  %v5459_v62 = vld [vmem:[%s5195_s13 + $0x548] sm:$0xff] }
 0x146   : > { %1087 = vmatprep.mubr.f32.mxu1 %v5359_v43  ;;  %6340 = vst [vmem:[#allocation20_spill] sm:$0xff] %v5459_v62 }
 0x147   : > { %1339 = vmatmul.mubr.f32.gmra.mrb[34].mxu0 %v421_v42  ;;  %v5439_v42 = vld [vmem:[%s5195_s13 + $0x4e8] sm:$0xff] }
 0x148   : > { %1344 = vmatprep.mubr.f32.mxu0 %v428_v47  ;;  %v476_v47 = vld [vmem:[%s5195_s13 + $0x4f8] sm:$0xff] }
 0x149   : > { %1088 = vmatmul.mubr.f32.gmra.mrb[36].mxu1 %v5365_v56 }
 0x14a   : > { %1093 = vmatprep.mubr.f32.mxu1 %v5369_v58 }
 0x14b   : > { %1345 = vmatmul.mubr.f32.gmra.mrb[36].mxu0 %v427_v57  ;;  %v5455_v57 = vld [vmem:[%s5195_s13 + $0x510] sm:$0xff] }
 0x14c   : > { %1350 = vmatprep.mubr.f32.mxu0 %v434_v59  ;;  %v481_v59 = vld [vmem:[%s5195_s13 + $0x520] sm:$0xff] }
 0x14d   : > { %1094 = vmatmul.mubr.f32.gmra.mrb[38].mxu1 %v5375_v63 }
 0x14e   : > { %1099 = vmatprep.mubr.f32.mxu1 %v5379_v3 }
 0x14f   : > { %1351 = vmatmul.mubr.f32.gmra.mrb[38].mxu0 %v433_v0  ;;  %v488_v0 = vld [vmem:[%s5195_s13 + $0x558] sm:$0xff] }
 0x150   : > { %1356 = vmatprep.mubr.f32.mxu0 %v440_v4  ;;  %v5465_v4 = vld [vmem:[%s5195_s13 + $0x540] sm:$0xff] }
 0x151   : > { %1100 = vmatmul.mubr.f32.gmra.mrb[40].mxu1 %v5385_v5  ;;  %6341 = vst [vmem:[#allocation21_spill] sm:$0xff] %v5465_v4 }
 0x152   : > { %1105 = vmatprep.mubr.f32.mxu1 %v5389_v9 }
 0x153   : > { %1357 = vmatmul.mubr.f32.gmra.mrb[40].mxu0 %v439_v6  ;;  %v487_v6 = vld [vmem:[%s5195_s13 + $0x550] sm:$0xff] }
 0x154   : > { %1362 = vmatprep.mubr.f32.mxu0 %v446_v10  ;;  %v5469_v10 = vld [vmem:[%s5195_s13 + $0x578] sm:$0xff] }
 0x155   : > { %1106 = vmatmul.mubr.f32.gmra.mrb[42].mxu1 %v5395_v13  ;;  %6342 = vst [vmem:[#allocation22_spill] sm:$0xff] %v5469_v10 }
 0x156   : > { %1111 = vmatprep.mubr.f32.mxu1 %v5399_v17 }
 0x157   : > { %1363 = vmatmul.mubr.f32.gmra.mrb[42].mxu0 %v445_v14  ;;  %v494_v14 = vld [vmem:[%s5195_s13 + $0x588] sm:$0xff] }
 0x158   : > { %1368 = vmatprep.mubr.f32.mxu0 %v452_v18  ;;  %v5475_v18 = vld [vmem:[%s5195_s13 + $0x570] sm:$0xff] }
 0x159   : > { %1112 = vmatmul.mubr.f32.gmra.mrb[44].mxu1 %v5405_v20  ;;  %6343 = vst [vmem:[#allocation23_spill] sm:$0xff] %v5475_v18 }
 0x15a   : > { %1117 = vmatprep.mubr.f32.mxu1 %v5409_v23 }
 0x15b   : > { %1369 = vmatmul.mubr.f32.gmra.mrb[44].mxu0 %v451_v22  ;;  %v493_v22 = vld [vmem:[%s5195_s13 + $0x580] sm:$0xff] }
 0x15c   : > { %1374 = vmatprep.mubr.f32.mxu0 %v458_v24  ;;  %v5479_v24 = vld [vmem:[%s5195_s13 + $0x5a8] sm:$0xff] }
 0x15d   : > { %1118 = vmatmul.mubr.f32.gmra.mrb[46].mxu1 %v5415_v25  ;;  %6344 = vst [vmem:[#allocation24_spill] sm:$0xff] %v5479_v24 }
 0x15e   : > { %1123 = vmatprep.mubr.f32.mxu1 %v5419_v30 }
 0x15f   : > { %1375 = vmatmul.mubr.f32.gmra.mrb[46].mxu0 %v457_v28  ;;  %v500_v28 = vld [vmem:[%s5195_s13 + $0x5b8] sm:$0xff] }
 0x160   : > { %1380 = vmatprep.mubr.f32.mxu0 %v464_v32  ;;  %v5485_v32 = vld [vmem:[%s5195_s13 + $0x5a0] sm:$0xff] }
 0x161   : > { %1124 = vmatmul.mubr.f32.gmra.mrb[48].mxu1 %v5425_v34  ;;  %6345 = vst [vmem:[#allocation25_spill] sm:$0xff] %v5485_v32 }
 0x162   : > { %1129 = vmatprep.mubr.f32.mxu1 %v5429_v36 }
 0x163   : > { %1381 = vmatmul.mubr.f32.gmra.mrb[48].mxu0 %v463_v35  ;;  %v499_v35 = vld [vmem:[%s5195_s13 + $0x5b0] sm:$0xff] }
 0x164   : > { %1386 = vmatprep.mubr.f32.mxu0 %v470_v38  ;;  %v5489_v38 = vld [vmem:[%s5195_s13 + $0x5d8] sm:$0xff] }
 0x165   : > { %1130 = vmatmul.mubr.f32.gmra.mrb[50].mxu1 %v5435_v40  ;;  %6346 = vst [vmem:[#allocation26_spill] sm:$0xff] %v5489_v38 }
 0x166   : > { %1135 = vmatprep.mubr.f32.mxu1 %v5439_v42 }
 0x167   : > { %1387 = vmatmul.mubr.f32.gmra.mrb[50].mxu0 %v469_v41  ;;  %v506_v41 = vld [vmem:[%s5195_s13 + $0x5e8] sm:$0xff] }
 0x168   : > { %1392 = vmatprep.mubr.f32.mxu0 %v476_v47  ;;  %v5495_v47 = vld [vmem:[%s5195_s13 + $0x5d0] sm:$0xff] }
 0x169   : > { %1136 = vmatmul.mubr.f32.gmra.mrb[52].mxu1 %v5445_v48  ;;  %6347 = vst [vmem:[#allocation27_spill] sm:$0xff] %v5495_v47 }
 0x16a   : > { %1141 = vmatprep.mubr.f32.mxu1 %v5449_v52 }
 0x16b   : > { %1393 = vmatmul.mubr.f32.gmra.mrb[52].mxu0 %v475_v49  ;;  %v505_v49 = vld [vmem:[%s5195_s13 + $0x5e0] sm:$0xff] }
 0x16c   : > { %1398 = vmatprep.mubr.f32.mxu0 %v482_v53  ;;  %v639_v53 = vld [vmem:[#allocation5 + $0x410] sm:$0xff] }
 0x16d   : > { %1142 = vmatmul.mubr.f32.gmra.mrb[54].mxu1 %v5455_v57 }
 0x16e   : > { %1147 = vmatprep.mubr.f32.mxu1 %v5459_v62  ;;  %v668_v62 = vld [vmem:[#allocation5 + $0x4f8] sm:$0xff] }
 0x16f   : > { %1399 = vmatmul.mubr.f32.gmra.mrb[54].mxu0 %v481_v59  ;;  %v643_v59 = vld [vmem:[#allocation5 + $0x430] sm:$0xff] }
 0x170   : > { %1404 = vmatprep.mubr.f32.mxu0 %v488_v0  ;;  %v322_v0 = vld [vmem:[%s5195_s13 + $0x28] sm:$0xff] }
 0x171   : > { %1148 = vmatmul.mubr.f32.gmra.mrb[56].mxu1 %v5465_v4  ;;  %v4588_v4 = vld [vmem:[%s5195_s13 + $0x30] sm:$0xff] }
 0x172   : > { %1153 = vmatprep.mubr.f32.mxu1 %v5469_v10  ;;  %v656_v10 = vld [vmem:[#allocation5 + $0x498] sm:$0xff] }
 0x173   : > { %1405 = vmatmul.mubr.f32.gmra.mrb[56].mxu0 %v487_v6  ;;  %v648_v6 = vld [vmem:[#allocation5 + $0x458] sm:$0xff] }
 0x174   : > { %1410 = vmatprep.mubr.f32.mxu0 %v494_v14  ;;  %v652_v14 = vld [vmem:[#allocation5 + $0x478] sm:$0xff] }
 0x175   : > { %1154 = vmatmul.mubr.f32.gmra.mrb[58].mxu1 %v5475_v18  ;;  %v4586_v18 = vld [vmem:[%s5195_s13] sm:$0xff] }
 0x176   : > { %1159 = vmatprep.mubr.f32.mxu1 %v5479_v24  ;;  %v651_v24 = vld [vmem:[#allocation5 + $0x470] sm:$0xff] }
 0x177   : > { %1411 = vmatmul.mubr.f32.gmra.mrb[58].mxu0 %v493_v22  ;;  %v4585_v22 = vld [vmem:[%s5195_s13 + $0x8] sm:$0xff] }
 0x178   : > { %1416 = vmatprep.mubr.f32.mxu0 %v500_v28  ;;  %v3728_v28 = vpack.c.bf16 %v643_v59, %v639_v53  ;;  %v327_v53 = vld [vmem:[%s5195_s13 + $0x50] sm:$0xff] }
 0x179   : > { %1160 = vmatmul.mubr.f32.gmra.mrb[60].mxu1 %v5485_v32  ;;  %v647_v32 = vld [vmem:[#allocation5 + $0x450] sm:$0xff] }
 0x17a   : > { %1165 = vmatprep.mubr.f32.mxu1 %v5489_v38  ;;  %v328_v38 = vld [vmem:[%s5195_s13 + $0x58] sm:$0xff]  ;;  %v3732_v59 = vpack.c.bf16 %v651_v24, %v647_v32 }
 0x17b   : > { %1417 = vmatmul.mubr.f32.gmra.mrb[60].mxu0 %v499_v35  ;;  %v321_v35 = vld [vmem:[%s5195_s13 + $0x20] sm:$0xff]  ;;  %v340_v32 = vld [vmem:[%s5195_s13 + $0xb8] sm:$0xff] }
 0x17c   : > { %1422 = vmatprep.mubr.f32.mxu0 %v506_v41  ;;  %v3730_v41 = vpack.c.bf16 %v652_v14, %v648_v6  ;;  %v655_v14 = vld [vmem:[#allocation5 + $0x490] sm:$0xff] }
 0x17d   : > { %1166 = vmatmul.mubr.f32.gmra.mrb[62].mxu1 %v5495_v47  ;;  %v660_v47 = vld [vmem:[#allocation5 + $0x4b8] sm:$0xff] }
 0x17e   : > { %1750 = vmatprep.mubr.f32.mxu1 %v4585_v22  ;;  %v3734_v6 = vpack.c.bf16 %v660_v47, %v656_v10  ;;  %v659_v22 = vld [vmem:[#allocation5 + $0x4b0] sm:$0xff] }
 0x17f   : > { %1423 = vmatmul.mubr.f32.gmra.mrb[62].mxu0 %v505_v49  ;;  %v4587_v49 = vld [vmem:[%s5195_s13 + $0x38] sm:$0xff]  ;;  %v3736_v24 = vpack.c.bf16 %v659_v22, %v655_v14  ;;  %v663_v47 = vld [vmem:[#allocation5 + $0x4d0] sm:$0xff]  ;;  %v346_v14 = vld [vmem:[%s5195_s13 + $0xe8] sm:$0xff] }
 0x180   : > { %1493 = vmatprep.mubr.f32.mxu0 %v322_v0  ;;  %v334_v0 = vld [vmem:[%s5195_s13 + $0x88] sm:$0xff]  ;;  %v675_v22 = vld [vmem:[#allocation5 + $0x530] sm:$0xff] }
 0x181   : > { %1751 = vmatmul.mubr.f32.vlgmr.msra.gmra.mrb[64].mxu1 %v4586_v18  ;;  %v664_v18 = vld [vmem:[#allocation5 + $0x4d8] sm:$0xff] }
 0x182   : > { %3729 = vmatpush1.bf16.msra.mxu1 %v3728_v28  ;;  %1756 = vmatprep.mubr.f32.mxu1 %v4587_v49  ;;  %v4589_v28 = vld [vmem:[%s5195_s13 + $0x68] sm:$0xff]  ;;  %v3738_v10 = vpack.c.bf16 %v668_v62, %v664_v18  ;;  %v676_v49 = vld [vmem:[#allocation5 + $0x538] sm:$0xff]  ;;  %v4592_v18 = vld [vmem:[%s5195_s13 + $0x90] sm:$0xff] }
 0x183   : > { %1494 = vmatmul.mubr.f32.vlgmr.msra.gmra.mrb[0].mxu0 %v321_v35  ;;  %3731 = vmatprep.subr.bf16.mxu1 %v3730_v41  ;;  %v667_v35 = vld [vmem:[#allocation5 + $0x4f0] sm:$0xff]  ;;  %v4590_v41 = vld [vmem:[%s5195_s13 + $0x60] sm:$0xff] }
 0x184   : > { %1499 = vmatprep.mubr.f32.mxu0 %v328_v38  ;;  %v333_v38 = vld [vmem:[%s5195_s13 + $0x80] sm:$0xff] }
 0x185   : > { %1757 = vmatmul.mubr.f32.gmra.mrb[66].mxu1 %v4588_v4  ;;  %v672_v4 = vld [vmem:[#allocation5 + $0x518] sm:$0xff] }
 0x186   : > { %1762 = vmatprep.mubr.f32.mxu1 %v4589_v28  ;;  %3733 = vmatpush1.bf16.msra.mxu1 %v3732_v59  ;;  %v3740_v59 = vpack.c.bf16 %v667_v35, %v663_v47  ;;  %v3742_v62 = vpack.c.bf16 %v676_v49, %v672_v4  ;;  %v680_v28 = vld [vmem:[#allocation5 + $0x558] sm:$0xff]  ;;  %v679_v35 = vld [vmem:[#allocation5 + $0x550] sm:$0xff]  ;;  %v4594_v49 = vld [vmem:[%s5195_s13 + $0xc0] sm:$0xff] }
 0x187   : > { %1500 = vmatmul.mubr.f32.gmra.mrb[2].mxu0 %v327_v53  ;;  %3735 = vmatprep.subr.bf16.mxu1 %v3734_v6  ;;  %v4591_v53 = vld [vmem:[%s5195_s13 + $0x98] sm:$0xff]  ;;  %v671_v6 = vld [vmem:[#allocation5 + $0x510] sm:$0xff] }
 0x188   : > { %1505 = vmatprep.mubr.f32.mxu0 %v334_v0  ;;  %v339_v0 = vld [vmem:[%s5195_s13 + $0xb0] sm:$0xff]  ;;  %v352_v47 = vld [vmem:[%s5195_s13 + $0x118] sm:$0xff] }
 0x189   : > { %1763 = vmatmul.mubr.f32.gmra.mrb[68].mxu1 %v4590_v41  ;;  %v684_v41 = vld [vmem:[#allocation5 + $0x578] sm:$0xff]  ;;  %v683_v4 = vld [vmem:[#allocation5 + $0x570] sm:$0xff] }
 0x18a   : > { %1768 = vmatprep.mubr.f32.mxu1 %v4591_v53  ;;  %3737 = vmatpush1.bf16.msra.mxu1 %v3736_v24  ;;  %v3744_v24 = vpack.c.bf16 %v675_v22, %v671_v6  ;;  %v688_v53 = vld [vmem:[#allocation5 + $0x598] sm:$0xff]  ;;  %v691_v22 = vld [vmem:[#allocation5 + $0x5b0] sm:$0xff] }
 0x18b   : > { %1506 = vmatmul.mubr.f32.gmra.mrb[4].mxu0 %v333_v38  ;;  %3739 = vmatprep.subr.bf16.mxu1 %v3738_v10  ;;  %v4593_v38 = vld [vmem:[%s5195_s13 + $0xc8] sm:$0xff]  ;;  %v3746_v10 = vpack.c.bf16 %v684_v41, %v680_v28  ;;  %v696_v28 = vld [vmem:[#allocation5 + $0x5d8] sm:$0xff] }
 0x18c   : > { %1511 = vmatprep.mubr.f32.mxu0 %v340_v32  ;;  %v345_v32 = vld [vmem:[%s5195_s13 + $0xe0] sm:$0xff]  ;;  %v700_v41 = vld [vmem:[#allocation5 + $0x5f8] sm:$0xff] }
 0x18d   : > { %1769 = vmatmul.mubr.f32.gmra.mrb[70].mxu1 %v4592_v18  ;;  %v692_v18 = vld [vmem:[#allocation5 + $0x5b8] sm:$0xff] }
 0x18e   : > { %1774 = vmatprep.mubr.f32.mxu1 %v4593_v38  ;;  %3741 = vmatpush1.bf16.msra.mxu1 %v3740_v59  ;;  %v3748_v59 = vpack.c.bf16 %v683_v4, %v679_v35  ;;  %v3750_v6 = vpack.c.bf16 %v692_v18, %v688_v53  ;;  %v364_v38 = vld [vmem:[%s5195_s13 + $0x178] sm:$0xff]  ;;  %v2586_v4 = vld [vmem:[#allocation8 + $0x8] sm:$0xff] }
 0x18f   : > { %1512 = vmatmul.mubr.f32.gmra.mrb[6].mxu0 %v339_v0  ;;  %3743 = vmatprep.subr.bf16.mxu1 %v3742_v62  ;;  %v351_v0 = vld [vmem:[%s5195_s13 + $0x110] sm:$0xff]  ;;  %v704_v35 = vld [vmem:[#allocation5 + $0x618] sm:$0xff]  ;;  %v370_v18 = vld [vmem:[%s5195_s13 + $0x1a8] sm:$0xff] }
 0x190   : > { %1517 = vmatprep.mubr.f32.mxu0 %v346_v14  ;;  %v358_v14 = vld [vmem:[%s5195_s13 + $0x148] sm:$0xff]  ;;  %v687_v62 = vld [vmem:[#allocation5 + $0x590] sm:$0xff] }
 0x191   : > { %1775 = vmatmul.mubr.f32.gmra.mrb[72].mxu1 %v4594_v49  ;;  %v2588_v49 = vld [vmem:[#allocation8 + $0x18] sm:$0xff] }
 0x192   : > { %1780 = vmatprep.mubr.f32.mxu1 %v5230_v60  ;;  %3745 = vmatpush1.bf16.msra.mxu1 %v3744_v24  ;;  %v357_v60 = vld [vmem:[%s5195_s13 + $0x140] sm:$0xff]  ;;  %v3754_v24 = vpack.c.bf16 %v700_v41, %v696_v28  ;;  %v3854_v53 = vpack.c.bf16 %v2588_v49, %v2586_v4  ;;  %v2590_v41 = vld [vmem:[#allocation8 + $0x28] sm:$0xff]  ;;  %v720_v49 = vld [vmem:[#allocation5 + $0x698] sm:$0xff] }
 0x193   : > { %1518 = vmatmul.mubr.f32.gmra.mrb[8].mxu0 %v345_v32  ;;  %3747 = vmatprep.subr.bf16.mxu1 %v3746_v10  ;;  %v3752_v32 = vpack.c.bf16 %v691_v22, %v687_v62  ;;  %v699_v10 = vld [vmem:[#allocation5 + $0x5f0] sm:$0xff]  ;;  %v712_v22 = vld [vmem:[#allocation5 + $0x658] sm:$0xff] }
 0x194   : > { %1523 = vmatprep.mubr.f32.mxu0 %v352_v47  ;;  %v695_v47 = vld [vmem:[#allocation5 + $0x5d0] sm:$0xff]  ;;  %3855 = vmatprep.subr.bf16.mxu0 %v3854_v53 }
 0x195   : > { %1781 = vmatmul.mubr.f32.gmra.mrb[74].mxu1 %v5234_v1  ;;  %v708_v1 = vld [vmem:[#allocation5 + $0x638] sm:$0xff]  ;;  %v703_v62 = vld [vmem:[#allocation5 + $0x610] sm:$0xff] }
 0x196   : > { %1786 = vmatprep.mubr.f32.mxu1 %v5239_v11  ;;  %3749 = vmatpush1.bf16.msra.mxu1 %v3748_v59  ;;  %v363_v11 = vld [vmem:[%s5195_s13 + $0x170] sm:$0xff]  ;;  %v2585_v59 = vld [vmem:[#allocation8] sm:$0xff] }
 0x197   : > { %1524 = vmatmul.mubr.f32.gmra.mrb[10].mxu0 %v351_v0  ;;  %3751 = vmatprep.subr.bf16.mxu1 %v3750_v6  ;;  %v3756_v0 = vpack.c.bf16 %v699_v10, %v695_v47  ;;  %v3758_v6 = vpack.c.bf16 %v708_v1, %v704_v35  ;;  %v2591_v47 = vld [vmem:[#allocation8 + $0x30] sm:$0xff] }
 0x198   : > { %1529 = vmatprep.mubr.f32.mxu0 %v358_v14  ;;  %v2587_v14 = vld [vmem:[#allocation8 + $0x10] sm:$0xff] }
 0x199   : > { %1787 = vmatmul.mubr.f32.gmra.mrb[76].mxu1 %v5245_v27  ;;  %v707_v27 = vld [vmem:[#allocation5 + $0x630] sm:$0xff]  ;;  %v3856_v28 = vpack.c.bf16 %v2587_v14, %v2585_v59  ;;  %v376_v10 = vld [vmem:[%s5195_s13 + $0x1d8] sm:$0xff]  ;;  %v382_v14 = vld [vmem:[%s5195_s13 + $0x208] sm:$0xff] }
 0x19a   : > { %1792 = vmatprep.mubr.f32.mxu1 %v5249_v29  ;;  %3753 = vmatpush1.bf16.msra.mxu1 %v3752_v32  ;;  %v716_v29 = vld [vmem:[#allocation5 + $0x678] sm:$0xff]  ;;  %v2589_v32 = vld [vmem:[#allocation8 + $0x20] sm:$0xff]  ;;  %v3760_v35 = vpack.c.bf16 %v707_v27, %v703_v62  ;;  %v711_v4 = vld [vmem:[#allocation5 + $0x650] sm:$0xff] }
 0x19b   : > { %1530 = vmatmul.mubr.f32.gmra.mrb[12].mxu0 %v357_v60  ;;  %3755 = vmatprep.subr.bf16.mxu1 %v3754_v24  ;;  %v2592_v60 = vld [vmem:[#allocation8 + $0x38] sm:$0xff]  ;;  %v3762_v1 = vpack.c.bf16 %v716_v29, %v712_v22  ;;  %v3860_v53 = vpack.c.bf16 %v2591_v47, %v2589_v32  ;;  %v2593_v62 = vld [vmem:[#allocation8 + $0x40] sm:$0xff]  ;;  %v2595_v27 = vld [vmem:[#allocation8 + $0x50] sm:$0xff] }
 0x19c   : > { %1535 = vmatprep.mubr.f32.mxu0 %v364_v38  ;;  %v3858_v38 = vpack.c.bf16 %v2592_v60, %v2590_v41  ;;  %v369_v24 = vld [vmem:[%s5195_s13 + $0x1a0] sm:$0xff]  ;;  %3857 = vmatpush1.bf16.msra.mxu0 %v3856_v28  ;;  %v719_v28 = vld [vmem:[#allocation5 + $0x690] sm:$0xff]  ;;  %v728_v29 = vld [vmem:[#allocation5 + $0x6d8] sm:$0xff]  ;;  %v3864_v41 = vpack.c.bf16 %v2595_v27, %v2593_v62 }
 0x19d   : > { %1793 = vmatmul.mubr.f32.gmra.mrb[78].mxu1 %v5255_v44  ;;  %v715_v44 = vld [vmem:[#allocation5 + $0x670] sm:$0xff]  ;;  %v2596_v59 = vld [vmem:[#allocation8 + $0x58] sm:$0xff]  ;;  %v2597_v47 = vld [vmem:[#allocation8 + $0x60] sm:$0xff] }
 0x19e   : > { %1798 = vmatprep.mubr.f32.mxu1 %v5259_v46  ;;  %3757 = vmatpush1.bf16.msra.mxu1 %v3756_v0  ;;  %v724_v46 = vld [vmem:[#allocation5 + $0x6b8] sm:$0xff]  ;;  %v2598_v60 = vld [vmem:[#allocation8 + $0x68] sm:$0xff] }
 0x19f   : > { %1536 = vmatmul.mubr.f32.gmra.mrb[14].mxu0 %v363_v11  ;;  %3759 = vmatprep.subr.bf16.mxu1 %v3758_v6  ;;  %v2594_v11 = vld [vmem:[#allocation8 + $0x48] sm:$0xff]  ;;  %v3764_v6 = vpack.c.bf16 %v715_v44, %v711_v4  ;;  %v3766_v22 = vpack.c.bf16 %v724_v46, %v720_v49  ;;  %v736_v49 = vld [vmem:[#allocation5 + $0x718] sm:$0xff] }
 0x1a0   : > { %1541 = vmatprep.mubr.f32.mxu0 %v370_v18  ;;  %3859 = vmatprep.subr.bf16.mxu0 %v3858_v38  ;;  %v375_v18 = vld [vmem:[%s5195_s13 + $0x1d0] sm:$0xff]  ;;  %v3862_v0 = vpack.c.bf16 %v2596_v59, %v2594_v11  ;;  %v2600_v38 = vld [vmem:[#allocation8 + $0x78] sm:$0xff] }
 0x1a1   : > { %1799 = vmatmul.mubr.f32.gmra.mrb[80].mxu1 %v5265_v61  ;;  %v723_v61 = vld [vmem:[#allocation5 + $0x6b0] sm:$0xff]  ;;  %3861 = vmatpush1.bf16.msra.mxu0 %v3860_v53  ;;  %v3866_v32 = vpack.c.bf16 %v2600_v38, %v2598_v60  ;;  %v2604_v11 = vld [vmem:[#allocation8 + $0x98] sm:$0xff]  ;;  %v2605_v60 = vld [vmem:[#allocation8 + $0xa0] sm:$0xff] }
 0x1a2   : > { %1804 = vmatprep.mubr.f32.mxu1 %v5269_v2  ;;  %3761 = vmatpush1.bf16.msra.mxu1 %v3760_v35  ;;  %v732_v2 = vld [vmem:[#allocation5 + $0x6f8] sm:$0xff]  ;;  %v731_v44 = vld [vmem:[#allocation5 + $0x6f0] sm:$0xff] }
 0x1a3   : > { %1542 = vmatmul.mubr.f32.gmra.mrb[16].mxu0 %v369_v24  ;;  %3763 = vmatprep.subr.bf16.mxu1 %v3762_v1  ;;  %v2599_v24 = vld [vmem:[#allocation8 + $0x70] sm:$0xff]  ;;  %v3768_v1 = vpack.c.bf16 %v723_v61, %v719_v28  ;;  %v3770_v4 = vpack.c.bf16 %v732_v2, %v728_v29  ;;  %v2602_v46 = vld [vmem:[#allocation8 + $0x88] sm:$0xff] }
 0x1a4   : > { %1547 = vmatprep.mubr.f32.mxu0 %v376_v10  ;;  %3863 = vmatprep.subr.bf16.mxu0 %v3862_v0  ;;  %v381_v10 = vld [vmem:[%s5195_s13 + $0x200] sm:$0xff]  ;;  %v388_v35 = vld [vmem:[%s5195_s13 + $0x238] sm:$0xff]  ;;  %v3868_v53 = vpack.c.bf16 %v2599_v24, %v2597_v47  ;;  %v387_v59 = vld [vmem:[%s5195_s13 + $0x230] sm:$0xff] }
 0x1a5   : > { %1805 = vmatmul.mubr.f32.gmra.mrb[82].mxu1 %v5275_v15  ;;  %v727_v15 = vld [vmem:[#allocation5 + $0x6d0] sm:$0xff]  ;;  %3865 = vmatpush1.bf16.msra.mxu0 %v3864_v41  ;;  %v394_v0 = vld [vmem:[%s5195_s13 + $0x268] sm:$0xff]  ;;  %v744_v28 = vld [vmem:[#allocation5 + $0x758] sm:$0xff] }
 0x1a6   : > { %1810 = vmatprep.mubr.f32.mxu1 %v5279_v19  ;;  %3765 = vmatpush1.bf16.msra.mxu1 %v3764_v6  ;;  %v740_v19 = vld [vmem:[#allocation5 + $0x738] sm:$0xff]  ;;  %v2601_v6 = vld [vmem:[#allocation8 + $0x80] sm:$0xff]  ;;  %v2606_v29 = vld [vmem:[#allocation8 + $0xa8] sm:$0xff] }
 0x1a7   : > { %1548 = vmatmul.mubr.f32.gmra.mrb[18].mxu0 %v375_v18  ;;  %3767 = vmatprep.subr.bf16.mxu1 %v3766_v22  ;;  %v3870_v18 = vpack.c.bf16 %v2604_v11, %v2602_v46  ;;  %v2603_v62 = vld [vmem:[#allocation8 + $0x90] sm:$0xff]  ;;  %v3774_v27 = vpack.c.bf16 %v740_v19, %v736_v49  ;;  %v2608_v41 = vld [vmem:[#allocation8 + $0xb8] sm:$0xff]  ;;  %v406_v19 = vld [vmem:[%s5195_s13 + $0x2c8] sm:$0xff] }
 0x1a8   : > { %1553 = vmatprep.mubr.f32.mxu0 %v382_v14  ;;  %3867 = vmatprep.subr.bf16.mxu0 %v3866_v32  ;;  %v3772_v14 = vpack.c.bf16 %v731_v44, %v727_v15  ;;  %v735_v22 = vld [vmem:[#allocation5 + $0x710] sm:$0xff]  ;;  %v3872_v61 = vpack.c.bf16 %v2603_v62, %v2601_v6  ;;  %v3874_v2 = vpack.c.bf16 %v2608_v41, %v2606_v29  ;;  %v393_v32 = vld [vmem:[%s5195_s13 + $0x260] sm:$0xff]  ;;  %v400_v47 = vld [vmem:[%s5195_s13 + $0x298] sm:$0xff] }
 0x1a9   : > { %1811 = vmatmul.mubr.f32.gmra.mrb[84].mxu1 %v5285_v33  ;;  %v739_v33 = vld [vmem:[#allocation5 + $0x730] sm:$0xff]  ;;  %3869 = vmatpush1.bf16.msra.mxu0 %v3868_v53  ;;  %v2612_v44 = vld [vmem:[#allocation8 + $0xd8] sm:$0xff]  ;;  %v2609_v11 = vld [vmem:[#allocation8 + $0xc0] sm:$0xff] }
 0x1aa   : > { %1816 = vmatprep.mubr.f32.mxu1 %v5289_v37  ;;  %3769 = vmatpush1.bf16.msra.mxu1 %v3768_v1  ;;  %v748_v37 = vld [vmem:[#allocation5 + $0x778] sm:$0xff]  ;;  %v3776_v24 = vpack.c.bf16 %v739_v33, %v735_v22  ;;  %v2610_v15 = vld [vmem:[#allocation8 + $0xc8] sm:$0xff]  ;;  %v2613_v33 = vld [vmem:[#allocation8 + $0xe0] sm:$0xff] }
 0x1ab   : > { %1554 = vmatmul.mubr.f32.gmra.mrb[20].mxu0 %v381_v10  ;;  %3771 = vmatprep.subr.bf16.mxu1 %v3770_v4  ;;  %v2607_v38 = vld [vmem:[#allocation8 + $0xb0] sm:$0xff]  ;;  %v3778_v10 = vpack.c.bf16 %v748_v37, %v744_v28  ;;  %v3878_v53 = vpack.c.bf16 %v2612_v44, %v2610_v15  ;;  %v2614_v62 = vld [vmem:[#allocation8 + $0xe8] sm:$0xff]  ;;  %v2624_v44 = vld [vmem:[#allocation8 + $0x138] sm:$0xff] }
 0x1ac   : > { %1559 = vmatprep.mubr.f32.mxu0 %v388_v35  ;;  %3871 = vmatprep.subr.bf16.mxu0 %v3870_v18  ;;  %v747_v35 = vld [vmem:[#allocation5 + $0x770] sm:$0xff]  ;;  %v752_v1 = vld [vmem:[#allocation5 + $0x798] sm:$0xff]  ;;  %v3876_v4 = vpack.c.bf16 %v2607_v38, %v2605_v60 }
 0x1ad   : > { %1817 = vmatmul.mubr.f32.gmra.mrb[86].mxu1 %v5295_v51  ;;  %v743_v51 = vld [vmem:[#allocation5 + $0x750] sm:$0xff]  ;;  %3873 = vmatpush1.bf16.msra.mxu0 %v3872_v61  ;;  %v405_v61 = vld [vmem:[%s5195_s13 + $0x2c0] sm:$0xff]  ;;  %v412_v37 = vld [vmem:[%s5195_s13 + $0x2f8] sm:$0xff] }
 0x1ae   : > { %1822 = vmatprep.mubr.f32.mxu1 %v5299_v55  ;;  %3773 = vmatpush1.bf16.msra.mxu1 %v3772_v14  ;;  %v756_v55 = vld [vmem:[#allocation5 + $0x7b8] sm:$0xff]  ;;  %v399_v49 = vld [vmem:[%s5195_s13 + $0x290] sm:$0xff]  ;;  %v3780_v46 = vpack.c.bf16 %v747_v35, %v743_v51  ;;  %v2617_v35 = vld [vmem:[#allocation8 + $0x100] sm:$0xff] }
 0x1af   : > { %1560 = vmatmul.mubr.f32.gmra.mrb[22].mxu0 %v387_v59  ;;  %3775 = vmatprep.subr.bf16.mxu1 %v3774_v27  ;;  %v2611_v59 = vld [vmem:[#allocation8 + $0xd0] sm:$0xff]  ;;  %v3782_v18 = vpack.c.bf16 %v756_v55, %v752_v1  ;;  %v2616_v27 = vld [vmem:[#allocation8 + $0xf8] sm:$0xff]  ;;  %v2622_v15 = vld [vmem:[#allocation8 + $0x128] sm:$0xff] }
 0x1b0   : > { %1565 = vmatprep.mubr.f32.mxu0 %v394_v0  ;;  %3875 = vmatprep.subr.bf16.mxu0 %v3874_v2  ;;  %v751_v0 = vld [vmem:[#allocation5 + $0x790] sm:$0xff]  ;;  %v760_v14 = vld [vmem:[#allocation5 + $0x7d8] sm:$0xff]  ;;  %v3880_v6 = vpack.c.bf16 %v2611_v59, %v2609_v11  ;;  %v3882_v22 = vpack.c.bf16 %v2616_v27, %v2614_v62 }
 0x1b1   : > { %1823 = vmatmul.mubr.f32.gmra.mrb[88].mxu1 %v5305_v7  ;;  %v755_v7 = vld [vmem:[#allocation5 + $0x7b0] sm:$0xff]  ;;  %3877 = vmatpush1.bf16.msra.mxu0 %v3876_v4  ;;  %v768_v60 = vld [vmem:[#allocation5 + $0x818] sm:$0xff]  ;;  %v418_v4 = vld [vmem:[%s5195_s13 + $0x328] sm:$0xff] }
 0x1b2   : > { %1828 = vmatprep.mubr.f32.mxu1 %v5309_v12  ;;  %3777 = vmatpush1.bf16.msra.mxu1 %v3776_v24  ;;  %v764_v12 = vld [vmem:[#allocation5 + $0x7f8] sm:$0xff]  ;;  %v3784_v29 = vpack.c.bf16 %v755_v7, %v751_v0  ;;  %v759_v2 = vld [vmem:[#allocation5 + $0x7d0] sm:$0xff]  ;;  %v2625_v0 = vld [vmem:[#allocation8 + $0x140] sm:$0xff] }
 0x1b3   : > { %1566 = vmatmul.mubr.f32.gmra.mrb[24].mxu0 %v393_v32  ;;  %3779 = vmatprep.subr.bf16.mxu1 %v3778_v10  ;;  %v2615_v28 = vld [vmem:[#allocation8 + $0xf0] sm:$0xff]  ;;  %v3786_v41 = vpack.c.bf16 %v764_v12, %v760_v14  ;;  %v2618_v32 = vld [vmem:[#allocation8 + $0x108] sm:$0xff]  ;;  %v2628_v59 = vld [vmem:[#allocation8 + $0x158] sm:$0xff] }
 0x1b4   : > { %1571 = vmatprep.mubr.f32.mxu0 %v400_v47  ;;  %3879 = vmatprep.subr.bf16.mxu0 %v3878_v53  ;;  %v3884_v38 = vpack.c.bf16 %v2615_v28, %v2613_v33  ;;  %v2620_v47 = vld [vmem:[#allocation8 + $0x118] sm:$0xff]  ;;  %v411_v10 = vld [vmem:[%s5195_s13 + $0x2f0] sm:$0xff]  ;;  %v430_v14 = vld [vmem:[%s5195_s13 + $0x388] sm:$0xff] }
 0x1b5   : > { %1829 = vmatmul.mubr.f32.gmra.mrb[90].mxu1 %v5314_v21  ;;  %v763_v21 = vld [vmem:[#allocation5 + $0x7f0] sm:$0xff]  ;;  %3881 = vmatpush1.bf16.msra.mxu0 %v3880_v6  ;;  %v3886_v24 = vpack.c.bf16 %v2620_v47, %v2618_v32  ;;  %v2632_v12 = vld [vmem:[#allocation8 + $0x178] sm:$0xff] }
 0x1b6   : > { %1834 = vmatprep.mubr.f32.mxu1 %v5319_v31  ;;  %3781 = vmatpush1.bf16.msra.mxu1 %v3780_v46  ;;  %v772_v31 = vld [vmem:[#allocation5 + $0x838] sm:$0xff]  ;;  %v3788_v51 = vpack.c.bf16 %v763_v21, %v759_v2  ;;  %v442_v2 = vld [vmem:[%s5195_s13 + $0x3e8] sm:$0xff]  ;;  %v441_v32 = vld [vmem:[%s5195_s13 + $0x3e0] sm:$0xff] }
 0x1b7   : > { %1572 = vmatmul.mubr.f32.gmra.mrb[26].mxu0 %v399_v49  ;;  %3783 = vmatprep.subr.bf16.mxu1 %v3782_v18  ;;  %v2619_v1 = vld [vmem:[#allocation8 + $0x110] sm:$0xff]  ;;  %v3790_v55 = vpack.c.bf16 %v772_v31, %v768_v60  ;;  %v2621_v49 = vld [vmem:[#allocation8 + $0x120] sm:$0xff]  ;;  %v2640_v60 = vld [vmem:[#allocation8 + $0x1b8] sm:$0xff] }
 0x1b8   : > { %1577 = vmatprep.mubr.f32.mxu0 %v406_v19  ;;  %3883 = vmatprep.subr.bf16.mxu0 %v3882_v22  ;;  %v2623_v53 = vld [vmem:[#allocation8 + $0x130] sm:$0xff]  ;;  %v417_v19 = vld [vmem:[%s5195_s13 + $0x320] sm:$0xff] }
 0x1b9   : > { %1835 = vmatmul.mubr.f32.gmra.mrb[92].mxu1 %v5325_v45  ;;  %3885 = vmatpush1.bf16.msra.mxu0 %v3884_v38  ;;  %v3888_v45 = vpack.c.bf16 %v2619_v1, %v2617_v35  ;;  %v424_v46 = vld [vmem:[%s5195_s13 + $0x358] sm:$0xff]  ;;  %v3892_v11 = vpack.c.bf16 %v2623_v53, %v2621_v49  ;;  %v423_v18 = vld [vmem:[%s5195_s13 + $0x350] sm:$0xff]  ;;  %v429_v22 = vld [vmem:[%s5195_s13 + $0x380] sm:$0xff] }
 0x1ba   : > { %1840 = vmatprep.mubr.f32.mxu1 %v5329_v50  ;;  %3785 = vmatpush1.bf16.msra.mxu1 %v3784_v29  ;;  %v3890_v50 = vpack.c.bf16 %v2624_v44, %v2622_v15  ;;  %v2627_v7 = vld [vmem:[#allocation8 + $0x150] sm:$0xff]  ;;  %v2633_v29 = vld [vmem:[#allocation8 + $0x180] sm:$0xff]  ;;  %v2648_v44 = vld [vmem:[#allocation8 + $0x1f8] sm:$0xff] }
 0x1bb   : > { %1578 = vmatmul.mubr.f32.gmra.mrb[28].mxu0 %v405_v61  ;;  %3787 = vmatprep.subr.bf16.mxu1 %v3786_v41  ;;  %v3896_v6 = vpack.c.bf16 %v2627_v7, %v2625_v0  ;;  %v2631_v27 = vld [vmem:[#allocation8 + $0x170] sm:$0xff]  ;;  %v2636_v61 = vld [vmem:[#allocation8 + $0x198] sm:$0xff]  ;;  %v2641_v35 = vld [vmem:[#allocation8 + $0x1c0] sm:$0xff] }
 0x1bc   : > { %1583 = vmatprep.mubr.f32.mxu0 %v412_v37  ;;  %3887 = vmatprep.subr.bf16.mxu0 %v3886_v24  ;;  %v436_v33 = vld [vmem:[%s5195_s13 + $0x3b8] sm:$0xff]  ;;  %v453_v53 = vld [vmem:[%s5195_s13 + $0x440] sm:$0xff]  ;;  %v471_v7 = vld [vmem:[%s5195_s13 + $0x4d0] sm:$0xff] }
 0x1bd   : > { %1841 = vmatmul.mubr.f32.gmra.mrb[94].mxu1 %v5333_v54  ;;  %3889 = vmatpush1.bf16.msra.mxu0 %v3888_v45  ;;  %v2626_v54 = vld [vmem:[#allocation8 + $0x148] sm:$0xff]  ;;  %v2635_v41 = vld [vmem:[#allocation8 + $0x190] sm:$0xff] }
 0x1be   : > { %1846 = vmatprep.mubr.f32.mxu1 %v5339_v8  ;;  %3789 = vmatpush1.bf16.msra.mxu1 %v3788_v51  ;;  %v3894_v8 = vpack.c.bf16 %v2628_v59, %v2626_v54  ;;  %v3904_v21 = vpack.c.bf16 %v2635_v41, %v2633_v29  ;;  %v2639_v31 = vld [vmem:[#allocation8 + $0x1b0] sm:$0xff]  ;;  %v466_v59 = vld [vmem:[%s5195_s13 + $0x4a8] sm:$0xff]  ;;  %v501_v41 = vld [vmem:[%s5195_s13 + $0x5c0] sm:$0xff] }
 0x1bf   : > { %1584 = vmatmul.mubr.f32.gmra.mrb[30].mxu0 %v411_v10  ;;  %3791 = vmatprep.subr.bf16.mxu1 %v3790_v55  ;;  %v448_v47 = vld [vmem:[%s5195_s13 + $0x418] sm:$0xff]  ;;  %v454_v55 = vld [vmem:[%s5195_s13 + $0x448] sm:$0xff] }
 0x1c0   : > { %1589 = vmatprep.mubr.f32.mxu0 %v418_v4  ;;  %3891 = vmatprep.subr.bf16.mxu0 %v3890_v50  ;;  %v2644_v10 = vld [vmem:[#allocation8 + $0x1d8] sm:$0xff]  ;;  %v2643_v1 = vld [vmem:[#allocation8 + $0x1d0] sm:$0xff]  ;;  %v2645_v50 = vld [vmem:[#allocation8 + $0x1e0] sm:$0xff] }
 0x1c1   : > { %1847 = vmatmul.mubr.f32.gmra.mrb[96].mxu1 %v5344_v16  ;;  %3893 = vmatpush1.bf16.msra.mxu0 %v3892_v11  ;;  %v2630_v16 = vld [vmem:[#allocation8 + $0x168] sm:$0xff]  ;;  %v3912_v45 = vpack.c.bf16 %v2643_v1, %v2641_v35  ;;  %v2647_v49 = vld [vmem:[#allocation8 + $0x1f0] sm:$0xff] }
 0x1c2   : > { %1852 = vmatprep.mubr.f32.mxu1 %v5349_v26  ;;  %3895 = vmatprep.subr.bf16.mxu0 %v3894_v8  ;;  %v3898_v62 = vpack.c.bf16 %v2632_v12, %v2630_v16  ;;  %v2629_v26 = vld [vmem:[#allocation8 + $0x160] sm:$0xff]  ;;  %v3916_v11 = vpack.c.bf16 %v2647_v49, %v2645_v50  ;;  %v483_v12 = vld [vmem:[%s5195_s13 + $0x530] sm:$0xff] }
 0x1c3   : > { %1590 = vmatmul.mubr.f32.gmra.mrb[32].mxu0 %v417_v19  ;;  %v3900_v28 = vpack.c.bf16 %v2631_v27, %v2629_v26  ;;  %v6348_v26 = vld [vmem:[#allocation20_spill] sm:$0xff]  ;;  %v4596_v49 = vld [vmem:[%s5195_s13 + $0x10] sm:$0xff] }
 0x1c4   : > { %1595 = vmatprep.mubr.f32.mxu0 %v424_v46  ;;  %v460_v46 = vld [vmem:[%s5195_s13 + $0x478] sm:$0xff]  ;;  %v489_v27 = vld [vmem:[%s5195_s13 + $0x560] sm:$0xff] }
 0x1c5   : > { %1853 = vmatmul.mubr.f32.gmra.mrb[98].mxu1 %v5355_v39  ;;  %3897 = vmatpush1.bf16.msra.mxu0 %v3896_v6  ;;  %v2634_v39 = vld [vmem:[#allocation8 + $0x188] sm:$0xff]  ;;  %v477_v6 = vld [vmem:[%s5195_s13 + $0x500] sm:$0xff] }
 0x1c6   : > { %1858 = vmatprep.mubr.f32.mxu1 %v5359_v43  ;;  %3899 = vmatprep.subr.bf16.mxu0 %v3898_v62  ;;  %v3902_v37 = vpack.c.bf16 %v2636_v61, %v2634_v39  ;;  %v435_v43 = vld [vmem:[%s5195_s13 + $0x3b0] sm:$0xff]  ;;  %v502_v61 = vld [vmem:[%s5195_s13 + $0x5c8] sm:$0xff] }
 0x1c7   : > { %1596 = vmatmul.mubr.f32.gmra.mrb[34].mxu0 %v423_v18  ;;  %v495_v39 = vld [vmem:[%s5195_s13 + $0x590] sm:$0xff]  ;;  %v6352_v29 = vld [vmem:[#allocation24_spill] sm:$0xff] }
 0x1c8   : > { %1601 = vmatprep.mubr.f32.mxu0 %v430_v14 }
 0x1c9   : > { %1859 = vmatmul.mubr.f32.gmra.mrb[100].mxu1 %v5365_v56  ;;  %3901 = vmatpush1.bf16.msra.mxu0 %v3900_v28  ;;  %v2638_v56 = vld [vmem:[#allocation8 + $0x1a8] sm:$0xff]  ;;  %v6350_v28 = vld [vmem:[#allocation22_spill] sm:$0xff] }
 0x1ca   : > { %1864 = vmatprep.mubr.f32.mxu1 %v5369_v58  ;;  %3903 = vmatprep.subr.bf16.mxu0 %v3902_v37  ;;  %v3906_v38 = vpack.c.bf16 %v2640_v60, %v2638_v56  ;;  %v2637_v58 = vld [vmem:[#allocation8 + $0x1a0] sm:$0xff]  ;;  %v6353_v60 = vld [vmem:[#allocation25_spill] sm:$0xff] }
 0x1cb   : > { %1602 = vmatmul.mubr.f32.gmra.mrb[36].mxu0 %v429_v22  ;;  %v3908_v24 = vpack.c.bf16 %v2639_v31, %v2637_v58  ;;  %v507_v58 = vld [vmem:[%s5195_s13 + $0x5f0] sm:$0xff] }
 0x1cc   : > { %1607 = vmatprep.mubr.f32.mxu0 %v436_v33  ;;  %v6349_v33 = vld [vmem:[#allocation21_spill] sm:$0xff] }
 0x1cd   : > { %1865 = vmatmul.mubr.f32.gmra.mrb[102].mxu1 %v5375_v63  ;;  %3905 = vmatpush1.bf16.msra.mxu0 %v3904_v21  ;;  %v2642_v63 = vld [vmem:[#allocation8 + $0x1c8] sm:$0xff]  ;;  %v508_v21 = vld [vmem:[%s5195_s13 + $0x5f8] sm:$0xff] }
 0x1ce   : > { %1870 = vmatprep.mubr.f32.mxu1 %v5379_v3  ;;  %3907 = vmatprep.subr.bf16.mxu0 %v3906_v38  ;;  %v3910_v51 = vpack.c.bf16 %v2644_v10, %v2642_v63  ;;  %v447_v3 = vld [vmem:[%s5195_s13 + $0x410] sm:$0xff]  ;;  %v780_v63 = vld [vmem:[#allocation5 + $0x878] sm:$0xff] }
 0x1cf   : > { %1608 = vmatmul.mubr.f32.gmra.mrb[38].mxu0 %v435_v43  ;;  %v6351_v43 = vld [vmem:[#allocation23_spill] sm:$0xff]  ;;  %v6354_v38 = vld [vmem:[#allocation26_spill] sm:$0xff] }
 0x1d0   : > { %1613 = vmatprep.mubr.f32.mxu0 %v442_v2  ;;  %v767_v31 = vld [vmem:[#allocation5 + $0x810] sm:$0xff] }
 0x1d1   : > { %1871 = vmatmul.mubr.f32.gmra.mrb[104].mxu1 %v5385_v5  ;;  %3909 = vmatpush1.bf16.msra.mxu0 %v3908_v24  ;;  %v2646_v5 = vld [vmem:[#allocation8 + $0x1e8] sm:$0xff]  ;;  %v776_v24 = vld [vmem:[#allocation5 + $0x858] sm:$0xff] }
 0x1d2   : > { %1876 = vmatprep.mubr.f32.mxu1 %v5389_v9  ;;  %3911 = vmatprep.subr.bf16.mxu0 %v3910_v51  ;;  %v3914_v9 = vpack.c.bf16 %v2648_v44, %v2646_v5  ;;  %v6355_v51 = vld [vmem:[#allocation27_spill] sm:$0xff]  ;;  %v3794_v1 = vpack.c.bf16 %v780_v63, %v776_v24 }
 0x1d3   : > { %1614 = vmatmul.mubr.f32.gmra.mrb[40].mxu0 %v441_v32  ;;  %v771_v32 = vld [vmem:[#allocation5 + $0x830] sm:$0xff]  ;;  %v784_v44 = vld [vmem:[#allocation5 + $0x898] sm:$0xff]  ;;  %v4602_v24 = vld [vmem:[%s5195_s13 + $0xa0] sm:$0xff] }
 0x1d4   : > { %1619 = vmatprep.mubr.f32.mxu0 %v448_v47  ;;  %v5586_v4 = vpop.f32.mrb[0].mxu1  ;;  %v3792_v35 = vpack.c.bf16 %v771_v32, %v767_v31  ;;  %v812_v31 = vld [vmem:[#allocation5 + $0x978] sm:$0xff] }
 0x1d5   : > { %v5589_v15 = vpop.f32.mrb[1].mxu1  ;;  %1877 = vmatmul.mubr.f32.gmra.mrb[106].mxu1 %v5395_v13  ;;  %3913 = vmatpush1.bf16.msra.mxu0 %v3912_v45  ;;  %v779_v45 = vld [vmem:[#allocation5 + $0x870] sm:$0xff]  ;;  %v4603_v63 = vld [vmem:[%s5195_s13 + $0xd8] sm:$0xff] }
 0x1d6   : > { %1882 = vmatprep.mubr.f32.mxu1 %v5399_v17  ;;  %3915 = vmatprep.subr.bf16.mxu0 %v3914_v9  ;;  %v459_v17 = vld [vmem:[%s5195_s13 + $0x470] sm:$0xff]  ;;  %v788_v9 = vld [vmem:[#allocation5 + $0x8b8] sm:$0xff] }
 0x1d7   : > { %1620 = vmatmul.mubr.f32.gmra.mrb[42].mxu0 %v447_v3  ;;  %v4595_v3 = vld [vmem:[%s5195_s13 + $0x18] sm:$0xff] }
 0x1d8   : > { %1625 = vmatprep.mubr.f32.mxu0 %v454_v55  ;;  %v5594_v19 = vpop.f32.mrb[2].mxu1  ;;  %v775_v55 = vld [vmem:[#allocation5 + $0x850] sm:$0xff] }
 0x1d9   : > { %v5597_v13 = vpop.f32.mrb[3].mxu1  ;;  %1883 = vmatmul.mubr.f32.gmra.mrb[108].mxu1 %v5405_v20  ;;  %3917 = vmatpush1.bf16.msra.mxu0 %v3916_v11  ;;  %v465_v20 = vld [vmem:[%s5195_s13 + $0x4a0] sm:$0xff]  ;;  %v3798_v11 = vpack.c.bf16 %v788_v9, %v784_v44  ;;  %v820_v44 = vld [vmem:[#allocation5 + $0x9b8] sm:$0xff] }
 0x1da   : > { %1888 = vmatprep.mubr.f32.mxu1 %v5409_v23  ;;  %v472_v23 = vld [vmem:[%s5195_s13 + $0x4d8] sm:$0xff] }
 0x1db   : > { %1626 = vmatmul.mubr.f32.gmra.mrb[44].mxu0 %v453_v53  ;;  %v4597_v53 = vld [vmem:[%s5195_s13 + $0x48] sm:$0xff] }
 0x1dc   : > { %1631 = vmatprep.mubr.f32.mxu0 %v460_v46  ;;  %v5602_v54 = vpop.f32.mrb[4].mxu1  ;;  %v3796_v46 = vpack.c.bf16 %v779_v45, %v775_v55  ;;  %v816_v45 = vld [vmem:[#allocation5 + $0x998] sm:$0xff] }
 0x1dd   : > { %v5605_v8 = vpop.f32.mrb[5].mxu1  ;;  %1889 = vmatmul.mubr.f32.gmra.mrb[110].mxu1 %v5415_v25 }
 0x1de   : > { %1894 = vmatprep.mubr.f32.mxu1 %v5419_v30  ;;  %v478_v30 = vld [vmem:[%s5195_s13 + $0x508] sm:$0xff] }
 0x1df   : > { %1632 = vmatmul.mubr.f32.gmra.mrb[46].mxu0 %v459_v17  ;;  %v783_v17 = vld [vmem:[#allocation5 + $0x890] sm:$0xff] }
 0x1e0   : > { %1637 = vmatprep.mubr.f32.mxu0 %v466_v59  ;;  %v5610_v18 = vpop.f32.mrb[6].mxu1  ;;  %v787_v59 = vld [vmem:[#allocation5 + $0x8b0] sm:$0xff] }
 0x1e1   : > { %v5613_v0 = vpop.f32.mrb[7].mxu1  ;;  %1895 = vmatmul.mubr.f32.gmra.mrb[112].mxu1 %v5425_v34 }
 0x1e2   : > { %1900 = vmatprep.mubr.f32.mxu1 %v5429_v36  ;;  %v484_v36 = vld [vmem:[%s5195_s13 + $0x538] sm:$0xff] }
 0x1e3   : > { %1638 = vmatmul.mubr.f32.gmra.mrb[48].mxu0 %v465_v20 }
 0x1e4   : > { %1643 = vmatprep.mubr.f32.mxu0 %v472_v23  ;;  %v5618_v25 = vpop.f32.mrb[8].mxu1  ;;  %v792_v23 = vld [vmem:[#allocation5 + $0x8d8] sm:$0xff] }
 0x1e5   : > { %v5621_v14 = vpop.f32.mrb[9].mxu1  ;;  %1901 = vmatmul.mubr.f32.gmra.mrb[114].mxu1 %v5435_v40 }
 0x1e6   : > { %1906 = vmatprep.mubr.f32.mxu1 %v5439_v42  ;;  %v490_v42 = vld [vmem:[%s5195_s13 + $0x568] sm:$0xff] }
 0x1e7   : > { %1644 = vmatmul.mubr.f32.gmra.mrb[50].mxu0 %v471_v7  ;;  %v796_v7 = vld [vmem:[#allocation5 + $0x8f8] sm:$0xff] }
 0x1e8   : > { %1649 = vmatprep.mubr.f32.mxu0 %v478_v30  ;;  %v5626_v34 = vpop.f32.mrb[10].mxu1 }
 0x1e9   : > { %v5629_v16 = vpop.f32.mrb[11].mxu1  ;;  %1907 = vmatmul.mubr.f32.gmra.mrb[116].mxu1 %v5445_v48 }
 0x1ea   : > { %1912 = vmatprep.mubr.f32.mxu1 %v5449_v52  ;;  %v496_v52 = vld [vmem:[%s5195_s13 + $0x598] sm:$0xff] }
 0x1eb   : > { %1650 = vmatmul.mubr.f32.gmra.mrb[52].mxu0 %v477_v6  ;;  %v4598_v6 = vld [vmem:[%s5195_s13 + $0x40] sm:$0xff] }
 0x1ec   : > { %1655 = vmatprep.mubr.f32.mxu0 %v484_v36  ;;  %v5634_v40 = vpop.f32.mrb[12].mxu1  ;;  %v4599_v36 = vld [vmem:[%s5195_s13 + $0x78] sm:$0xff] }
 0x1ed   : > { %v5637_v62 = vpop.f32.mrb[13].mxu1  ;;  %1913 = vmatmul.mubr.f32.gmra.mrb[118].mxu1 %v5455_v57 }
 0x1ee   : > { %1918 = vmatprep.mubr.f32.mxu1 %v6348_v26  ;;  %v791_v26 = vld [vmem:[#allocation5 + $0x8d0] sm:$0xff] }
 0x1ef   : > { %1656 = vmatmul.mubr.f32.gmra.mrb[54].mxu0 %v483_v12  ;;  %v3800_v12 = vpack.c.bf16 %v787_v59, %v783_v17  ;;  %v815_v17 = vld [vmem:[#allocation5 + $0x990] sm:$0xff] }
 0x1f0   : > { %1661 = vmatprep.mubr.f32.mxu0 %v490_v42  ;;  %v5642_v48 = vpop.f32.mrb[14].mxu1  ;;  %v3802_v42 = vpack.c.bf16 %v796_v7, %v792_v23  ;;  %v819_v59 = vld [vmem:[#allocation5 + $0x9b0] sm:$0xff]  ;;  %v824_v7 = vld [vmem:[#allocation5 + $0x9d8] sm:$0xff] }
 0x1f1   : > { %v5645_v22 = vpop.f32.mrb[15].mxu1  ;;  %1919 = vmatmul.mubr.f32.gmra.mrb[120].mxu1 %v6349_v33  ;;  %v800_v33 = vld [vmem:[#allocation5 + $0x918] sm:$0xff] }
 0x1f2   : > { %1924 = vmatprep.mubr.f32.mxu1 %v6350_v28  ;;  %v804_v28 = vld [vmem:[#allocation5 + $0x938] sm:$0xff] }
 0x1f3   : > { %1662 = vmatmul.mubr.f32.gmra.mrb[56].mxu0 %v489_v27  ;;  %v795_v27 = vld [vmem:[#allocation5 + $0x8f0] sm:$0xff] }
 0x1f4   : > { %1667 = vmatprep.mubr.f32.mxu0 %v496_v52  ;;  %v5650_v57 = vpop.f32.mrb[16].mxu1 }
 0x1f5   : > { %v5653_v37 = vpop.f32.mrb[17].mxu1  ;;  %1925 = vmatmul.mubr.f32.gmra.mrb[122].mxu1 %v6351_v43  ;;  %v4601_v43 = vld [vmem:[%s5195_s13 + $0xa8] sm:$0xff] }
 0x1f6   : > { %1930 = vmatprep.mubr.f32.mxu1 %v6352_v29  ;;  %v3804_v29 = vpack.c.bf16 %v795_v27, %v791_v26  ;;  %v3816_v26 = vpack.c.bf16 %v819_v59, %v815_v17  ;;  %v848_v59 = vld [vmem:[#allocation5 + $0xa98] sm:$0xff] }
 0x1f7   : > { %1668 = vmatmul.mubr.f32.gmra.mrb[58].mxu0 %v495_v39 }
 0x1f8   : > { %1673 = vmatprep.mubr.f32.mxu0 %v502_v61  ;;  %v5658_v2 = vpop.f32.mrb[18].mxu1  ;;  %v4600_v61 = vld [vmem:[%s5195_s13 + $0x70] sm:$0xff] }
 0x1f9   : > { %v5661_v56 = vpop.f32.mrb[19].mxu1  ;;  %1931 = vmatmul.mubr.f32.gmra.mrb[124].mxu1 %v6353_v60  ;;  %v803_v60 = vld [vmem:[#allocation5 + $0x930] sm:$0xff] }
 0x1fa   : > { %1936 = vmatprep.mubr.f32.mxu1 %v6354_v38 }
 0x1fb   : > { %1674 = vmatmul.mubr.f32.gmra.mrb[60].mxu0 %v501_v41  ;;  %v3806_v41 = vpack.c.bf16 %v804_v28, %v800_v33  ;;  %v823_v33 = vld [vmem:[#allocation5 + $0x9d0] sm:$0xff] }
 0x1fc   : > { %1679 = vmatprep.mubr.f32.mxu0 %v508_v21  ;;  %v5666_v47 = vpop.f32.mrb[20].mxu1  ;;  %v799_v21 = vld [vmem:[#allocation5 + $0x910] sm:$0xff] }
 0x1fd   : > { %v5668_v10 = vpop.f32.mrb[21].mxu1  ;;  %1937 = vmatmul.mubr.f32.gmra.mrb[126].mxu1 %v6355_v51  ;;  %v3808_v51 = vpack.c.bf16 %v803_v60, %v799_v21  ;;  %v827_v28 = vld [vmem:[#allocation5 + $0x9f0] sm:$0xff]  ;;  %v4609_v60 = vld [vmem:[%s5195_s13 + $0x168] sm:$0xff] }
 0x1fe   : > { %2007 = vmatprep.mubr.f32.mxu1 %v4595_v3  ;;  %v4608_v21 = vld [vmem:[%s5195_s13 + $0x130] sm:$0xff] }
 0x1ff   : > { %1680 = vmatmul.mubr.f32.gmra.mrb[62].mxu0 %v507_v58  ;;  %v808_v58 = vld [vmem:[#allocation5 + $0x958] sm:$0xff] }
 0x200   : > { %v5672_v5 = vpop.f32.mrb[22].mxu1  ;;  %v3810_v3 = vpack.c.bf16 %v812_v31, %v808_v58  ;;  %v3820_v58 = vpack.c.bf16 %v827_v28, %v823_v33  ;;  %v847_v33 = vld [vmem:[#allocation5 + $0xa90] sm:$0xff] }
 0x201   : > { %v5674_v50 = vpop.f32.mrb[23].mxu1  ;;  %2008 = vmatmul.mubr.f32.vlgmr.msra.gmra.mrb[64].mxu1 %v4596_v49  ;;  %v4604_v49 = vld [vmem:[%s5195_s13 + $0xd0] sm:$0xff] }
 0x202   : > { %3793 = vmatpush1.bf16.msra.mxu1 %v3792_v35  ;;  %2013 = vmatprep.mubr.f32.mxu1 %v4597_v53  ;;  %v807_v35 = vld [vmem:[#allocation5 + $0x950] sm:$0xff]  ;;  %v4605_v53 = vld [vmem:[%s5195_s13 + $0x108] sm:$0xff] }
 0x203   : > { %3795 = vmatprep.subr.bf16.mxu1 %v3794_v1  ;;  %v811_v1 = vld [vmem:[#allocation5 + $0x970] sm:$0xff] }
 0x204   : > { %v5678_v20 = vpop.f32.mrb[24].mxu1  ;;  %v851_v28 = vld [vmem:[#allocation5 + $0xab0] sm:$0xff] }
 0x205   : > { %v5680_v30 = vpop.f32.mrb[25].mxu1  ;;  %2014 = vmatmul.mubr.f32.gmra.mrb[66].mxu1 %v4598_v6  ;;  %v828_v6 = vld [vmem:[#allocation5 + $0x9f8] sm:$0xff] }
 0x206   : > { %2019 = vmatprep.mubr.f32.mxu1 %v4599_v36  ;;  %3797 = vmatpush1.bf16.msra.mxu1 %v3796_v46  ;;  %v3812_v46 = vpack.c.bf16 %v811_v1, %v807_v35  ;;  %v3818_v27 = vpack.c.bf16 %v828_v6, %v824_v7  ;;  %v844_v35 = vld [vmem:[#allocation5 + $0xa78] sm:$0xff] }
 0x207   : > { %3799 = vmatprep.subr.bf16.mxu1 %v3798_v11  ;;  %v3814_v11 = vpack.c.bf16 %v820_v44, %v816_v45  ;;  %v4610_v45 = vld [vmem:[%s5195_s13 + $0x160] sm:$0xff]  ;;  %v4611_v44 = vld [vmem:[%s5195_s13 + $0x198] sm:$0xff] }
 0x208   : > { %v5684_v52 = vpop.f32.mrb[26].mxu1  ;;  %v852_v7 = vld [vmem:[#allocation5 + $0xab8] sm:$0xff] }
 0x209   : > { %v5686_v39 = vpop.f32.mrb[27].mxu1  ;;  %2020 = vmatmul.mubr.f32.gmra.mrb[68].mxu1 %v4600_v61 }
 0x20a   : > { %2025 = vmatprep.mubr.f32.mxu1 %v4601_v43  ;;  %3801 = vmatpush1.bf16.msra.mxu1 %v3800_v12  ;;  %v4606_v12 = vld [vmem:[%s5195_s13 + $0x100] sm:$0xff]  ;;  %v832_v43 = vld [vmem:[#allocation5 + $0xa18] sm:$0xff] }
 0x20b   : > { %3803 = vmatprep.subr.bf16.mxu1 %v3802_v42  ;;  %v4607_v42 = vld [vmem:[%s5195_s13 + $0x138] sm:$0xff] }
 0x20c   : > { %v5690_v38 = vpop.f32.mrb[28].mxu1 }
 0x20d   : > { %v5692_v32 = vpop.f32.mrb[29].mxu1  ;;  %2026 = vmatmul.mubr.f32.gmra.mrb[70].mxu1 %v4602_v24  ;;  %v831_v24 = vld [vmem:[#allocation5 + $0xa10] sm:$0xff] }
 0x20e   : > { %2031 = vmatprep.mubr.f32.mxu1 %v4603_v63  ;;  %3805 = vmatpush1.bf16.msra.mxu1 %v3804_v29  ;;  %v836_v29 = vld [vmem:[#allocation5 + $0xa38] sm:$0xff]  ;;  %v835_v63 = vld [vmem:[#allocation5 + $0xa30] sm:$0xff] }
 0x20f   : > { %3807 = vmatprep.subr.bf16.mxu1 %v3806_v41  ;;  %v3822_v31 = vpack.c.bf16 %v836_v29, %v832_v43  ;;  %v856_v29 = vld [vmem:[#allocation5 + $0xad8] sm:$0xff] }
 0x210   : > { %v5696_v55 = vpop.f32.mrb[30].mxu1 }
 0x211   : > { %v5698_v9 = vpop.f32.mrb[31].mxu1  ;;  %2032 = vmatmul.mubr.f32.gmra.mrb[72].mxu1 %v4604_v49  ;;  %v3824_v49 = vpack.c.bf16 %v835_v63, %v831_v24  ;;  %v3832_v24 = vpack.c.bf16 %v851_v28, %v847_v33  ;;  %v876_v33 = vld [vmem:[#allocation5 + $0xb78] sm:$0xff] }
 0x212   : > { %2037 = vmatprep.mubr.f32.mxu1 %v4605_v53  ;;  %3809 = vmatpush1.bf16.msra.mxu1 %v3808_v51 }
 0x213   : > { %3811 = vmatprep.subr.bf16.mxu1 %v3810_v3  ;;  %v840_v3 = vld [vmem:[#allocation5 + $0xa58] sm:$0xff] }
 0x214   : > { %v5702_v23 = vpop.f32.mrb[32].mxu1  ;;  %v3826_v53 = vpack.c.bf16 %v844_v35, %v840_v3  ;;  %v855_v3 = vld [vmem:[#allocation5 + $0xad0] sm:$0xff] }
 0x215   : > { %v5704_v36 = vpop.f32.mrb[33].mxu1  ;;  %2038 = vmatmul.mubr.f32.gmra.mrb[74].mxu1 %v4606_v12  ;;  %v4612_v12 = vld [vmem:[%s5195_s13 + $0x190] sm:$0xff] }
 0x216   : > { %2043 = vmatprep.mubr.f32.mxu1 %v4607_v42  ;;  %3813 = vmatpush1.bf16.msra.mxu1 %v3812_v46  ;;  %v839_v46 = vld [vmem:[#allocation5 + $0xa50] sm:$0xff]  ;;  %v4613_v42 = vld [vmem:[%s5195_s13 + $0x1c8] sm:$0xff] }
 0x217   : > { %3815 = vmatprep.subr.bf16.mxu1 %v3814_v11  ;;  %v843_v11 = vld [vmem:[#allocation5 + $0xa70] sm:$0xff] }
 0x218   : > { %v5708_v61 = vpop.f32.mrb[34].mxu1  ;;  %v859_v35 = vld [vmem:[#allocation5 + $0xaf0] sm:$0xff] }
 0x219   : > { %v5710_v41 = vpop.f32.mrb[35].mxu1  ;;  %2044 = vmatmul.mubr.f32.gmra.mrb[76].mxu1 %v4608_v21  ;;  %v860_v21 = vld [vmem:[#allocation5 + $0xaf8] sm:$0xff] }
 0x21a   : > { %2049 = vmatprep.mubr.f32.mxu1 %v4609_v60  ;;  %3817 = vmatpush1.bf16.msra.mxu1 %v3816_v26  ;;  %v3828_v26 = vpack.c.bf16 %v843_v11, %v839_v46  ;;  %v3834_v63 = vpack.c.bf16 %v860_v21, %v856_v29  ;;  %v4616_v46 = vld [vmem:[%s5195_s13 + $0x1f0] sm:$0xff]  ;;  %v4617_v11 = vld [vmem:[%s5195_s13 + $0x228] sm:$0xff]  ;;  %v4618_v29 = vld [vmem:[%s5195_s13 + $0x220] sm:$0xff] }
 0x21b   : > { %3819 = vmatprep.subr.bf16.mxu1 %v3818_v27  ;;  %v3830_v27 = vpack.c.bf16 %v852_v7, %v848_v59  ;;  %v3836_v59 = vpack.c.bf16 %v859_v35, %v855_v3  ;;  %v4619_v21 = vld [vmem:[%s5195_s13 + $0x258] sm:$0xff] }
 0x21c   : > { %v5714_v51 = vpop.f32.mrb[36].mxu1  ;;  %v880_v35 = vld [vmem:[#allocation5 + $0xb98] sm:$0xff] }
 0x21d   : > { %v5716_v1 = vpop.f32.mrb[37].mxu1  ;;  %2050 = vmatmul.mubr.f32.gmra.mrb[78].mxu1 %v4610_v45 }
 0x21e   : > { %2055 = vmatprep.mubr.f32.mxu1 %v4611_v44  ;;  %3821 = vmatpush1.bf16.msra.mxu1 %v3820_v58  ;;  %v4614_v58 = vld [vmem:[%s5195_s13 + $0x1c0] sm:$0xff]  ;;  %v864_v44 = vld [vmem:[#allocation5 + $0xb18] sm:$0xff] }
 0x21f   : > { %3823 = vmatprep.subr.bf16.mxu1 %v3822_v31  ;;  %v4615_v31 = vld [vmem:[%s5195_s13 + $0x1f8] sm:$0xff] }
 0x220   : > { %v5720_v17 = vpop.f32.mrb[38].mxu1 }
 0x221   : > { %v5722_v6 = vpop.f32.mrb[39].mxu1  ;;  %2056 = vmatmul.mubr.f32.gmra.mrb[80].mxu1 %v4612_v12  ;;  %v863_v12 = vld [vmem:[#allocation5 + $0xb10] sm:$0xff] }
 0x222   : > { %2061 = vmatprep.mubr.f32.mxu1 %v4613_v42  ;;  %3825 = vmatpush1.bf16.msra.mxu1 %v3824_v49  ;;  %v868_v49 = vld [vmem:[#allocation5 + $0xb38] sm:$0xff]  ;;  %v867_v42 = vld [vmem:[#allocation5 + $0xb30] sm:$0xff] }
 0x223   : > { %3827 = vmatprep.subr.bf16.mxu1 %v3826_v53  ;;  %v3838_v7 = vpack.c.bf16 %v868_v49, %v864_v44  ;;  %v884_v44 = vld [vmem:[#allocation5 + $0xbb8] sm:$0xff] }
 0x224   : > { %v5726_v43 = vpop.f32.mrb[40].mxu1 }
 0x225   : > { %v5728_v60 = vpop.f32.mrb[41].mxu1  ;;  %2062 = vmatmul.mubr.f32.gmra.mrb[82].mxu1 %v4614_v58  ;;  %v3840_v58 = vpack.c.bf16 %v867_v42, %v863_v12  ;;  %v883_v12 = vld [vmem:[#allocation5 + $0xbb0] sm:$0xff] }
 0x226   : > { %2067 = vmatprep.mubr.f32.mxu1 %v4615_v31  ;;  %3829 = vmatpush1.bf16.msra.mxu1 %v3828_v26 }
 0x227   : > { %3831 = vmatprep.subr.bf16.mxu1 %v3830_v27  ;;  %v872_v27 = vld [vmem:[#allocation5 + $0xb58] sm:$0xff] }
 0x228   : > { %v5732_v45 = vpop.f32.mrb[42].mxu1  ;;  %v3842_v31 = vpack.c.bf16 %v876_v33, %v872_v27  ;;  %v888_v27 = vld [vmem:[#allocation5 + $0xbd8] sm:$0xff] }
 0x229   : > { %v5734_v53 = vpop.f32.mrb[43].mxu1  ;;  %2068 = vmatmul.mubr.f32.gmra.mrb[84].mxu1 %v4616_v46  ;;  %v4620_v46 = vld [vmem:[%s5195_s13 + $0x250] sm:$0xff]  ;;  %v892_v33 = vld [vmem:[#allocation5 + $0xbf8] sm:$0xff] }
 0x22a   : > { %2073 = vmatprep.mubr.f32.mxu1 %v4617_v11  ;;  %3833 = vmatpush1.bf16.msra.mxu1 %v3832_v24  ;;  %v871_v24 = vld [vmem:[#allocation5 + $0xb50] sm:$0xff]  ;;  %v4621_v11 = vld [vmem:[%s5195_s13 + $0x288] sm:$0xff] }
 0x22b   : > { %3835 = vmatprep.subr.bf16.mxu1 %v3834_v63  ;;  %v875_v63 = vld [vmem:[#allocation5 + $0xb70] sm:$0xff] }
 0x22c   : > { %v5738_v26 = vpop.f32.mrb[44].mxu1 }
 0x22d   : > { %v5740_v28 = vpop.f32.mrb[45].mxu1  ;;  %2074 = vmatmul.mubr.f32.gmra.mrb[86].mxu1 %v4618_v29  ;;  %v3844_v29 = vpack.c.bf16 %v875_v63, %v871_v24  ;;  %v891_v24 = vld [vmem:[#allocation5 + $0xbf0] sm:$0xff] }
 0x22e   : > { %2079 = vmatprep.mubr.f32.mxu1 %v4619_v21  ;;  %3837 = vmatpush1.bf16.msra.mxu1 %v3836_v59  ;;  %v3846_v59 = vpack.c.bf16 %v884_v44, %v880_v35  ;;  %v4624_v44 = vld [vmem:[%s5195_s13 + $0x2b0] sm:$0xff] }
 0x22f   : > { %3839 = vmatprep.subr.bf16.mxu1 %v3838_v7  ;;  %v879_v7 = vld [vmem:[#allocation5 + $0xb90] sm:$0xff] }
 0x230   : > { %v5744_v3 = vpop.f32.mrb[46].mxu1 }
 0x231   : > { %6356 = vst [vmem:[#allocation20_spill] sm:$0xff] %v5744_v3  ;;  %v5746_v49 = vpop.f32.mrb[47].mxu1  ;;  %2080 = vmatmul.mubr.f32.gmra.mrb[88].mxu1 %v4620_v46  ;;  %v4623_v3 = vld [vmem:[%s5195_s13 + $0x2b8] sm:$0xff]  ;;  %v3848_v46 = vpack.c.bf16 %v883_v12, %v879_v7 }
 0x232   : > { %6357 = vst [vmem:[#allocation21_spill] sm:$0xff] %v5746_v49  ;;  %2085 = vmatprep.mubr.f32.mxu1 %v4621_v11  ;;  %3841 = vmatpush1.bf16.msra.mxu1 %v3840_v58  ;;  %v4622_v49 = vld [vmem:[%s5195_s13 + $0x280] sm:$0xff]  ;;  %v3850_v58 = vpack.c.bf16 %v892_v33, %v888_v27  ;;  %v4625_v11 = vld [vmem:[%s5195_s13 + $0x2e8] sm:$0xff]  ;;  %v4627_v7 = vld [vmem:[%s5195_s13 + $0x318] sm:$0xff] }
 0x233   : > { %3843 = vmatprep.subr.bf16.mxu1 %v3842_v31  ;;  %v887_v31 = vld [vmem:[#allocation5 + $0xbd0] sm:$0xff] }
 0x234   : > { %v5750_v42 = vpop.f32.mrb[48].mxu1  ;;  %v4628_v33 = vld [vmem:[%s5195_s13 + $0x310] sm:$0xff] }
 0x235   : > { %v5752_v21 = vpop.f32.mrb[49].mxu1  ;;  %2086 = vmatmul.mubr.f32.gmra.mrb[90].mxu1 %v4622_v49 }
 0x236   : > { %6358 = vst [vmem:[#allocation22_spill] sm:$0xff] %v5752_v21  ;;  %2091 = vmatprep.mubr.f32.mxu1 %v4623_v3  ;;  %3845 = vmatpush1.bf16.msra.mxu1 %v3844_v29  ;;  %v3852_v3 = vpack.c.bf16 %v891_v24, %v887_v31 }
 0x237   : > { %3847 = vmatprep.subr.bf16.mxu1 %v3846_v59  ;;  %v4626_v59 = vld [vmem:[%s5195_s13 + $0x2e0] sm:$0xff] }
 0x238   : > { %v5756_v63 = vpop.f32.mrb[50].mxu1 }
 0x239   : > { %6359 = vst [vmem:[#allocation23_spill] sm:$0xff] %v5756_v63  ;;  %v5758_v35 = vpop.f32.mrb[51].mxu1  ;;  %2092 = vmatmul.mubr.f32.gmra.mrb[92].mxu1 %v4624_v44  ;;  %v4630_v44 = vld [vmem:[%s5195_s13 + $0x340] sm:$0xff] }
 0x23a   : > { %6360 = vst [vmem:[#allocation24_spill] sm:$0xff] %v5758_v35  ;;  %2097 = vmatprep.mubr.f32.mxu1 %v4625_v11  ;;  %3849 = vmatpush1.bf16.msra.mxu1 %v3848_v46  ;;  %v4629_v46 = vld [vmem:[%s5195_s13 + $0x348] sm:$0xff]  ;;  %v4631_v11 = vld [vmem:[%s5195_s13 + $0x378] sm:$0xff] }
 0x23b   : > { %3851 = vmatprep.subr.bf16.mxu1 %v3850_v58  ;;  %v895_v58 = vlaneseq  ;;  %v2652_v35 = vld [vmem:[#allocation8 + $0x218] sm:$0xff] }
 0x23c   : > { %v5762_v49 = vpop.f32.mrb[52].mxu1 }
 0x23d   : > { %6361 = vst [vmem:[#allocation25_spill] sm:$0xff] %v5762_v49  ;;  %v5764_v29 = vpop.f32.mrb[53].mxu1  ;;  %2098 = vmatmul.mubr.f32.gmra.mrb[94].mxu1 %v4626_v59  ;;  %v4640_v49 = vld [vmem:[%s5195_s13 + $0x430] sm:$0xff] }
 0x23e   : > { %6362 = vst [vmem:[#allocation26_spill] sm:$0xff] %v5764_v29  ;;  %2103 = vmatprep.mubr.f32.mxu1 %v4627_v7  ;;  %3853 = vmatpush1.bf16.msra.mxu1 %v3852_v3  ;;  %v5780_v3 = vshrl.u32 %v895_v58, 7  ;;  %v4634_v58 = vld [vmem:[%s5195_s13 + $0x3a0] sm:$0xff] }
 0x23f   : > { %v4638_v29 = vld [vmem:[%s5195_s13 + $0x400] sm:$0xff] }
 0x240   : > { %v5768_v12 = vpop.f32.mrb[54].mxu1  ;;  %6367 = vst [vmem:[#allocation31_spill] sm:$0xff] %v5780_v3 }
 0x241   : > { %6363 = vst [vmem:[#allocation27_spill] sm:$0xff] %v5768_v12  ;;  %v5770_v27 = vpop.f32.mrb[55].mxu1  ;;  %2104 = vmatmul.mubr.f32.gmra.mrb[96].mxu1 %v4628_v33  ;;  %v4632_v33 = vld [vmem:[%s5195_s13 + $0x370] sm:$0xff] }
 0x242   : > { %6364 = vst [vmem:[#allocation28_spill] sm:$0xff] %v5770_v27  ;;  %2109 = vmatprep.mubr.f32.mxu1 %v4629_v46  ;;  %v4633_v46 = vld [vmem:[%s5195_s13 + $0x3a8] sm:$0xff]  ;;  %v6317_v27 = vsub.s32 1, %v5780_v3  ;;  %v4636_v12 = vld [vmem:[%s5195_s13 + $0x3d0] sm:$0xff] }
 0x244   : > { %v5774_v31 = vpop.f32.mrb[56].mxu1 }
 0x245   : > { %6365 = vst [vmem:[#allocation29_spill] sm:$0xff] %v5774_v31  ;;  %v5776_v24 = vpop.f32.mrb[57].mxu1  ;;  %2110 = vmatmul.mubr.f32.gmra.mrb[98].mxu1 %v4630_v44  ;;  %v893_v44 = vld [vmem:[#allocation7] sm:$0xf] }
 0x246   : > { %6366 = vst [vmem:[#allocation30_spill] sm:$0xff] %v5776_v24  ;;  %2115 = vmatprep.mubr.f32.mxu1 %v4631_v11  ;;  %v6316_v24 = vsub.s32 0, %v5780_v3 }
 0x248   : > { %v5782_v59 = vpop.f32.mrb[58].mxu1 }
 0x249   : > { %6368 = vst [vmem:[#allocation32_spill] sm:$0xff] %v5782_v59  ;;  %v5784_v7 = vpop.f32.mrb[59].mxu1  ;;  %2116 = vmatmul.mubr.f32.gmra.mrb[100].mxu1 %v4632_v33  ;;  %v4635_v59 = vld [vmem:[%s5195_s13 + $0x3d8] sm:$0xff]  ;;  %v5798_v33 = vrot.slane %v893_v44, %v6316_v24 }
 0x24a   : > { %6369 = vst [vmem:[#allocation33_spill] sm:$0xff] %v5784_v7  ;;  %2121 = vmatprep.mubr.f32.mxu1 %v4633_v46 }
 0x24c   : > { %v5789_v31 = vpop.f32.mrb[60].mxu1 }
 0x24d   : > { %6370 = vst [vmem:[#allocation34_spill] sm:$0xff] %v5789_v31  ;;  %v5792_v11 = vpop.f32.mrb[61].mxu1  ;;  %2122 = vmatmul.mubr.f32.gmra.mrb[102].mxu1 %v4634_v58  ;;  %v5804_v31 = vrot.slane %v893_v44, %v6317_v27  ;;  %v4639_v27 = vld [vmem:[%s5195_s13 + $0x438] sm:$0xff] }
 0x24e   : > { %6371 = vst [vmem:[#allocation35_spill] sm:$0xff] %v5792_v11  ;;  %2127 = vmatprep.mubr.f32.mxu1 %v4635_v59  ;;  %v4637_v11 = vld [vmem:[%s5195_s13 + $0x408] sm:$0xff]  ;;  %v982_v59 = vadd.f32 %v5586_v4, %v5798_v33 }
 0x24f   : > { %v984_v58 = vadd.f32 %v5589_v15, %v5804_v31  ;;  %v2650_v15 = vld [vmem:[#allocation8 + $0x208] sm:$0xff] }
 0x250   : > { %v5800_v46 = vpop.f32.mrb[62].mxu1 }
 0x251   : > { %6372 = vst [vmem:[#allocation36_spill] sm:$0xff] %v5800_v46  ;;  %v5806_v7 = vpop.f32.mrb[63].mxu1  ;;  %2128 = vmatmul.mubr.f32.gmra.mrb[104].mxu1 %v4636_v12  ;;  %v988_v12 = vadd.f32 %v5594_v19, %v5798_v33 }
 0x252   : > { %6373 = vst [vmem:[#allocation37_spill] sm:$0xff] %v5806_v7  ;;  %2133 = vmatprep.mubr.f32.mxu1 %v4637_v11  ;;  %v990_v11 = vadd.f32 %v5597_v13, %v5804_v31  ;;  %v994_v13 = vadd.f32 %v5602_v54, %v5798_v33  ;;  %v1000_v54 = vadd.f32 %v5610_v18, %v5798_v33 }
 0x255   : > { %2134 = vmatmul.mubr.f32.gmra.mrb[106].mxu1 %v4638_v29 }
 0x256   : > { %v1495_v24 = vpop.f32.mrb[0].mxu0  ;;  %2139 = vmatprep.mubr.f32.mxu1 %v4639_v27  ;;  %v3918_v27 = vpack.c.bf16 %v2652_v35, %v2650_v15 }
 0x257   : > { %v3983_v46 = vadd.f32 %v1495_v24, %v982_v59  ;;  %v1497_v44 = vpop.f32.mrb[1].mxu0  ;;  %v4641_v59 = vld [vmem:[%s5195_s13 + $0x468] sm:$0xff] }
 0x258   : > { %v3985_v3 = vadd.f32 %v1497_v44, %v984_v58  ;;  %v2649_v58 = vld [vmem:[#allocation8 + $0x200] sm:$0xff]  ;;  %v2651_v44 = vld [vmem:[#allocation8 + $0x210] sm:$0xff]  ;;  %3919 = vmatprep.subr.bf16.mxu0 %v3918_v27 }
 0x259   : > { %2140 = vmatmul.mubr.f32.gmra.mrb[108].mxu1 %v4640_v49  ;;  %v2457_v63 = vmax.f32 %v3983_v46, 0.0  ;;  %v3920_v21 = vpack.c.bf16 %v2651_v44, %v2649_v58  ;;  %v996_v49 = vadd.f32 %v5605_v8, %v5804_v31  ;;  %v1002_v8 = vadd.f32 %v5613_v0, %v5804_v31 }
 0x25a   : > { %v2458_v7 = vmax.f32 %v3985_v3, 0.0  ;;  %v1501_v4 = vpop.f32.mrb[2].mxu0  ;;  %2145 = vmatprep.mubr.f32.mxu1 %v4641_v59  ;;  %v4644_v59 = vld [vmem:[%s5195_s13 + $0x490] sm:$0xff]  ;;  %v1006_v0 = vadd.f32 %v5618_v25, %v5798_v33  ;;  %v1012_v25 = vadd.f32 %v5626_v34, %v5798_v33 }
 0x25b   : > { %v3987_v29 = vadd.f32 %v1501_v4, %v988_v12  ;;  %v1503_v24 = vpop.f32.mrb[3].mxu0  ;;  %v4642_v12 = vld [vmem:[%s5195_s13 + $0x460] sm:$0xff] }
 0x25c   : > { %v3989_v19 = vadd.f32 %v1503_v24, %v990_v11  ;;  %2789 = vmatprep.mubr.f32.mxu0 %v2458_v7  ;;  %v4643_v11 = vld [vmem:[%s5195_s13 + $0x498] sm:$0xff] }
 0x25d   : > { %2790 = vmatmul.mubr.f32.vlgmr.msra.gmra.mrb[64].mxu0 %v2457_v63  ;;  %2146 = vmatmul.mubr.f32.gmra.mrb[110].mxu1 %v4642_v12  ;;  %v2461_v35 = vmax.f32 %v3987_v29, 0.0  ;;  %v2656_v29 = vld [vmem:[#allocation8 + $0x238] sm:$0xff]  ;;  %v1008_v12 = vadd.f32 %v5621_v14, %v5804_v31  ;;  %v1014_v14 = vadd.f32 %v5629_v16, %v5804_v31  ;;  %v1018_v16 = vadd.f32 %v5634_v40, %v5798_v33 }
 0x25e   : > { %v2462_v3 = vmax.f32 %v3989_v19, 0.0  ;;  %v1507_v46 = vpop.f32.mrb[4].mxu0  ;;  %3921 = vmatpush1.bf16.msra.mxu0 %v3920_v21  ;;  %2151 = vmatprep.mubr.f32.mxu1 %v4643_v11  ;;  %v2654_v21 = vld [vmem:[#allocation8 + $0x228] sm:$0xff]  ;;  %v1024_v40 = vadd.f32 %v5642_v48, %v5798_v33 }
 0x25f   : > { %v3991_v4 = vadd.f32 %v1507_v46, %v994_v13  ;;  %v1509_v15 = vpop.f32.mrb[5].mxu0  ;;  %v4645_v19 = vld [vmem:[%s5195_s13 + $0x4c8] sm:$0xff]  ;;  %v3922_v13 = vpack.c.bf16 %v2656_v29, %v2654_v21  ;;  %v4648_v21 = vld [vmem:[%s5195_s13 + $0x4f0] sm:$0xff] }
 0x260   : > { %v3993_v7 = vadd.f32 %v1509_v15, %v996_v49  ;;  %2795 = vmatprep.mubr.f32.mxu0 %v2462_v3  ;;  %v2653_v49 = vld [vmem:[#allocation8 + $0x220] sm:$0xff]  ;;  %v2655_v3 = vld [vmem:[#allocation8 + $0x230] sm:$0xff]  ;;  %v2658_v29 = vld [vmem:[#allocation8 + $0x248] sm:$0xff] }
 0x261   : > { %2796 = vmatmul.mubr.f32.gmra.mrb[66].mxu0 %v2461_v35  ;;  %2152 = vmatmul.mubr.f32.gmra.mrb[112].mxu1 %v4644_v59  ;;  %v2465_v27 = vmax.f32 %v3991_v4, 0.0  ;;  %v3924_v46 = vpack.c.bf16 %v2655_v3, %v2653_v49  ;;  %v4646_v15 = vld [vmem:[%s5195_s13 + $0x4c0] sm:$0xff] }
 0x262   : > { %v2466_v63 = vmax.f32 %v3993_v7, 0.0  ;;  %v1513_v24 = vpop.f32.mrb[6].mxu0  ;;  %2157 = vmatprep.mubr.f32.mxu1 %v4645_v19  ;;  %3923 = vmatprep.subr.bf16.mxu0 %v3922_v13  ;;  %v4649_v13 = vld [vmem:[%s5195_s13 + $0x528] sm:$0xff] }
 0x263   : > { %v3995_v58 = vadd.f32 %v1513_v24, %v1000_v54  ;;  %v1515_v44 = vpop.f32.mrb[7].mxu0  ;;  %3925 = vmatpush1.bf16.msra.mxu0 %v3924_v46  ;;  %v2657_v3 = vld [vmem:[#allocation8 + $0x240] sm:$0xff] }
 0x264   : > { %v3997_v18 = vadd.f32 %v1515_v44, %v1002_v8  ;;  %2801 = vmatprep.mubr.f32.mxu0 %v2466_v63  ;;  %v4647_v8 = vld [vmem:[%s5195_s13 + $0x4f8] sm:$0xff] }
 0x265   : > { %2802 = vmatmul.mubr.f32.gmra.mrb[68].mxu0 %v2465_v27  ;;  %2158 = vmatmul.mubr.f32.gmra.mrb[114].mxu1 %v4646_v15  ;;  %v2469_v11 = vmax.f32 %v3995_v58, 0.0  ;;  %v2660_v27 = vld [vmem:[#allocation8 + $0x258] sm:$0xff] }
 0x266   : > { %v2470_v35 = vmax.f32 %v3997_v18, 0.0  ;;  %v1519_v4 = vpop.f32.mrb[8].mxu0  ;;  %2163 = vmatprep.mubr.f32.mxu1 %v4647_v8  ;;  %v3926_v49 = vpack.c.bf16 %v2660_v27, %v2658_v29  ;;  %v2659_v18 = vld [vmem:[#allocation8 + $0x250] sm:$0xff] }
 0x267   : > { %v3999_v7 = vadd.f32 %v1519_v4, %v1006_v0  ;;  %v1521_v54 = vpop.f32.mrb[9].mxu0  ;;  %v3928_v46 = vpack.c.bf16 %v2659_v18, %v2657_v3  ;;  %v1020_v0 = vadd.f32 %v5637_v62, %v5804_v31  ;;  %v4650_v4 = vld [vmem:[%s5195_s13 + $0x520] sm:$0xff]  ;;  %v1026_v62 = vadd.f32 %v5645_v22, %v5804_v31 }
 0x268   : > { %v4001_v63 = vadd.f32 %v1521_v54, %v1008_v12  ;;  %2807 = vmatprep.mubr.f32.mxu0 %v2470_v35  ;;  %3927 = vmatprep.subr.bf16.mxu0 %v3926_v49  ;;  %v4651_v54 = vld [vmem:[%s5195_s13 + $0x558] sm:$0xff]  ;;  %v1030_v22 = vadd.f32 %v5650_v57, %v5798_v33  ;;  %v1032_v3 = vadd.f32 %v5653_v37, %v5804_v31 }
 0x269   : > { %2808 = vmatmul.mubr.f32.gmra.mrb[70].mxu0 %v2469_v11  ;;  %2164 = vmatmul.mubr.f32.gmra.mrb[116].mxu1 %v4648_v21  ;;  %v2473_v58 = vmax.f32 %v3999_v7, 0.0  ;;  %v1036_v57 = vadd.f32 %v5658_v2, %v5798_v33  ;;  %v1038_v37 = vadd.f32 %v5661_v56, %v5804_v31  ;;  %v1042_v56 = vadd.f32 %v5666_v47, %v5798_v33  ;;  %v2671_v47 = vld [vmem:[#allocation8 + $0x2b0] sm:$0xff] }
 0x26a   : > { %v2474_v24 = vmax.f32 %v4001_v63, 0.0  ;;  %v1525_v59 = vpop.f32.mrb[10].mxu0  ;;  %2169 = vmatprep.mubr.f32.mxu1 %v4649_v13  ;;  %3929 = vmatpush1.bf16.msra.mxu0 %v3928_v46  ;;  %v2663_v13 = vld [vmem:[#allocation8 + $0x270] sm:$0xff]  ;;  %v4654_v46 = vld [vmem:[%s5195_s13 + $0x580] sm:$0xff] }
 0x26b   : > { %v4003_v44 = vadd.f32 %v1525_v59, %v1012_v25  ;;  %v1527_v19 = vpop.f32.mrb[11].mxu0  ;;  %v2664_v59 = vld [vmem:[#allocation8 + $0x278] sm:$0xff] }
 0x26c   : > { %v4005_v34 = vadd.f32 %v1527_v19, %v1014_v14  ;;  %2813 = vmatprep.mubr.f32.mxu0 %v2474_v24  ;;  %v4652_v14 = vld [vmem:[%s5195_s13 + $0x550] sm:$0xff]  ;;  %v2661_v19 = vld [vmem:[#allocation8 + $0x260] sm:$0xff] }
 0x26d   : > { %2814 = vmatmul.mubr.f32.gmra.mrb[72].mxu0 %v2473_v58  ;;  %2170 = vmatmul.mubr.f32.gmra.mrb[118].mxu1 %v4650_v4  ;;  %v2477_v15 = vmax.f32 %v4003_v44, 0.0  ;;  %v2662_v24 = vld [vmem:[#allocation8 + $0x268] sm:$0xff]  ;;  %v3932_v49 = vpack.c.bf16 %v2663_v13, %v2661_v19  ;;  %v2672_v13 = vld [vmem:[#allocation8 + $0x2b8] sm:$0xff] }
 0x26e   : > { %v2478_v12 = vmax.f32 %v4005_v34, 0.0  ;;  %v1531_v35 = vpop.f32.mrb[12].mxu0  ;;  %2175 = vmatprep.mubr.f32.mxu1 %v4651_v54  ;;  %v4653_v58 = vld [vmem:[%s5195_s13 + $0x588] sm:$0xff]  ;;  %v3930_v44 = vpack.c.bf16 %v2664_v59, %v2662_v24  ;;  %v2667_v59 = vld [vmem:[#allocation8 + $0x290] sm:$0xff] }
 0x26f   : > { %v4007_v11 = vadd.f32 %v1531_v35, %v1018_v16  ;;  %v1533_v7 = vpop.f32.mrb[13].mxu0  ;;  %v4655_v35 = vld [vmem:[%s5195_s13 + $0x5b8] sm:$0xff]  ;;  %v2666_v54 = vld [vmem:[#allocation8 + $0x288] sm:$0xff]  ;;  %v2665_v24 = vld [vmem:[#allocation8 + $0x280] sm:$0xff] }
 0x270   : > { %v4009_v8 = vadd.f32 %v1533_v7, %v1020_v0  ;;  %2819 = vmatprep.mubr.f32.mxu0 %v2478_v12  ;;  %3931 = vmatprep.subr.bf16.mxu0 %v3930_v44  ;;  %v4656_v7 = vld [vmem:[%s5195_s13 + $0x5b0] sm:$0xff]  ;;  %v4658_v44 = vld [vmem:[%s5195_s13 + $0x5e0] sm:$0xff] }
 0x271   : > { %2820 = vmatmul.mubr.f32.gmra.mrb[74].mxu0 %v2477_v15  ;;  %2176 = vmatmul.mubr.f32.gmra.mrb[120].mxu1 %v4652_v14  ;;  %v2481_v21 = vmax.f32 %v4007_v11, 0.0  ;;  %v2670_v19 = vld [vmem:[#allocation8 + $0x2a8] sm:$0xff] }
 0x272   : > { %v2482_v63 = vmax.f32 %v4009_v8, 0.0  ;;  %v1537_v25 = vpop.f32.mrb[14].mxu0  ;;  %2181 = vmatprep.mubr.f32.mxu1 %v4653_v58  ;;  %3933 = vmatpush1.bf16.msra.mxu0 %v3932_v49  ;;  %v2668_v8 = vld [vmem:[#allocation8 + $0x298] sm:$0xff] }
 0x273   : > { %v4011_v29 = vadd.f32 %v1537_v25, %v1024_v40  ;;  %v1539_v27 = vpop.f32.mrb[15].mxu0  ;;  %v4657_v25 = vld [vmem:[%s5195_s13 + $0x5e8] sm:$0xff]  ;;  %v3934_v14 = vpack.c.bf16 %v2668_v8, %v2666_v54  ;;  %v4660_v8 = vld [vmem:[%s5195_s13 + $0x20] sm:$0xff] }
 0x274   : > { %v4013_v48 = vadd.f32 %v1539_v27, %v1026_v62  ;;  %2825 = vmatprep.mubr.f32.mxu0 %v2482_v63 }
 0x275   : > { %2826 = vmatmul.mubr.f32.gmra.mrb[76].mxu0 %v2481_v21  ;;  %2182 = vmatmul.mubr.f32.gmra.mrb[122].mxu1 %v4654_v46  ;;  %v2485_v16 = vmax.f32 %v4011_v29, 0.0  ;;  %v3936_v21 = vpack.c.bf16 %v2667_v59, %v2665_v24  ;;  %v1044_v29 = vadd.f32 %v5668_v10, %v5804_v31  ;;  %v2674_v46 = vld [vmem:[#allocation8 + $0x2c8] sm:$0xff]  ;;  %v2677_v24 = vld [vmem:[#allocation8 + $0x2e0] sm:$0xff]  ;;  %v2679_v59 = vld [vmem:[#allocation8 + $0x2f0] sm:$0xff] }
 0x276   : > { %v2486_v18 = vmax.f32 %v4013_v48, 0.0  ;;  %v1543_v34 = vpop.f32.mrb[16].mxu0  ;;  %2187 = vmatprep.mubr.f32.mxu1 %v4655_v35  ;;  %3935 = vmatprep.subr.bf16.mxu0 %v3934_v14  ;;  %v2669_v48 = vld [vmem:[#allocation8 + $0x2a0] sm:$0xff]  ;;  %v4661_v14 = vld [vmem:[%s5195_s13 + $0x58] sm:$0xff] }
 0x277   : > { %v4015_v0 = vadd.f32 %v1543_v34, %v1030_v22  ;;  %v1545_v12 = vpop.f32.mrb[17].mxu0  ;;  %3937 = vmatpush1.bf16.msra.mxu0 %v3936_v21  ;;  %v3938_v34 = vpack.c.bf16 %v2672_v13, %v2670_v19  ;;  %v3940_v10 = vpack.c.bf16 %v2671_v47, %v2669_v48  ;;  %v2673_v35 = vld [vmem:[#allocation8 + $0x2c0] sm:$0xff]  ;;  %v2684_v21 = vld [vmem:[#allocation8 + $0x318] sm:$0xff]  ;;  %v3948_v19 = vpack.c.bf16 %v2679_v59, %v2677_v24 }
 0x278   : > { %v4017_v4 = vadd.f32 %v1545_v12, %v1032_v3  ;;  %2831 = vmatprep.mubr.f32.mxu0 %v2486_v18  ;;  %v4659_v18 = vld [vmem:[%s5195_s13 + $0x28] sm:$0xff]  ;;  %v2688_v47 = vld [vmem:[#allocation8 + $0x338] sm:$0xff] }
 0x279   : > { %2832 = vmatmul.mubr.f32.gmra.mrb[78].mxu0 %v2485_v16  ;;  %2188 = vmatmul.mubr.f32.gmra.mrb[124].mxu1 %v4656_v7  ;;  %v2489_v40 = vmax.f32 %v4015_v0, 0.0  ;;  %v2676_v16 = vld [vmem:[#allocation8 + $0x2d8] sm:$0xff] }
 0x27a   : > { %v2490_v15 = vmax.f32 %v4017_v4, 0.0  ;;  %v1549_v11 = vpop.f32.mrb[18].mxu0  ;;  %2193 = vmatprep.mubr.f32.mxu1 %v4657_v25  ;;  %v3942_v12 = vpack.c.bf16 %v2676_v16, %v2674_v46  ;;  %v2675_v4 = vld [vmem:[#allocation8 + $0x2d0] sm:$0xff]  ;;  %3939 = vmatprep.subr.bf16.mxu0 %v3938_v34  ;;  %v1060_v46 = vadd.f32 %v5684_v52, %v5798_v33  ;;  %v1062_v16 = vadd.f32 %v5686_v39, %v5804_v31  ;;  %v2690_v39 = vld [vmem:[#allocation8 + $0x348] sm:$0xff] }
 0x27b   : > { %v4019_v62 = vadd.f32 %v1549_v11, %v1036_v57  ;;  %v1551_v63 = vpop.f32.mrb[19].mxu0  ;;  %v2678_v57 = vld [vmem:[#allocation8 + $0x2e8] sm:$0xff]  ;;  %v1050_v11 = vadd.f32 %v5674_v50, %v5804_v31  ;;  %3941 = vmatpush1.bf16.msra.mxu0 %v3940_v10  ;;  %v2687_v52 = vld [vmem:[#allocation8 + $0x330] sm:$0xff] }
 0x27c   : > { %v4021_v2 = vadd.f32 %v1551_v63, %v1038_v37  ;;  %2837 = vmatprep.mubr.f32.mxu0 %v2490_v15  ;;  %v1048_v37 = vadd.f32 %v5672_v5, %v5798_v33  ;;  %v2680_v15 = vld [vmem:[#allocation8 + $0x2f8] sm:$0xff]  ;;  %3943 = vmatprep.subr.bf16.mxu0 %v3942_v12  ;;  %v2682_v50 = vld [vmem:[#allocation8 + $0x308] sm:$0xff] }
 0x27d   : > { %2838 = vmatmul.mubr.f32.gmra.mrb[80].mxu0 %v2489_v40  ;;  %2194 = vmatmul.mubr.f32.gmra.mrb[126].mxu1 %v4658_v44  ;;  %v2493_v49 = vmax.f32 %v4019_v62, 0.0  ;;  %v3944_v40 = vpack.c.bf16 %v2675_v4, %v2673_v35  ;;  %v3946_v5 = vpack.c.bf16 %v2680_v15, %v2678_v57  ;;  %v4662_v44 = vld [vmem:[%s5195_s13 + $0x50] sm:$0xff]  ;;  %v4664_v12 = vld [vmem:[%s5195_s13 + $0x80] sm:$0xff]  ;;  %v4665_v15 = vld [vmem:[%s5195_s13 + $0xb8] sm:$0xff] }
 0x27e   : > { %v2494_v27 = vmax.f32 %v4021_v2, 0.0  ;;  %v1555_v58 = vpop.f32.mrb[20].mxu0  ;;  %2264 = vmatprep.mubr.f32.mxu1 %v4659_v18  ;;  %v2681_v18 = vld [vmem:[#allocation8 + $0x300] sm:$0xff] }
 0x27f   : > { %v4023_v22 = vadd.f32 %v1555_v58, %v1042_v56  ;;  %v1557_v3 = vpop.f32.mrb[21].mxu0  ;;  %v1054_v56 = vadd.f32 %v5678_v20, %v5798_v33  ;;  %3945 = vmatpush1.bf16.msra.mxu0 %v3944_v40  ;;  %v2683_v20 = vld [vmem:[#allocation8 + $0x310] sm:$0xff]  ;;  %v1066_v40 = vadd.f32 %v5690_v38, %v5798_v33 }
 0x280   : > { %v4025_v0 = vadd.f32 %v1557_v3, %v1044_v29  ;;  %2843 = vmatprep.mubr.f32.mxu0 %v2494_v27  ;;  %v1056_v29 = vadd.f32 %v5680_v30, %v5804_v31  ;;  %3947 = vmatprep.subr.bf16.mxu0 %v3946_v5  ;;  %v3950_v3 = vpack.c.bf16 %v2684_v21, %v2682_v50  ;;  %v2686_v30 = vld [vmem:[#allocation8 + $0x328] sm:$0xff]  ;;  %v2691_v38 = vld [vmem:[#allocation8 + $0x350] sm:$0xff] }
 0x281   : > { %2844 = vmatmul.mubr.f32.gmra.mrb[82].mxu0 %v2493_v49  ;;  %2265 = vmatmul.mubr.f32.vlgmr.msra.gmra.mrb[64].mxu1 %v4660_v8  ;;  %v2497_v62 = vmax.f32 %v4023_v22, 0.0  ;;  %v4663_v22 = vld [vmem:[%s5195_s13 + $0x88] sm:$0xff]  ;;  %v3952_v35 = vpack.c.bf16 %v2683_v20, %v2681_v18  ;;  %v2692_v8 = vld [vmem:[#allocation8 + $0x358] sm:$0xff] }
 0x282   : > { %v2498_v7 = vmax.f32 %v4025_v0, 0.0  ;;  %v1561_v54 = vpop.f32.mrb[22].mxu0  ;;  %2270 = vmatprep.mubr.f32.mxu1 %v4661_v14  ;;  %v4666_v14 = vld [vmem:[%s5195_s13 + $0xb0] sm:$0xff]  ;;  %v4667_v50 = vld [vmem:[%s5195_s13 + $0xe8] sm:$0xff]  ;;  %v3958_v21 = vpack.c.bf16 %v2692_v8, %v2690_v39  ;;  %v4669_v20 = vld [vmem:[%s5195_s13 + $0x118] sm:$0xff]  ;;  %v1084_v8 = vadd.f32 %v5708_v61, %v5798_v33 }
 0x283   : > { %v4027_v63 = vadd.f32 %v1561_v54, %v1048_v37  ;;  %v1563_v25 = vpop.f32.mrb[23].mxu0  ;;  %3949 = vmatpush1.bf16.msra.mxu0 %v3948_v19  ;;  %v2704_v39 = vld [vmem:[#allocation8 + $0x3b8] sm:$0xff]  ;;  %v2703_v61 = vld [vmem:[#allocation8 + $0x3b0] sm:$0xff] }
 0x284   : > { %v4029_v2 = vadd.f32 %v1563_v25, %v1050_v11  ;;  %2849 = vmatprep.mubr.f32.mxu0 %v2498_v7  ;;  %3951 = vmatprep.subr.bf16.mxu0 %v3950_v3  ;;  %v3954_v11 = vpack.c.bf16 %v2688_v47, %v2686_v30  ;;  %v2685_v7 = vld [vmem:[#allocation8 + $0x320] sm:$0xff] }
 0x285   : > { %2850 = vmatmul.mubr.f32.gmra.mrb[84].mxu0 %v2497_v62  ;;  %2271 = vmatmul.mubr.f32.gmra.mrb[66].mxu1 %v4662_v44  ;;  %v2501_v13 = vmax.f32 %v4027_v63, 0.0  ;;  %v1068_v62 = vadd.f32 %v5692_v32, %v5804_v31  ;;  %v3956_v5 = vpack.c.bf16 %v2687_v52, %v2685_v7  ;;  %v2694_v32 = vld [vmem:[#allocation8 + $0x368] sm:$0xff]  ;;  %v1074_v44 = vadd.f32 %v5698_v9, %v5804_v31  ;;  %v2693_v30 = vld [vmem:[#allocation8 + $0x360] sm:$0xff] }
 0x286   : > { %v2502_v27 = vmax.f32 %v4029_v2, 0.0  ;;  %v1567_v58 = vpop.f32.mrb[24].mxu0  ;;  %2276 = vmatprep.mubr.f32.mxu1 %v4663_v22  ;;  %v2698_v9 = vld [vmem:[#allocation8 + $0x388] sm:$0xff]  ;;  %v2697_v52 = vld [vmem:[#allocation8 + $0x380] sm:$0xff] }
 0x287   : > { %v4031_v48 = vadd.f32 %v1567_v58, %v1054_v56  ;;  %v1569_v49 = vpop.f32.mrb[25].mxu0  ;;  %3953 = vmatpush1.bf16.msra.mxu0 %v3952_v35  ;;  %v2689_v56 = vld [vmem:[#allocation8 + $0x340] sm:$0xff]  ;;  %v1072_v58 = vadd.f32 %v5696_v55, %v5798_v33  ;;  %v2695_v55 = vld [vmem:[#allocation8 + $0x370] sm:$0xff] }
 0x288   : > { %v4033_v34 = vadd.f32 %v1569_v49, %v1056_v29  ;;  %2855 = vmatprep.mubr.f32.mxu0 %v2502_v27  ;;  %3955 = vmatprep.subr.bf16.mxu0 %v3954_v11  ;;  %v2696_v27 = vld [vmem:[#allocation8 + $0x378] sm:$0xff]  ;;  %v3960_v49 = vpack.c.bf16 %v2691_v38, %v2689_v56  ;;  %v4670_v35 = vld [vmem:[%s5195_s13 + $0x110] sm:$0xff]  ;;  %v4671_v11 = vld [vmem:[%s5195_s13 + $0x148] sm:$0xff] }
 0x289   : > { %2856 = vmatmul.mubr.f32.gmra.mrb[86].mxu0 %v2501_v13  ;;  %2277 = vmatmul.mubr.f32.gmra.mrb[68].mxu1 %v4664_v12  ;;  %v2505_v4 = vmax.f32 %v4031_v48, 0.0  ;;  %v4668_v48 = vld [vmem:[%s5195_s13 + $0xe0] sm:$0xff] }
 0x28a   : > { %v2506_v0 = vmax.f32 %v4033_v34, 0.0  ;;  %v1573_v10 = vpop.f32.mrb[26].mxu0  ;;  %2282 = vmatprep.mubr.f32.mxu1 %v4665_v15  ;;  %v3962_v34 = vpack.c.bf16 %v2696_v27, %v2694_v32  ;;  %v2708_v38 = vld [vmem:[#allocation8 + $0x3d8] sm:$0xff]  ;;  %v1092_v32 = vadd.f32 %v5716_v1, %v5804_v31  ;;  %v2710_v1 = vld [vmem:[#allocation8 + $0x3e8] sm:$0xff] }
 0x28b   : > { %v4035_v57 = vadd.f32 %v1573_v10, %v1060_v46  ;;  %v1575_v37 = vpop.f32.mrb[27].mxu0  ;;  %3957 = vmatpush1.bf16.msra.mxu0 %v3956_v5  ;;  %v2700_v46 = vld [vmem:[#allocation8 + $0x398] sm:$0xff] }
 0x28c   : > { %v4037_v54 = vadd.f32 %v1575_v37, %v1062_v16  ;;  %2861 = vmatprep.mubr.f32.mxu0 %v2506_v0  ;;  %3959 = vmatprep.subr.bf16.mxu0 %v3958_v21  ;;  %v1078_v16 = vadd.f32 %v5702_v23, %v5798_v33  ;;  %v1080_v0 = vadd.f32 %v5704_v36, %v5804_v31  ;;  %v2699_v23 = vld [vmem:[#allocation8 + $0x390] sm:$0xff]  ;;  %v2702_v36 = vld [vmem:[#allocation8 + $0x3a8] sm:$0xff]  ;;  %v2701_v21 = vld [vmem:[#allocation8 + $0x3a0] sm:$0xff] }
 0x28d   : > { %2862 = vmatmul.mubr.f32.gmra.mrb[88].mxu0 %v2505_v4  ;;  %2283 = vmatmul.mubr.f32.gmra.mrb[70].mxu1 %v4666_v14  ;;  %v2509_v24 = vmax.f32 %v4035_v57, 0.0  ;;  %v3964_v4 = vpack.c.bf16 %v2695_v55, %v2693_v30  ;;  %v3966_v7 = vpack.c.bf16 %v2700_v46, %v2698_v9  ;;  %v3968_v14 = vpack.c.bf16 %v2699_v23, %v2697_v52  ;;  %v4676_v46 = vld [vmem:[%s5195_s13 + $0x1a0] sm:$0xff] }
 0x28e   : > { %v2510_v63 = vmax.f32 %v4037_v54, 0.0  ;;  %v1579_v25 = vpop.f32.mrb[28].mxu0  ;;  %2288 = vmatprep.mubr.f32.mxu1 %v4667_v50  ;;  %v3970_v50 = vpack.c.bf16 %v2704_v39, %v2702_v36  ;;  %v1096_v30 = vadd.f32 %v5720_v17, %v5798_v33  ;;  %v1098_v55 = vadd.f32 %v5722_v6, %v5804_v31 }
 0x28f   : > { %v4039_v59 = vadd.f32 %v1579_v25, %v1066_v40  ;;  %v1581_v2 = vpop.f32.mrb[29].mxu0  ;;  %3961 = vmatpush1.bf16.msra.mxu0 %v3960_v49  ;;  %v1086_v40 = vadd.f32 %v5710_v41, %v5804_v31  ;;  %v4672_v25 = vld [vmem:[%s5195_s13 + $0x140] sm:$0xff]  ;;  %v2706_v41 = vld [vmem:[#allocation8 + $0x3c8] sm:$0xff]  ;;  %v1102_v6 = vadd.f32 %v5726_v43, %v5798_v33  ;;  %v1108_v43 = vadd.f32 %v5732_v45, %v5798_v33 }
 0x290   : > { %v4041_v29 = vadd.f32 %v1581_v2, %v1068_v62  ;;  %2867 = vmatprep.mubr.f32.mxu0 %v2510_v63  ;;  %3963 = vmatprep.subr.bf16.mxu0 %v3962_v34  ;;  %v4673_v2 = vld [vmem:[%s5195_s13 + $0x178] sm:$0xff]  ;;  %v1114_v45 = vadd.f32 %v5738_v26, %v5798_v33 }
 0x291   : > { %2868 = vmatmul.mubr.f32.gmra.mrb[90].mxu0 %v2509_v24  ;;  %2289 = vmatmul.mubr.f32.gmra.mrb[72].mxu1 %v4668_v48  ;;  %v2513_v22 = vmax.f32 %v4039_v59, 0.0  ;;  %v2712_v34 = vld [vmem:[#allocation8 + $0x3f8] sm:$0xff] }
 0x292   : > { %v2514_v19 = vmax.f32 %v4041_v29, 0.0  ;;  %v1585_v13 = vpop.f32.mrb[30].mxu0  ;;  %2294 = vmatprep.mubr.f32.mxu1 %v4669_v20  ;;  %v1090_v29 = vadd.f32 %v5714_v51, %v5798_v33  ;;  %v2707_v51 = vld [vmem:[#allocation8 + $0x3d0] sm:$0xff] }
 0x293   : > { %v4043_v3 = vadd.f32 %v1585_v13, %v1072_v58  ;;  %v1587_v18 = vpop.f32.mrb[31].mxu0  ;;  %3965 = vmatpush1.bf16.msra.mxu0 %v3964_v4  ;;  %v3978_v4 = vpack.c.bf16 %v2712_v34, %v2710_v1  ;;  %v4686_v1 = vld [vmem:[%s5195_s13 + $0x290] sm:$0xff] }
 0x294   : > { %v4045_v47 = vadd.f32 %v1587_v18, %v1074_v44  ;;  %2873 = vmatprep.mubr.f32.mxu0 %v2514_v19  ;;  %3967 = vmatprep.subr.bf16.mxu0 %v3966_v7  ;;  %v4674_v44 = vld [vmem:[%s5195_s13 + $0x170] sm:$0xff]  ;;  %v3972_v19 = vpack.c.bf16 %v2703_v61, %v2701_v21  ;;  %v2705_v18 = vld [vmem:[#allocation8 + $0x3c0] sm:$0xff] }
 0x295   : > { %2874 = vmatmul.mubr.f32.gmra.mrb[92].mxu0 %v2513_v22  ;;  %2295 = vmatmul.mubr.f32.gmra.mrb[74].mxu1 %v4670_v35  ;;  %v2517_v57 = vmax.f32 %v4043_v3, 0.0  ;;  %v4675_v22 = vld [vmem:[%s5195_s13 + $0x1a8] sm:$0xff]  ;;  %v3974_v3 = vpack.c.bf16 %v2708_v38, %v2706_v41  ;;  %v4677_v35 = vld [vmem:[%s5195_s13 + $0x1d8] sm:$0xff] }
 0x296   : > { %v2518_v10 = vmax.f32 %v4045_v47, 0.0  ;;  %v1591_v12 = vpop.f32.mrb[32].mxu0  ;;  %2300 = vmatprep.mubr.f32.mxu1 %v4671_v11  ;;  %v4678_v11 = vld [vmem:[%s5195_s13 + $0x1d0] sm:$0xff]  ;;  %v6374_v38 = vld [vmem:[#allocation20_spill] sm:$0xff] }
 0x297   : > { %v4047_v37 = vadd.f32 %v1591_v12, %v1078_v16  ;;  %v1593_v15 = vpop.f32.mrb[33].mxu0  ;;  %3969 = vmatpush1.bf16.msra.mxu0 %v3968_v14  ;;  %v3976_v16 = vpack.c.bf16 %v2707_v51, %v2705_v18  ;;  %v4681_v14 = vld [vmem:[%s5195_s13 + $0x238] sm:$0xff]  ;;  %v1120_v26 = vadd.f32 %v6374_v38, %v5798_v33 }
 0x298   : > { %v4049_v54 = vadd.f32 %v1593_v15, %v1080_v0  ;;  %2879 = vmatprep.mubr.f32.mxu0 %v2518_v10  ;;  %3971 = vmatprep.subr.bf16.mxu0 %v3970_v50 }
 0x299   : > { %2880 = vmatmul.mubr.f32.gmra.mrb[94].mxu0 %v2517_v57  ;;  %2301 = vmatmul.mubr.f32.gmra.mrb[76].mxu1 %v4672_v25  ;;  %v2521_v5 = vmax.f32 %v4047_v37, 0.0  ;;  %v1104_v57 = vadd.f32 %v5728_v60, %v5804_v31  ;;  %v1110_v60 = vadd.f32 %v5734_v53, %v5804_v31  ;;  %v1116_v53 = vadd.f32 %v5740_v28, %v5804_v31 }
 0x29a   : > { %v2522_v62 = vmax.f32 %v4049_v54, 0.0  ;;  %v1597_v63 = vpop.f32.mrb[34].mxu0  ;;  %2306 = vmatprep.mubr.f32.mxu1 %v4673_v2  ;;  %v4679_v54 = vld [vmem:[%s5195_s13 + $0x208] sm:$0xff]  ;;  %v4682_v2 = vld [vmem:[%s5195_s13 + $0x230] sm:$0xff] }
 0x29b   : > { %v4051_v24 = vadd.f32 %v1597_v63, %v1084_v8  ;;  %v1599_v59 = vpop.f32.mrb[35].mxu0  ;;  %3973 = vmatpush1.bf16.msra.mxu0 %v3972_v19 }
 0x29c   : > { %v4053_v56 = vadd.f32 %v1599_v59, %v1086_v40  ;;  %2885 = vmatprep.mubr.f32.mxu0 %v2522_v62  ;;  %3975 = vmatprep.subr.bf16.mxu0 %v3974_v3  ;;  %v4680_v40 = vld [vmem:[%s5195_s13 + $0x200] sm:$0xff]  ;;  %v6376_v3 = vld [vmem:[#allocation22_spill] sm:$0xff] }
 0x29d   : > { %2886 = vmatmul.mubr.f32.gmra.mrb[96].mxu0 %v2521_v5  ;;  %2307 = vmatmul.mubr.f32.gmra.mrb[78].mxu1 %v4674_v44  ;;  %v2525_v13 = vmax.f32 %v4051_v24, 0.0  ;;  %v1128_v18 = vadd.f32 %v6376_v3, %v5804_v31 }
 0x29e   : > { %v2526_v27 = vmax.f32 %v4053_v56, 0.0  ;;  %v1603_v58 = vpop.f32.mrb[36].mxu0  ;;  %2312 = vmatprep.mubr.f32.mxu1 %v4675_v22  ;;  %v4683_v56 = vld [vmem:[%s5195_s13 + $0x268] sm:$0xff]  ;;  %v1126_v22 = vadd.f32 %v5750_v42, %v5798_v33 }
 0x29f   : > { %v4055_v48 = vadd.f32 %v1603_v58, %v1090_v29  ;;  %v1605_v49 = vpop.f32.mrb[37].mxu0  ;;  %3977 = vmatpush1.bf16.msra.mxu0 %v3976_v16  ;;  %v6375_v29 = vld [vmem:[#allocation21_spill] sm:$0xff]  ;;  %v4684_v58 = vld [vmem:[%s5195_s13 + $0x260] sm:$0xff] }
 0x2a0   : > { %v4057_v20 = vadd.f32 %v1605_v49, %v1092_v32  ;;  %2891 = vmatprep.mubr.f32.mxu0 %v2526_v27  ;;  %3979 = vmatprep.subr.bf16.mxu0 %v3978_v4  ;;  %v1122_v28 = vadd.f32 %v6375_v29, %v5804_v31  ;;  %v6378_v16 = vld [vmem:[#allocation24_spill] sm:$0xff] }
 0x2a1   : > { %2892 = vmatmul.mubr.f32.gmra.mrb[98].mxu0 %v2525_v13  ;;  %2313 = vmatmul.mubr.f32.gmra.mrb[80].mxu1 %v4676_v46  ;;  %v2529_v0 = vmax.f32 %v4055_v48, 0.0  ;;  %v4685_v48 = vld [vmem:[%s5195_s13 + $0x298] sm:$0xff] }
 0x2a2   : > { %v2530_v47 = vmax.f32 %v4057_v20, 0.0  ;;  %v1609_v9 = vpop.f32.mrb[38].mxu0  ;;  %2318 = vmatprep.mubr.f32.mxu1 %v4677_v35  ;;  %v6377_v46 = vld [vmem:[#allocation23_spill] sm:$0xff] }
 0x2a3   : > { %v4059_v10 = vadd.f32 %v1609_v9, %v1096_v30  ;;  %v1611_v12 = vpop.f32.mrb[39].mxu0  ;;  %v1132_v42 = vadd.f32 %v6377_v46, %v5798_v33  ;;  %v4688_v35 = vld [vmem:[%s5195_s13 + $0x2c0] sm:$0xff] }
 0x2a4   : > { %v4061_v17 = vadd.f32 %v1611_v12, %v1098_v55  ;;  %2897 = vmatprep.mubr.f32.mxu0 %v2530_v47  ;;  %v4687_v47 = vld [vmem:[%s5195_s13 + $0x2c8] sm:$0xff]  ;;  %v6388_v46 = vld [vmem:[#allocation35_spill] sm:$0xff] }
 0x2a5   : > { %2898 = vmatmul.mubr.f32.gmra.mrb[100].mxu0 %v2529_v0  ;;  %2319 = vmatmul.mubr.f32.gmra.mrb[82].mxu1 %v4678_v11  ;;  %v2533_v7 = vmax.f32 %v4059_v10, 0.0  ;;  %v1134_v0 = vadd.f32 %v6378_v16, %v5804_v31 }
 0x2a6   : > { %v2534_v37 = vmax.f32 %v4061_v17, 0.0  ;;  %v1615_v15 = vpop.f32.mrb[40].mxu0  ;;  %2324 = vmatprep.mubr.f32.mxu1 %v4679_v54 }
 0x2a7   : > { %v4063_v52 = vadd.f32 %v1615_v15, %v1102_v6  ;;  %v1617_v23 = vpop.f32.mrb[41].mxu0  ;;  %v6379_v15 = vld [vmem:[#allocation25_spill] sm:$0xff] }
 0x2a8   : > { %v4065_v36 = vadd.f32 %v1617_v23, %v1104_v57  ;;  %2903 = vmatprep.mubr.f32.mxu0 %v2534_v37  ;;  %v4689_v57 = vld [vmem:[%s5195_s13 + $0x2f8] sm:$0xff]  ;;  %v1138_v11 = vadd.f32 %v6379_v15, %v5798_v33  ;;  %v6390_v15 = vld [vmem:[#allocation37_spill] sm:$0xff] }
 0x2a9   : > { %2904 = vmatmul.mubr.f32.gmra.mrb[102].mxu0 %v2533_v7  ;;  %2325 = vmatmul.mubr.f32.gmra.mrb[84].mxu1 %v4680_v40  ;;  %v2537_v62 = vmax.f32 %v4063_v52, 0.0  ;;  %v6380_v7 = vld [vmem:[#allocation26_spill] sm:$0xff] }
 0x2aa   : > { %v2538_v39 = vmax.f32 %v4065_v36, 0.0  ;;  %v1621_v8 = vpop.f32.mrb[42].mxu0  ;;  %2330 = vmatprep.mubr.f32.mxu1 %v4681_v14  ;;  %v1140_v52 = vadd.f32 %v6380_v7, %v5804_v31  ;;  %v4690_v36 = vld [vmem:[%s5195_s13 + $0x2f0] sm:$0xff] }
 0x2ab   : > { %v4067_v63 = vadd.f32 %v1621_v8, %v1108_v43  ;;  %v1623_v25 = vpop.f32.mrb[43].mxu0  ;;  %v4691_v8 = vld [vmem:[%s5195_s13 + $0x328] sm:$0xff] }
 0x2ac   : > { %v4069_v5 = vadd.f32 %v1623_v25, %v1110_v60  ;;  %2909 = vmatprep.mubr.f32.mxu0 %v2538_v39  ;;  %v6382_v25 = vld [vmem:[#allocation28_spill] sm:$0xff] }
 0x2ad   : > { %2910 = vmatmul.mubr.f32.gmra.mrb[104].mxu0 %v2537_v62  ;;  %2331 = vmatmul.mubr.f32.gmra.mrb[86].mxu1 %v4682_v2  ;;  %v2541_v50 = vmax.f32 %v4067_v63, 0.0  ;;  %v6381_v62 = vld [vmem:[#allocation27_spill] sm:$0xff]  ;;  %v1146_v14 = vadd.f32 %v6382_v25, %v5804_v31 }
 0x2ae   : > { %v2542_v24 = vmax.f32 %v4069_v5, 0.0  ;;  %v1627_v59 = vpop.f32.mrb[44].mxu0  ;;  %2336 = vmatprep.mubr.f32.mxu1 %v4683_v56  ;;  %v1144_v63 = vadd.f32 %v6381_v62, %v5798_v33  ;;  %v2709_v62 = vld [vmem:[#allocation8 + $0x3e0] sm:$0xff] }
 0x2af   : > { %v4071_v21 = vadd.f32 %v1627_v59, %v1114_v45  ;;  %v1629_v61 = vpop.f32.mrb[45].mxu0 }
 0x2b0   : > { %v4073_v41 = vadd.f32 %v1629_v61, %v1116_v53  ;;  %2915 = vmatprep.mubr.f32.mxu0 %v2542_v24  ;;  %v4692_v53 = vld [vmem:[%s5195_s13 + $0x320] sm:$0xff]  ;;  %v6383_v61 = vld [vmem:[#allocation29_spill] sm:$0xff] }
 0x2b1   : > { %2916 = vmatmul.mubr.f32.gmra.mrb[106].mxu0 %v2541_v50  ;;  %2337 = vmatmul.mubr.f32.gmra.mrb[88].mxu1 %v4684_v58  ;;  %v2545_v44 = vmax.f32 %v4071_v21, 0.0  ;;  %v4693_v50 = vld [vmem:[%s5195_s13 + $0x358] sm:$0xff]  ;;  %v1150_v56 = vadd.f32 %v6383_v61, %v5798_v33 }
 0x2b2   : > { %v2546_v32 = vmax.f32 %v4073_v41, 0.0  ;;  %v1633_v27 = vpop.f32.mrb[46].mxu0  ;;  %2342 = vmatprep.mubr.f32.mxu1 %v4685_v48  ;;  %v6384_v41 = vld [vmem:[#allocation30_spill] sm:$0xff] }
 0x2b3   : > { %v4075_v19 = vadd.f32 %v1633_v27, %v1120_v26  ;;  %v1635_v13 = vpop.f32.mrb[47].mxu0  ;;  %v1152_v38 = vadd.f32 %v6384_v41, %v5804_v31  ;;  %v4713_v61 = vld [vmem:[%s5195_s13 + $0x538] sm:$0xff]  ;;  %v4715_v41 = vld [vmem:[%s5195_s13 + $0x568] sm:$0xff] }
 0x2b4   : > { %v4077_v49 = vadd.f32 %v1635_v13, %v1122_v28  ;;  %2921 = vmatprep.mubr.f32.mxu0 %v2546_v32  ;;  %v4694_v28 = vld [vmem:[%s5195_s13 + $0x350] sm:$0xff]  ;;  %v6385_v13 = vld [vmem:[#allocation32_spill] sm:$0xff] }
 0x2b5   : > { %2922 = vmatmul.mubr.f32.gmra.mrb[108].mxu0 %v2545_v44  ;;  %2343 = vmatmul.mubr.f32.gmra.mrb[90].mxu1 %v4686_v1  ;;  %v2549_v34 = vmax.f32 %v4075_v19, 0.0  ;;  %v4695_v44 = vld [vmem:[%s5195_s13 + $0x388] sm:$0xff]  ;;  %v1156_v48 = vadd.f32 %v6385_v13, %v5798_v33 }
 0x2b6   : > { %v2550_v51 = vmax.f32 %v4077_v49, 0.0  ;;  %v1639_v20 = vpop.f32.mrb[48].mxu0  ;;  %2348 = vmatprep.mubr.f32.mxu1 %v4687_v47  ;;  %v6386_v49 = vld [vmem:[#allocation33_spill] sm:$0xff]  ;;  %v6387_v47 = vld [vmem:[#allocation34_spill] sm:$0xff] }
 0x2b7   : > { %v4079_v30 = vadd.f32 %v1639_v20, %v1126_v22  ;;  %v1641_v55 = vpop.f32.mrb[49].mxu0  ;;  %v1158_v22 = vadd.f32 %v6386_v49, %v5804_v31 }
 0x2b8   : > { %v4081_v9 = vadd.f32 %v1641_v55, %v1128_v18  ;;  %2927 = vmatprep.mubr.f32.mxu0 %v2550_v51  ;;  %v4696_v51 = vld [vmem:[%s5195_s13 + $0x380] sm:$0xff] }
 0x2b9   : > { %2928 = vmatmul.mubr.f32.gmra.mrb[110].mxu0 %v2549_v34  ;;  %2349 = vmatmul.mubr.f32.gmra.mrb[92].mxu1 %v4688_v35  ;;  %v2553_v4 = vmax.f32 %v4079_v30, 0.0  ;;  %v4697_v30 = vld [vmem:[%s5195_s13 + $0x3b8] sm:$0xff] }
 0x2ba   : > { %v2554_v10 = vmax.f32 %v4081_v9, 0.0  ;;  %v1645_v12 = vpop.f32.mrb[50].mxu0  ;;  %2354 = vmatprep.mubr.f32.mxu1 %v4689_v57  ;;  %v1162_v9 = vadd.f32 %v6387_v47, %v5798_v33  ;;  %v6389_v57 = vld [vmem:[#allocation36_spill] sm:$0xff] }
 0x2bb   : > { %v4083_v17 = vadd.f32 %v1645_v12, %v1132_v42  ;;  %v1647_v6 = vpop.f32.mrb[51].mxu0  ;;  %v1164_v42 = vadd.f32 %v6388_v46, %v5804_v31 }
 0x2bc   : > { %v4085_v37 = vadd.f32 %v1647_v6, %v1134_v0  ;;  %2933 = vmatprep.mubr.f32.mxu0 %v2554_v10  ;;  %v4698_v10 = vld [vmem:[%s5195_s13 + $0x3b0] sm:$0xff] }
 0x2bd   : > { %2934 = vmatmul.mubr.f32.gmra.mrb[112].mxu0 %v2553_v4  ;;  %2355 = vmatmul.mubr.f32.gmra.mrb[94].mxu1 %v4690_v36  ;;  %v2557_v43 = vmax.f32 %v4083_v17, 0.0  ;;  %v4699_v17 = vld [vmem:[%s5195_s13 + $0x3e8] sm:$0xff] }
 0x2be   : > { %v2558_v23 = vmax.f32 %v4085_v37, 0.0  ;;  %v1651_v54 = vpop.f32.mrb[52].mxu0  ;;  %2360 = vmatprep.mubr.f32.mxu1 %v4691_v8  ;;  %v1168_v37 = vadd.f32 %v6389_v57, %v5798_v33  ;;  %v4702_v8 = vld [vmem:[%s5195_s13 + $0x410] sm:$0xff] }
 0x2bf   : > { %v4087_v60 = vadd.f32 %v1651_v54, %v1138_v11  ;;  %v1653_v39 = vpop.f32.mrb[53].mxu0  ;;  %v1170_v11 = vadd.f32 %v6390_v15, %v5804_v31 }
 0x2c0   : > { %v4089_v40 = vadd.f32 %v1653_v39, %v1140_v52  ;;  %2939 = vmatprep.mubr.f32.mxu0 %v2558_v23  ;;  %v4700_v23 = vld [vmem:[%s5195_s13 + $0x3e0] sm:$0xff] }
 0x2c1   : > { %2940 = vmatmul.mubr.f32.gmra.mrb[114].mxu0 %v2557_v43  ;;  %2361 = vmatmul.mubr.f32.gmra.mrb[96].mxu1 %v4692_v53  ;;  %v2561_v24 = vmax.f32 %v4087_v60, 0.0  ;;  %v4701_v60 = vld [vmem:[%s5195_s13 + $0x418] sm:$0xff]  ;;  %v4707_v53 = vld [vmem:[%s5195_s13 + $0x4a8] sm:$0xff] }
 0x2c2   : > { %v2562_v5 = vmax.f32 %v4089_v40, 0.0  ;;  %v1657_v45 = vpop.f32.mrb[54].mxu0  ;;  %2366 = vmatprep.mubr.f32.mxu1 %v4693_v50  ;;  %v4703_v40 = vld [vmem:[%s5195_s13 + $0x448] sm:$0xff] }
 0x2c3   : > { %v4091_v59 = vadd.f32 %v1657_v45, %v1144_v63  ;;  %v1659_v2 = vpop.f32.mrb[55].mxu0  ;;  %v2711_v63 = vld [vmem:[#allocation8 + $0x3f0] sm:$0xff]  ;;  %v4711_v50 = vld [vmem:[%s5195_s13 + $0x508] sm:$0xff] }
 0x2c4   : > { %v4093_v21 = vadd.f32 %v1659_v2, %v1146_v14  ;;  %2945 = vmatprep.mubr.f32.mxu0 %v2562_v5  ;;  %v3980_v25 = vpack.c.bf16 %v2711_v63, %v2709_v62  ;;  %v4704_v14 = vld [vmem:[%s5195_s13 + $0x440] sm:$0xff]  ;;  %v4705_v5 = vld [vmem:[%s5195_s13 + $0x478] sm:$0xff]  ;;  %v4706_v45 = vld [vmem:[%s5195_s13 + $0x470] sm:$0xff] }
 0x2c5   : > { %2946 = vmatmul.mubr.f32.gmra.mrb[116].mxu0 %v2561_v24  ;;  %2367 = vmatmul.mubr.f32.gmra.mrb[98].mxu1 %v4694_v28  ;;  %v2565_v32 = vmax.f32 %v4091_v59, 0.0  ;;  %v4708_v24 = vld [vmem:[%s5195_s13 + $0x4a0] sm:$0xff]  ;;  %v4709_v59 = vld [vmem:[%s5195_s13 + $0x4d8] sm:$0xff]  ;;  %v4710_v2 = vld [vmem:[%s5195_s13 + $0x4d0] sm:$0xff] }
 0x2c6   : > { %v2566_v26 = vmax.f32 %v4093_v21, 0.0  ;;  %v1663_v29 = vpop.f32.mrb[56].mxu0  ;;  %2372 = vmatprep.mubr.f32.mxu1 %v4695_v44  ;;  %3981 = vmatpush1.bf16.msra.mxu0 %v3980_v25  ;;  %v4712_v21 = vld [vmem:[%s5195_s13 + $0x500] sm:$0xff]  ;;  %v4719_v28 = vld [vmem:[%s5195_s13 + $0x5c8] sm:$0xff] }
 0x2c7   : > { %v4095_v27 = vadd.f32 %v1663_v29, %v1150_v56  ;;  %v1665_v58 = vpop.f32.mrb[57].mxu0  ;;  %v4714_v56 = vld [vmem:[%s5195_s13 + $0x530] sm:$0xff]  ;;  %v6391_v44 = vld [vmem:[#allocation31_spill] sm:$0xff] }
 0x2c8   : > { %v4097_v19 = vadd.f32 %v1665_v58, %v1152_v38  ;;  %2951 = vmatprep.mubr.f32.mxu0 %v2566_v26  ;;  %v4716_v38 = vld [vmem:[%s5195_s13 + $0x560] sm:$0xff]  ;;  %v4717_v26 = vld [vmem:[%s5195_s13 + $0x598] sm:$0xff]  ;;  %v4718_v29 = vld [vmem:[%s5195_s13 + $0x590] sm:$0xff]  ;;  %v909_v13 = vsub.s32 3, %v6391_v44 }
 0x2c9   : > { %2952 = vmatmul.mubr.f32.gmra.mrb[118].mxu0 %v2565_v32  ;;  %2373 = vmatmul.mubr.f32.gmra.mrb[100].mxu1 %v4696_v51  ;;  %v2569_v20 = vmax.f32 %v4095_v27, 0.0  ;;  %v4720_v32 = vld [vmem:[%s5195_s13 + $0x5c0] sm:$0xff]  ;;  %v4721_v27 = vld [vmem:[%s5195_s13 + $0x5f8] sm:$0xff]  ;;  %v4722_v58 = vld [vmem:[%s5195_s13 + $0x5f0] sm:$0xff] }
 0x2ca   : > { %v2570_v3 = vmax.f32 %v4097_v19, 0.0  ;;  %v1669_v18 = vpop.f32.mrb[58].mxu0  ;;  %2378 = vmatprep.mubr.f32.mxu1 %v4697_v30  ;;  %v905_v19 = vsub.s32 2, %v6391_v44 }
 0x2cb   : > { %v4099_v1 = vadd.f32 %v1669_v18, %v1156_v48  ;;  %v1671_v34 = vpop.f32.mrb[59].mxu0  ;;  %v4723_v48 = vld [vmem:[#allocation7] sm:$0xf] }
 0x2cc   : > { %v4101_v55 = vadd.f32 %v1671_v34, %v1158_v22  ;;  %2957 = vmatprep.mubr.f32.mxu0 %v2570_v3  ;;  %v6025_v49 = vrot.slane %v4723_v48, %v905_v19  ;;  %v6027_v22 = vrot.slane %v4723_v48, %v909_v13 }
 0x2cd   : > { %2958 = vmatmul.mubr.f32.gmra.mrb[120].mxu0 %v2569_v20  ;;  %2379 = vmatmul.mubr.f32.gmra.mrb[102].mxu1 %v4698_v10  ;;  %v2573_v12 = vmax.f32 %v4099_v1, 0.0 }
 0x2ce   : > { %v2574_v16 = vmax.f32 %v4101_v55, 0.0  ;;  %v1675_v0 = vpop.f32.mrb[60].mxu0  ;;  %2384 = vmatprep.mubr.f32.mxu1 %v4699_v17 }
 0x2cf   : > { %v4103_v35 = vadd.f32 %v1675_v0, %v1162_v9  ;;  %v1677_v4 = vpop.f32.mrb[61].mxu0 }
 0x2d0   : > { %v4105_v6 = vadd.f32 %v1677_v4, %v1164_v42  ;;  %2963 = vmatprep.mubr.f32.mxu0 %v2574_v16 }
 0x2d1   : > { %2964 = vmatmul.mubr.f32.gmra.mrb[122].mxu0 %v2573_v12  ;;  %2385 = vmatmul.mubr.f32.gmra.mrb[104].mxu1 %v4700_v23  ;;  %v2577_v54 = vmax.f32 %v4103_v35, 0.0 }
 0x2d2   : > { %v2578_v7 = vmax.f32 %v4105_v6, 0.0  ;;  %v1681_v52 = vpop.f32.mrb[62].mxu0  ;;  %2390 = vmatprep.mubr.f32.mxu1 %v4701_v60 }
 0x2d3   : > { %v4107_v36 = vadd.f32 %v1681_v52, %v1168_v37  ;;  %v1683_v43 = vpop.f32.mrb[63].mxu0 }
 0x2d4   : > { %v4109_v39 = vadd.f32 %v1683_v43, %v1170_v11  ;;  %2969 = vmatprep.mubr.f32.mxu0 %v2578_v7 }
 0x2d5   : > { %2970 = vmatmul.mubr.f32.gmra.mrb[124].mxu0 %v2577_v54  ;;  %2391 = vmatmul.mubr.f32.gmra.mrb[106].mxu1 %v4702_v8  ;;  %v2581_v31 = vmax.f32 %v4107_v36, 0.0 }
 0x2d6   : > { %v2582_v33 = vmax.f32 %v4109_v39, 0.0  ;;  %2396 = vmatprep.mubr.f32.mxu1 %v4703_v40 }
 0x2d8   : > { %2975 = vmatprep.mubr.f32.mxu0 %v2582_v33 }
 0x2d9   : > { %2976 = vmatmul.mubr.f32.gmra.mrb[126].mxu0 %v2581_v31  ;;  %2397 = vmatmul.mubr.f32.gmra.mrb[108].mxu1 %v4704_v14 }
 0x2da   : > { %2402 = vmatprep.mubr.f32.mxu1 %v4705_v5 }
 0x2dd   : > { %2403 = vmatmul.mubr.f32.gmra.mrb[110].mxu1 %v4706_v45 }
 0x2de   : > { %2408 = vmatprep.mubr.f32.mxu1 %v4707_v53 }
 0x2e1   : > { %2409 = vmatmul.mubr.f32.gmra.mrb[112].mxu1 %v4708_v24 }
 0x2e2   : > { %2414 = vmatprep.mubr.f32.mxu1 %v4709_v59 }
 0x2e5   : > { %2415 = vmatmul.mubr.f32.gmra.mrb[114].mxu1 %v4710_v2 }
 0x2e6   : > { %2420 = vmatprep.mubr.f32.mxu1 %v4711_v50 }
 0x2e9   : > { %2421 = vmatmul.mubr.f32.gmra.mrb[116].mxu1 %v4712_v21 }
 0x2ea   : > { %2426 = vmatprep.mubr.f32.mxu1 %v4713_v61 }
 0x2ed   : > { %2427 = vmatmul.mubr.f32.gmra.mrb[118].mxu1 %v4714_v56 }
 0x2ee   : > { %2432 = vmatprep.mubr.f32.mxu1 %v4715_v41 }
 0x2f1   : > { %2433 = vmatmul.mubr.f32.gmra.mrb[120].mxu1 %v4716_v38 }
 0x2f2   : > { %2438 = vmatprep.mubr.f32.mxu1 %v4717_v26 }
 0x2f5   : > { %2439 = vmatmul.mubr.f32.gmra.mrb[122].mxu1 %v4718_v29 }
 0x2f6   : > { %2444 = vmatprep.mubr.f32.mxu1 %v4719_v28 }
 0x2f9   : > { %2445 = vmatmul.mubr.f32.gmra.mrb[124].mxu1 %v4720_v32 }
 0x2fa   : > { %2450 = vmatprep.mubr.f32.mxu1 %v4721_v27 }
 0x2fd   : > { %2451 = vmatmul.mubr.f32.gmra.mrb[126].mxu1 %v4722_v58 }
 0x354   : > { %v2266_v3 = vpop.f32.mrb[64].mxu1 }
 0x355   : > { %v4110_v18 = vadd.f32 %v2266_v3, %v6025_v49  ;;  %v2268_v51 = vpop.f32.mrb[65].mxu1 }
 0x356   : > { %v4111_v20 = vadd.f32 %v2268_v51, %v6027_v22 }
 0x357   : > { %v2459_v30 = vmax.f32 %v4110_v18, 0.0 }
 0x358   : > { %v2460_v1 = vmax.f32 %v4111_v20, 0.0  ;;  %v2272_v34 = vpop.f32.mrb[66].mxu1 }
 0x359   : > { %v4112_v55 = vadd.f32 %v2272_v34, %v6025_v49  ;;  %v2274_v47 = vpop.f32.mrb[67].mxu1 }
 0x35a   : > { %v4113_v9 = vadd.f32 %v2274_v47, %v6027_v22  ;;  %3046 = vmatprep.mubr.f32.mxu0 %v2460_v1 }
 0x35b   : > { %3047 = vmatmul.mubr.f32.vlgmr.msra.gmra.mrb[64].mxu0 %v2459_v30  ;;  %v2463_v16 = vmax.f32 %v4112_v55, 0.0 }
 0x35c   : > { %v2464_v46 = vmax.f32 %v4113_v9, 0.0  ;;  %v2278_v42 = vpop.f32.mrb[68].mxu1 }
 0x35d   : > { %v4114_v0 = vadd.f32 %v2278_v42, %v6025_v49  ;;  %v2280_v10 = vpop.f32.mrb[69].mxu1 }
 0x35e   : > { %v4115_v12 = vadd.f32 %v2280_v10, %v6027_v22  ;;  %3052 = vmatprep.mubr.f32.mxu0 %v2464_v46 }
 0x35f   : > { %3053 = vmatmul.mubr.f32.gmra.mrb[66].mxu0 %v2463_v16  ;;  %v2467_v17 = vmax.f32 %v4114_v0, 0.0 }
 0x360   : > { %v2468_v35 = vmax.f32 %v4115_v12, 0.0  ;;  %v2284_v4 = vpop.f32.mrb[70].mxu1 }
 0x361   : > { %v4116_v6 = vadd.f32 %v2284_v4, %v6025_v49  ;;  %v2286_v57 = vpop.f32.mrb[71].mxu1 }
 0x362   : > { %v4117_v37 = vadd.f32 %v2286_v57, %v6027_v22  ;;  %3058 = vmatprep.mubr.f32.mxu0 %v2468_v35 }
 0x363   : > { %3059 = vmatmul.mubr.f32.gmra.mrb[68].mxu0 %v2467_v17  ;;  %v2471_v7 = vmax.f32 %v4116_v6, 0.0 }
 0x364   : > { %v2472_v15 = vmax.f32 %v4117_v37, 0.0  ;;  %v2290_v11 = vpop.f32.mrb[72].mxu1 }
 0x365   : > { %v4118_v52 = vadd.f32 %v2290_v11, %v6025_v49  ;;  %v2292_v23 = vpop.f32.mrb[73].mxu1 }
 0x366   : > { %v4119_v54 = vadd.f32 %v2292_v23, %v6027_v22  ;;  %3064 = vmatprep.mubr.f32.mxu0 %v2472_v15 }
 0x367   : > { %3065 = vmatmul.mubr.f32.gmra.mrb[70].mxu0 %v2471_v7  ;;  %v2475_v60 = vmax.f32 %v4118_v52, 0.0 }
 0x368   : > { %v2476_v36 = vmax.f32 %v4119_v54, 0.0  ;;  %v2296_v43 = vpop.f32.mrb[74].mxu1 }
 0x369   : > { %v4120_v39 = vadd.f32 %v2296_v43, %v6025_v49  ;;  %v2298_v33 = vpop.f32.mrb[75].mxu1 }
 0x36a   : > { %v4121_v8 = vadd.f32 %v2298_v33, %v6027_v22  ;;  %3070 = vmatprep.mubr.f32.mxu0 %v2476_v36 }
 0x36b   : > { %3071 = vmatmul.mubr.f32.gmra.mrb[72].mxu0 %v2475_v60  ;;  %v2479_v62 = vmax.f32 %v4120_v39, 0.0 }
 0x36c   : > { %v2480_v31 = vmax.f32 %v4121_v8, 0.0  ;;  %v2302_v40 = vpop.f32.mrb[76].mxu1 }
 0x36d   : > { %v4122_v63 = vadd.f32 %v2302_v40, %v6025_v49  ;;  %v2304_v25 = vpop.f32.mrb[77].mxu1 }
 0x36e   : > { %v4123_v14 = vadd.f32 %v2304_v25, %v6027_v22  ;;  %3076 = vmatprep.mubr.f32.mxu0 %v2480_v31 }
 0x36f   : > { %3077 = vmatmul.mubr.f32.gmra.mrb[74].mxu0 %v2479_v62  ;;  %v2483_v53 = vmax.f32 %v4122_v63, 0.0 }
 0x370   : > { %v2484_v5 = vmax.f32 %v4123_v14, 0.0  ;;  %v2308_v45 = vpop.f32.mrb[78].mxu1 }
 0x371   : > { %v4124_v24 = vadd.f32 %v2308_v45, %v6025_v49  ;;  %v2310_v59 = vpop.f32.mrb[79].mxu1 }
 0x372   : > { %v4125_v2 = vadd.f32 %v2310_v59, %v6027_v22  ;;  %3082 = vmatprep.mubr.f32.mxu0 %v2484_v5 }
 0x373   : > { %3083 = vmatmul.mubr.f32.gmra.mrb[76].mxu0 %v2483_v53  ;;  %v2487_v61 = vmax.f32 %v4124_v24, 0.0 }
 0x374   : > { %v2488_v50 = vmax.f32 %v4125_v2, 0.0  ;;  %v2314_v21 = vpop.f32.mrb[80].mxu1 }
 0x375   : > { %v4126_v56 = vadd.f32 %v2314_v21, %v6025_v49  ;;  %v2316_v41 = vpop.f32.mrb[81].mxu1 }
 0x376   : > { %v4127_v38 = vadd.f32 %v2316_v41, %v6027_v22  ;;  %3088 = vmatprep.mubr.f32.mxu0 %v2488_v50 }
 0x377   : > { %3089 = vmatmul.mubr.f32.gmra.mrb[78].mxu0 %v2487_v61  ;;  %v2491_v28 = vmax.f32 %v4126_v56, 0.0 }
 0x378   : > { %v2492_v26 = vmax.f32 %v4127_v38, 0.0  ;;  %v2320_v29 = vpop.f32.mrb[82].mxu1 }
 0x379   : > { %v4128_v32 = vadd.f32 %v2320_v29, %v6025_v49  ;;  %v2322_v27 = vpop.f32.mrb[83].mxu1 }
 0x37a   : > { %v4129_v58 = vadd.f32 %v2322_v27, %v6027_v22  ;;  %3094 = vmatprep.mubr.f32.mxu0 %v2492_v26 }
 0x37b   : > { %3095 = vmatmul.mubr.f32.gmra.mrb[80].mxu0 %v2491_v28  ;;  %v2495_v48 = vmax.f32 %v4128_v32, 0.0 }
 0x37c   : > { %v2496_v19 = vmax.f32 %v4129_v58, 0.0  ;;  %v2326_v13 = vpop.f32.mrb[84].mxu1 }
 0x37d   : > { %v4130_v3 = vadd.f32 %v2326_v13, %v6025_v49  ;;  %v2328_v18 = vpop.f32.mrb[85].mxu1 }
 0x37e   : > { %v4131_v51 = vadd.f32 %v2328_v18, %v6027_v22  ;;  %3100 = vmatprep.mubr.f32.mxu0 %v2496_v19 }
 0x37f   : > { %3101 = vmatmul.mubr.f32.gmra.mrb[82].mxu0 %v2495_v48  ;;  %v2499_v34 = vmax.f32 %v4130_v3, 0.0 }
 0x380   : > { %v2500_v20 = vmax.f32 %v4131_v51, 0.0  ;;  %v2332_v1 = vpop.f32.mrb[86].mxu1 }
 0x381   : > { %v4132_v30 = vadd.f32 %v2332_v1, %v6025_v49  ;;  %v2334_v55 = vpop.f32.mrb[87].mxu1 }
 0x382   : > { %v4133_v47 = vadd.f32 %v2334_v55, %v6027_v22  ;;  %3106 = vmatprep.mubr.f32.mxu0 %v2500_v20 }
 0x383   : > { %3107 = vmatmul.mubr.f32.gmra.mrb[84].mxu0 %v2499_v34  ;;  %v2503_v42 = vmax.f32 %v4132_v30, 0.0 }
 0x384   : > { %v2504_v9 = vmax.f32 %v4133_v47, 0.0  ;;  %v2338_v46 = vpop.f32.mrb[88].mxu1 }
 0x385   : > { %v4134_v16 = vadd.f32 %v2338_v46, %v6025_v49  ;;  %v2340_v0 = vpop.f32.mrb[89].mxu1 }
 0x386   : > { %v4135_v10 = vadd.f32 %v2340_v0, %v6027_v22  ;;  %3112 = vmatprep.mubr.f32.mxu0 %v2504_v9 }
 0x387   : > { %3113 = vmatmul.mubr.f32.gmra.mrb[86].mxu0 %v2503_v42  ;;  %v2507_v4 = vmax.f32 %v4134_v16, 0.0 }
 0x388   : > { %v2508_v12 = vmax.f32 %v4135_v10, 0.0  ;;  %v2344_v35 = vpop.f32.mrb[90].mxu1 }
 0x389   : > { %v4136_v17 = vadd.f32 %v2344_v35, %v6025_v49  ;;  %v2346_v6 = vpop.f32.mrb[91].mxu1 }
 0x38a   : > { %v4137_v57 = vadd.f32 %v2346_v6, %v6027_v22  ;;  %3118 = vmatprep.mubr.f32.mxu0 %v2508_v12 }
 0x38b   : > { %3119 = vmatmul.mubr.f32.gmra.mrb[88].mxu0 %v2507_v4  ;;  %v2511_v11 = vmax.f32 %v4136_v17, 0.0 }
 0x38c   : > { %v2512_v37 = vmax.f32 %v4137_v57, 0.0  ;;  %v2350_v15 = vpop.f32.mrb[92].mxu1 }
 0x38d   : > { %v4138_v7 = vadd.f32 %v2350_v15, %v6025_v49  ;;  %v2352_v52 = vpop.f32.mrb[93].mxu1 }
 0x38e   : > { %v4139_v23 = vadd.f32 %v2352_v52, %v6027_v22  ;;  %3124 = vmatprep.mubr.f32.mxu0 %v2512_v37 }
 0x38f   : > { %3125 = vmatmul.mubr.f32.gmra.mrb[90].mxu0 %v2511_v11  ;;  %v2515_v43 = vmax.f32 %v4138_v7, 0.0 }
 0x390   : > { %v2516_v54 = vmax.f32 %v4139_v23, 0.0  ;;  %v2356_v36 = vpop.f32.mrb[94].mxu1 }
 0x391   : > { %v4140_v60 = vadd.f32 %v2356_v36, %v6025_v49  ;;  %v2358_v39 = vpop.f32.mrb[95].mxu1 }
 0x392   : > { %v4141_v33 = vadd.f32 %v2358_v39, %v6027_v22  ;;  %3130 = vmatprep.mubr.f32.mxu0 %v2516_v54 }
 0x393   : > { %3131 = vmatmul.mubr.f32.gmra.mrb[92].mxu0 %v2515_v43  ;;  %v2519_v40 = vmax.f32 %v4140_v60, 0.0 }
 0x394   : > { %v2520_v8 = vmax.f32 %v4141_v33, 0.0  ;;  %v2362_v31 = vpop.f32.mrb[96].mxu1 }
 0x395   : > { %v4142_v62 = vadd.f32 %v2362_v31, %v6025_v49  ;;  %v2364_v63 = vpop.f32.mrb[97].mxu1 }
 0x396   : > { %v4143_v25 = vadd.f32 %v2364_v63, %v6027_v22  ;;  %3136 = vmatprep.mubr.f32.mxu0 %v2520_v8 }
 0x397   : > { %3137 = vmatmul.mubr.f32.gmra.mrb[94].mxu0 %v2519_v40  ;;  %v2523_v45 = vmax.f32 %v4142_v62, 0.0 }
 0x398   : > { %v2524_v14 = vmax.f32 %v4143_v25, 0.0  ;;  %v2368_v5 = vpop.f32.mrb[98].mxu1 }
 0x399   : > { %v4144_v53 = vadd.f32 %v2368_v5, %v6025_v49  ;;  %v2370_v24 = vpop.f32.mrb[99].mxu1 }
 0x39a   : > { %v4145_v59 = vadd.f32 %v2370_v24, %v6027_v22  ;;  %3142 = vmatprep.mubr.f32.mxu0 %v2524_v14 }
 0x39b   : > { %3143 = vmatmul.mubr.f32.gmra.mrb[96].mxu0 %v2523_v45  ;;  %v2527_v21 = vmax.f32 %v4144_v53, 0.0 }
 0x39c   : > { %v2528_v2 = vmax.f32 %v4145_v59, 0.0  ;;  %v2374_v50 = vpop.f32.mrb[100].mxu1 }
 0x39d   : > { %v4146_v61 = vadd.f32 %v2374_v50, %v6025_v49  ;;  %v2376_v56 = vpop.f32.mrb[101].mxu1 }
 0x39e   : > { %v4147_v41 = vadd.f32 %v2376_v56, %v6027_v22  ;;  %3148 = vmatprep.mubr.f32.mxu0 %v2528_v2 }
 0x39f   : > { %3149 = vmatmul.mubr.f32.gmra.mrb[98].mxu0 %v2527_v21  ;;  %v2531_v29 = vmax.f32 %v4146_v61, 0.0 }
 0x3a0   : > { %v2532_v38 = vmax.f32 %v4147_v41, 0.0  ;;  %v2380_v26 = vpop.f32.mrb[102].mxu1 }
 0x3a1   : > { %v4148_v28 = vadd.f32 %v2380_v26, %v6025_v49  ;;  %v2382_v32 = vpop.f32.mrb[103].mxu1 }
 0x3a2   : > { %v4149_v27 = vadd.f32 %v2382_v32, %v6027_v22  ;;  %3154 = vmatprep.mubr.f32.mxu0 %v2532_v38 }
 0x3a3   : > { %3155 = vmatmul.mubr.f32.gmra.mrb[100].mxu0 %v2531_v29  ;;  %v2535_v13 = vmax.f32 %v4148_v28, 0.0 }
 0x3a4   : > { %v2536_v58 = vmax.f32 %v4149_v27, 0.0  ;;  %v2386_v19 = vpop.f32.mrb[104].mxu1 }
 0x3a5   : > { %v4150_v48 = vadd.f32 %v2386_v19, %v6025_v49  ;;  %v2388_v3 = vpop.f32.mrb[105].mxu1 }
 0x3a6   : > { %v4151_v18 = vadd.f32 %v2388_v3, %v6027_v22  ;;  %3160 = vmatprep.mubr.f32.mxu0 %v2536_v58 }
 0x3a7   : > { %3161 = vmatmul.mubr.f32.gmra.mrb[102].mxu0 %v2535_v13  ;;  %v2539_v1 = vmax.f32 %v4150_v48, 0.0 }
 0x3a8   : > { %v2540_v51 = vmax.f32 %v4151_v18, 0.0  ;;  %v2392_v20 = vpop.f32.mrb[106].mxu1 }
 0x3a9   : > { %v4152_v34 = vadd.f32 %v2392_v20, %v6025_v49  ;;  %v2394_v30 = vpop.f32.mrb[107].mxu1 }
 0x3aa   : > { %v4153_v55 = vadd.f32 %v2394_v30, %v6027_v22  ;;  %3166 = vmatprep.mubr.f32.mxu0 %v2540_v51 }
 0x3ab   : > { %3167 = vmatmul.mubr.f32.gmra.mrb[104].mxu0 %v2539_v1  ;;  %v2543_v46 = vmax.f32 %v4152_v34, 0.0 }
 0x3ac   : > { %v2544_v47 = vmax.f32 %v4153_v55, 0.0  ;;  %v2398_v9 = vpop.f32.mrb[108].mxu1 }
 0x3ad   : > { %v4154_v42 = vadd.f32 %v2398_v9, %v6025_v49  ;;  %v2400_v16 = vpop.f32.mrb[109].mxu1  ;;  %v2713_v9 = vld [vmem:[#allocation10] sm:$0x3] }
 0x3ae   : > { %v4155_v0 = vadd.f32 %v2400_v16, %v6027_v22  ;;  %3172 = vmatprep.mubr.f32.mxu0 %v2544_v47  ;;  %v6393_v16 = vsub.s32 1, %v6391_v44 }
 0x3af   : > { %3173 = vmatmul.mubr.f32.gmra.mrb[106].mxu0 %v2543_v46  ;;  %v2547_v35 = vmax.f32 %v4154_v42, 0.0  ;;  %v6392_v46 = vsub.s32 0, %v6391_v44 }
 0x3b0   : > { %v2548_v10 = vmax.f32 %v4155_v0, 0.0  ;;  %v2404_v12 = vpop.f32.mrb[110].mxu1  ;;  %v6100_v0 = vrot.slane %v2713_v9, %v6393_v16 }
 0x3b1   : > { %v4156_v4 = vadd.f32 %v2404_v12, %v6025_v49  ;;  %v2406_v17 = vpop.f32.mrb[111].mxu1  ;;  %v6096_v42 = vrot.slane %v2713_v9, %v6392_v46 }
 0x3b2   : > { %v4157_v6 = vadd.f32 %v2406_v17, %v6027_v22  ;;  %3178 = vmatprep.mubr.f32.mxu0 %v2548_v10 }
 0x3b3   : > { %3179 = vmatmul.mubr.f32.gmra.mrb[108].mxu0 %v2547_v35  ;;  %v2551_v15 = vmax.f32 %v4156_v4, 0.0 }
 0x3b4   : > { %v2552_v57 = vmax.f32 %v4157_v6, 0.0  ;;  %v2410_v37 = vpop.f32.mrb[112].mxu1 }
 0x3b5   : > { %v4158_v11 = vadd.f32 %v2410_v37, %v6025_v49  ;;  %v2412_v7 = vpop.f32.mrb[113].mxu1 }
 0x3b6   : > { %v4159_v52 = vadd.f32 %v2412_v7, %v6027_v22  ;;  %3184 = vmatprep.mubr.f32.mxu0 %v2552_v57 }
 0x3b7   : > { %3185 = vmatmul.mubr.f32.gmra.mrb[110].mxu0 %v2551_v15  ;;  %v2555_v36 = vmax.f32 %v4158_v11, 0.0 }
 0x3b8   : > { %v2556_v23 = vmax.f32 %v4159_v52, 0.0  ;;  %v2416_v54 = vpop.f32.mrb[114].mxu1 }
 0x3b9   : > { %v4160_v43 = vadd.f32 %v2416_v54, %v6025_v49  ;;  %v2418_v60 = vpop.f32.mrb[115].mxu1 }
 0x3ba   : > { %v4161_v39 = vadd.f32 %v2418_v60, %v6027_v22  ;;  %3190 = vmatprep.mubr.f32.mxu0 %v2556_v23 }
 0x3bb   : > { %3191 = vmatmul.mubr.f32.gmra.mrb[112].mxu0 %v2555_v36  ;;  %v2559_v31 = vmax.f32 %v4160_v43, 0.0 }
 0x3bc   : > { %v2560_v33 = vmax.f32 %v4161_v39, 0.0  ;;  %v2422_v8 = vpop.f32.mrb[116].mxu1 }
 0x3bd   : > { %v4162_v40 = vadd.f32 %v2422_v8, %v6025_v49  ;;  %v2424_v62 = vpop.f32.mrb[117].mxu1 }
 0x3be   : > { %v4163_v63 = vadd.f32 %v2424_v62, %v6027_v22  ;;  %3196 = vmatprep.mubr.f32.mxu0 %v2560_v33 }
 0x3bf   : > { %3197 = vmatmul.mubr.f32.gmra.mrb[114].mxu0 %v2559_v31  ;;  %v2563_v5 = vmax.f32 %v4162_v40, 0.0 }
 0x3c0   : > { %v2564_v25 = vmax.f32 %v4163_v63, 0.0  ;;  %v2428_v14 = vpop.f32.mrb[118].mxu1 }
 0x3c1   : > { %v4164_v45 = vadd.f32 %v2428_v14, %v6025_v49  ;;  %v2430_v53 = vpop.f32.mrb[119].mxu1 }
 0x3c2   : > { %v4165_v24 = vadd.f32 %v2430_v53, %v6027_v22  ;;  %3202 = vmatprep.mubr.f32.mxu0 %v2564_v25 }
 0x3c3   : > { %3203 = vmatmul.mubr.f32.gmra.mrb[116].mxu0 %v2563_v5  ;;  %v2567_v50 = vmax.f32 %v4164_v45, 0.0 }
 0x3c4   : > { %v2568_v59 = vmax.f32 %v4165_v24, 0.0  ;;  %v2434_v2 = vpop.f32.mrb[120].mxu1 }
 0x3c5   : > { %v4166_v21 = vadd.f32 %v2434_v2, %v6025_v49  ;;  %v2436_v61 = vpop.f32.mrb[121].mxu1 }
 0x3c6   : > { %v4167_v56 = vadd.f32 %v2436_v61, %v6027_v22  ;;  %3208 = vmatprep.mubr.f32.mxu0 %v2568_v59 }
 0x3c7   : > { %3209 = vmatmul.mubr.f32.gmra.mrb[118].mxu0 %v2567_v50  ;;  %v2571_v26 = vmax.f32 %v4166_v21, 0.0 }
 0x3c8   : > { %v2572_v41 = vmax.f32 %v4167_v56, 0.0  ;;  %v2440_v38 = vpop.f32.mrb[122].mxu1 }
 0x3c9   : > { %v4168_v29 = vadd.f32 %v2440_v38, %v6025_v49  ;;  %v2442_v28 = vpop.f32.mrb[123].mxu1 }
 0x3ca   : > { %v4169_v32 = vadd.f32 %v2442_v28, %v6027_v22  ;;  %3214 = vmatprep.mubr.f32.mxu0 %v2572_v41 }
 0x3cb   : > { %3215 = vmatmul.mubr.f32.gmra.mrb[120].mxu0 %v2571_v26  ;;  %v2575_v19 = vmax.f32 %v4168_v29, 0.0 }
 0x3cc   : > { %v2576_v27 = vmax.f32 %v4169_v32, 0.0  ;;  %v2446_v58 = vpop.f32.mrb[124].mxu1 }
 0x3cd   : > { %v4170_v13 = vadd.f32 %v2446_v58, %v6025_v49  ;;  %v2448_v48 = vpop.f32.mrb[125].mxu1 }
 0x3ce   : > { %v4171_v3 = vadd.f32 %v2448_v48, %v6027_v22  ;;  %3220 = vmatprep.mubr.f32.mxu0 %v2576_v27 }
 0x3cf   : > { %3221 = vmatmul.mubr.f32.gmra.mrb[122].mxu0 %v2575_v19  ;;  %v2579_v20 = vmax.f32 %v4170_v13, 0.0 }
 0x3d0   : > { %v2580_v18 = vmax.f32 %v4171_v3, 0.0  ;;  %v2452_v51 = vpop.f32.mrb[126].mxu1 }
 0x3d1   : > { %v4172_v1 = vadd.f32 %v2452_v51, %v6025_v49  ;;  %v2454_v34 = vpop.f32.mrb[127].mxu1 }
 0x3d2   : > { %v4173_v30 = vadd.f32 %v2454_v34, %v6027_v22  ;;  %3226 = vmatprep.mubr.f32.mxu0 %v2580_v18 }
 0x3d3   : > { %3227 = vmatmul.mubr.f32.gmra.mrb[124].mxu0 %v2579_v20  ;;  %v2583_v47 = vmax.f32 %v4172_v1, 0.0 }
 0x3d4   : > { %v2584_v55 = vmax.f32 %v4173_v30, 0.0 }
 0x3d6   : > { %3232 = vmatprep.mubr.f32.mxu0 %v2584_v55 }
 0x3d7   : > { %3233 = vmatmul.mubr.f32.gmra.mrb[126].mxu0 %v2583_v47 }
 0x42e   : > { %v3048_v49 = vpop.f32.mrb[64].mxu0 }
 0x42f   : > { %v4174_v10 = vadd.f32 %v3048_v49, %v6096_v42  ;;  %v3050_v22 = vpop.f32.mrb[65].mxu0 }
 0x430   : > { %v4175_v12 = vadd.f32 %v3050_v22, %v6100_v0 }
 0x431   : > { %3239 = vst [vmem:[%s6104_s7] sm:$0xff] %v4174_v10 }
 0x432   : > { %3240 = vst [vmem:[%s6104_s7 + $0x8] sm:$0xff] %v4175_v12  ;;  %v3054_v35 = vpop.f32.mrb[66].mxu0 }
 0x433   : > { %v4176_v44 = vadd.f32 %v3054_v35, %v6096_v42  ;;  %v3056_v4 = vpop.f32.mrb[67].mxu0 }
 0x434   : > { %v4177_v17 = vadd.f32 %v3056_v4, %v6100_v0 }
 0x435   : > { %3241 = vst [vmem:[%s6104_s7 + $0x10] sm:$0xff] %v4176_v44 }
 0x436   : > { %3242 = vst [vmem:[%s6104_s7 + $0x18] sm:$0xff] %v4177_v17  ;;  %v3060_v6 = vpop.f32.mrb[68].mxu0 }
 0x437   : > { %v4178_v57 = vadd.f32 %v3060_v6, %v6096_v42  ;;  %v3062_v37 = vpop.f32.mrb[69].mxu0 }
 0x438   : > { %v4179_v15 = vadd.f32 %v3062_v37, %v6100_v0 }
 0x439   : > { %3243 = vst [vmem:[%s6104_s7 + $0x20] sm:$0xff] %v4178_v57 }
 0x43a   : > { %3244 = vst [vmem:[%s6104_s7 + $0x28] sm:$0xff] %v4179_v15  ;;  %v3066_v11 = vpop.f32.mrb[70].mxu0 }
 0x43b   : > { %v4180_v7 = vadd.f32 %v3066_v11, %v6096_v42  ;;  %v3068_v52 = vpop.f32.mrb[71].mxu0 }
 0x43c   : > { %v4181_v23 = vadd.f32 %v3068_v52, %v6100_v0 }
 0x43d   : > { %3245 = vst [vmem:[%s6104_s7 + $0x30] sm:$0xff] %v4180_v7 }
 0x43e   : > { %3246 = vst [vmem:[%s6104_s7 + $0x38] sm:$0xff] %v4181_v23  ;;  %v3072_v54 = vpop.f32.mrb[72].mxu0 }
 0x43f   : > { %v4182_v36 = vadd.f32 %v3072_v54, %v6096_v42  ;;  %v3074_v43 = vpop.f32.mrb[73].mxu0 }
 0x440   : > { %v4183_v60 = vadd.f32 %v3074_v43, %v6100_v0 }
 0x441   : > { %3247 = vst [vmem:[%s6104_s7 + $0x40] sm:$0xff] %v4182_v36 }
 0x442   : > { %3248 = vst [vmem:[%s6104_s7 + $0x48] sm:$0xff] %v4183_v60  ;;  %v3078_v39 = vpop.f32.mrb[74].mxu0 }
 0x443   : > { %v4184_v33 = vadd.f32 %v3078_v39, %v6096_v42  ;;  %v3080_v8 = vpop.f32.mrb[75].mxu0 }
 0x444   : > { %v4185_v31 = vadd.f32 %v3080_v8, %v6100_v0 }
 0x445   : > { %3249 = vst [vmem:[%s6104_s7 + $0x50] sm:$0xff] %v4184_v33 }
 0x446   : > { %3250 = vst [vmem:[%s6104_s7 + $0x58] sm:$0xff] %v4185_v31  ;;  %v3084_v40 = vpop.f32.mrb[76].mxu0 }
 0x447   : > { %v4186_v62 = vadd.f32 %v3084_v40, %v6096_v42  ;;  %v3086_v63 = vpop.f32.mrb[77].mxu0 }
 0x448   : > { %v4187_v25 = vadd.f32 %v3086_v63, %v6100_v0 }
 0x449   : > { %3251 = vst [vmem:[%s6104_s7 + $0x60] sm:$0xff] %v4186_v62 }
 0x44a   : > { %3252 = vst [vmem:[%s6104_s7 + $0x68] sm:$0xff] %v4187_v25  ;;  %v3090_v14 = vpop.f32.mrb[78].mxu0 }
 0x44b   : > { %v4188_v5 = vadd.f32 %v3090_v14, %v6096_v42  ;;  %v3092_v45 = vpop.f32.mrb[79].mxu0 }
 0x44c   : > { %v4189_v53 = vadd.f32 %v3092_v45, %v6100_v0 }
 0x44d   : > { %3253 = vst [vmem:[%s6104_s7 + $0x70] sm:$0xff] %v4188_v5 }
 0x44e   : > { %3254 = vst [vmem:[%s6104_s7 + $0x78] sm:$0xff] %v4189_v53  ;;  %v3096_v24 = vpop.f32.mrb[80].mxu0 }
 0x44f   : > { %v4190_v59 = vadd.f32 %v3096_v24, %v6096_v42  ;;  %v3098_v2 = vpop.f32.mrb[81].mxu0 }
 0x450   : > { %v4191_v50 = vadd.f32 %v3098_v2, %v6100_v0 }
 0x451   : > { %3255 = vst [vmem:[%s6104_s7 + $0x80] sm:$0xff] %v4190_v59 }
 0x452   : > { %3256 = vst [vmem:[%s6104_s7 + $0x88] sm:$0xff] %v4191_v50  ;;  %v3102_v21 = vpop.f32.mrb[82].mxu0 }
 0x453   : > { %v4192_v61 = vadd.f32 %v3102_v21, %v6096_v42  ;;  %v3104_v56 = vpop.f32.mrb[83].mxu0 }
 0x454   : > { %v4193_v41 = vadd.f32 %v3104_v56, %v6100_v0 }
 0x455   : > { %3257 = vst [vmem:[%s6104_s7 + $0x90] sm:$0xff] %v4192_v61 }
 0x456   : > { %3258 = vst [vmem:[%s6104_s7 + $0x98] sm:$0xff] %v4193_v41  ;;  %v3108_v38 = vpop.f32.mrb[84].mxu0 }
 0x457   : > { %v4194_v26 = vadd.f32 %v3108_v38, %v6096_v42  ;;  %v3110_v29 = vpop.f32.mrb[85].mxu0 }
 0x458   : > { %v4195_v28 = vadd.f32 %v3110_v29, %v6100_v0 }
 0x459   : > { %3259 = vst [vmem:[%s6104_s7 + $0xa0] sm:$0xff] %v4194_v26 }
 0x45a   : > { %3260 = vst [vmem:[%s6104_s7 + $0xa8] sm:$0xff] %v4195_v28  ;;  %v3114_v32 = vpop.f32.mrb[86].mxu0 }
 0x45b   : > { %v4196_v27 = vadd.f32 %v3114_v32, %v6096_v42  ;;  %v3116_v58 = vpop.f32.mrb[87].mxu0 }
 0x45c   : > { %v4197_v19 = vadd.f32 %v3116_v58, %v6100_v0 }
 0x45d   : > { %3261 = vst [vmem:[%s6104_s7 + $0xb0] sm:$0xff] %v4196_v27 }
 0x45e   : > { %3262 = vst [vmem:[%s6104_s7 + $0xb8] sm:$0xff] %v4197_v19  ;;  %v3120_v13 = vpop.f32.mrb[88].mxu0 }
 0x45f   : > { %v4198_v48 = vadd.f32 %v3120_v13, %v6096_v42  ;;  %v3122_v3 = vpop.f32.mrb[89].mxu0 }
 0x460   : > { %v4199_v18 = vadd.f32 %v3122_v3, %v6100_v0 }
 0x461   : > { %3263 = vst [vmem:[%s6104_s7 + $0xc0] sm:$0xff] %v4198_v48 }
 0x462   : > { %3264 = vst [vmem:[%s6104_s7 + $0xc8] sm:$0xff] %v4199_v18  ;;  %v3126_v51 = vpop.f32.mrb[90].mxu0 }
 0x463   : > { %v4200_v20 = vadd.f32 %v3126_v51, %v6096_v42  ;;  %v3128_v1 = vpop.f32.mrb[91].mxu0 }
 0x464   : > { %v4201_v34 = vadd.f32 %v3128_v1, %v6100_v0 }
 0x465   : > { %3265 = vst [vmem:[%s6104_s7 + $0xd0] sm:$0xff] %v4200_v20 }
 0x466   : > { %3266 = vst [vmem:[%s6104_s7 + $0xd8] sm:$0xff] %v4201_v34  ;;  %v3132_v30 = vpop.f32.mrb[92].mxu0 }
 0x467   : > { %v4202_v55 = vadd.f32 %v3132_v30, %v6096_v42  ;;  %v3134_v47 = vpop.f32.mrb[93].mxu0 }
 0x468   : > { %v4203_v9 = vadd.f32 %v3134_v47, %v6100_v0 }
 0x469   : > { %3267 = vst [vmem:[%s6104_s7 + $0xe0] sm:$0xff] %v4202_v55 }
 0x46a   : > { %3268 = vst [vmem:[%s6104_s7 + $0xe8] sm:$0xff] %v4203_v9  ;;  %v3138_v46 = vpop.f32.mrb[94].mxu0 }
 0x46b   : > { %v4204_v16 = vadd.f32 %v3138_v46, %v6096_v42  ;;  %v3140_v49 = vpop.f32.mrb[95].mxu0 }
 0x46c   : > { %v4205_v10 = vadd.f32 %v3140_v49, %v6100_v0 }
 0x46d   : > { %3269 = vst [vmem:[%s6104_s7 + $0xf0] sm:$0xff] %v4204_v16 }
 0x46e   : > { %3270 = vst [vmem:[%s6104_s7 + $0xf8] sm:$0xff] %v4205_v10  ;;  %v3144_v22 = vpop.f32.mrb[96].mxu0 }
 0x46f   : > { %v4206_v12 = vadd.f32 %v3144_v22, %v6096_v42  ;;  %v3146_v35 = vpop.f32.mrb[97].mxu0 }
 0x470   : > { %v4207_v44 = vadd.f32 %v3146_v35, %v6100_v0 }
 0x471   : > { %3271 = vst [vmem:[%s6104_s7 + $0x100] sm:$0xff] %v4206_v12 }
 0x472   : > { %3272 = vst [vmem:[%s6104_s7 + $0x108] sm:$0xff] %v4207_v44  ;;  %v3150_v4 = vpop.f32.mrb[98].mxu0 }
 0x473   : > { %v4208_v17 = vadd.f32 %v3150_v4, %v6096_v42  ;;  %v3152_v6 = vpop.f32.mrb[99].mxu0 }
 0x474   : > { %v4209_v57 = vadd.f32 %v3152_v6, %v6100_v0 }
 0x475   : > { %3273 = vst [vmem:[%s6104_s7 + $0x110] sm:$0xff] %v4208_v17 }
 0x476   : > { %3274 = vst [vmem:[%s6104_s7 + $0x118] sm:$0xff] %v4209_v57  ;;  %v3156_v37 = vpop.f32.mrb[100].mxu0 }
 0x477   : > { %v4210_v15 = vadd.f32 %v3156_v37, %v6096_v42  ;;  %v3158_v11 = vpop.f32.mrb[101].mxu0 }
 0x478   : > { %v4211_v7 = vadd.f32 %v3158_v11, %v6100_v0 }
 0x479   : > { %3275 = vst [vmem:[%s6104_s7 + $0x120] sm:$0xff] %v4210_v15 }
 0x47a   : > { %3276 = vst [vmem:[%s6104_s7 + $0x128] sm:$0xff] %v4211_v7  ;;  %v3162_v52 = vpop.f32.mrb[102].mxu0 }
 0x47b   : > { %v4212_v23 = vadd.f32 %v3162_v52, %v6096_v42  ;;  %v3164_v54 = vpop.f32.mrb[103].mxu0 }
 0x47c   : > { %v4213_v36 = vadd.f32 %v3164_v54, %v6100_v0 }
 0x47d   : > { %3277 = vst [vmem:[%s6104_s7 + $0x130] sm:$0xff] %v4212_v23 }
 0x47e   : > { %3278 = vst [vmem:[%s6104_s7 + $0x138] sm:$0xff] %v4213_v36  ;;  %v3168_v43 = vpop.f32.mrb[104].mxu0 }
 0x47f   : > { %v4214_v60 = vadd.f32 %v3168_v43, %v6096_v42  ;;  %v3170_v39 = vpop.f32.mrb[105].mxu0 }
 0x480   : > { %v4215_v33 = vadd.f32 %v3170_v39, %v6100_v0 }
 0x481   : > { %3279 = vst [vmem:[%s6104_s7 + $0x140] sm:$0xff] %v4214_v60 }
 0x482   : > { %3280 = vst [vmem:[%s6104_s7 + $0x148] sm:$0xff] %v4215_v33  ;;  %v3174_v8 = vpop.f32.mrb[106].mxu0 }
 0x483   : > { %v4216_v31 = vadd.f32 %v3174_v8, %v6096_v42  ;;  %v3176_v40 = vpop.f32.mrb[107].mxu0 }
 0x484   : > { %v4217_v62 = vadd.f32 %v3176_v40, %v6100_v0 }
 0x485   : > { %3281 = vst [vmem:[%s6104_s7 + $0x150] sm:$0xff] %v4216_v31 }
 0x486   : > { %3282 = vst [vmem:[%s6104_s7 + $0x158] sm:$0xff] %v4217_v62  ;;  %v3180_v63 = vpop.f32.mrb[108].mxu0 }
 0x487   : > { %v4218_v25 = vadd.f32 %v3180_v63, %v6096_v42  ;;  %v3182_v14 = vpop.f32.mrb[109].mxu0 }
 0x488   : > { %v4219_v5 = vadd.f32 %v3182_v14, %v6100_v0 }
 0x489   : > { %3283 = vst [vmem:[%s6104_s7 + $0x160] sm:$0xff] %v4218_v25 }
 0x48a   : > { %3284 = vst [vmem:[%s6104_s7 + $0x168] sm:$0xff] %v4219_v5  ;;  %v3186_v45 = vpop.f32.mrb[110].mxu0 }
 0x48b   : > { %v4220_v53 = vadd.f32 %v3186_v45, %v6096_v42  ;;  %v3188_v24 = vpop.f32.mrb[111].mxu0 }
 0x48c   : > { %v4221_v59 = vadd.f32 %v3188_v24, %v6100_v0 }
 0x48d   : > { %3285 = vst [vmem:[%s6104_s7 + $0x170] sm:$0xff] %v4220_v53 }
 0x48e   : > { %3286 = vst [vmem:[%s6104_s7 + $0x178] sm:$0xff] %v4221_v59  ;;  %v3192_v2 = vpop.f32.mrb[112].mxu0 }
 0x48f   : > { %v4222_v50 = vadd.f32 %v3192_v2, %v6096_v42  ;;  %v3194_v21 = vpop.f32.mrb[113].mxu0 }
 0x490   : > { %v4223_v61 = vadd.f32 %v3194_v21, %v6100_v0 }
 0x491   : > { %3287 = vst [vmem:[%s6104_s7 + $0x180] sm:$0xff] %v4222_v50 }
 0x492   : > { %3288 = vst [vmem:[%s6104_s7 + $0x188] sm:$0xff] %v4223_v61  ;;  %v3198_v56 = vpop.f32.mrb[114].mxu0 }
 0x493   : > { %v4224_v41 = vadd.f32 %v3198_v56, %v6096_v42  ;;  %v3200_v38 = vpop.f32.mrb[115].mxu0 }
 0x494   : > { %v4225_v26 = vadd.f32 %v3200_v38, %v6100_v0 }
 0x495   : > { %3289 = vst [vmem:[%s6104_s7 + $0x190] sm:$0xff] %v4224_v41 }
 0x496   : > { %3290 = vst [vmem:[%s6104_s7 + $0x198] sm:$0xff] %v4225_v26  ;;  %v3204_v29 = vpop.f32.mrb[116].mxu0 }
 0x497   : > { %v4226_v28 = vadd.f32 %v3204_v29, %v6096_v42  ;;  %v3206_v32 = vpop.f32.mrb[117].mxu0 }
 0x498   : > { %v4227_v27 = vadd.f32 %v3206_v32, %v6100_v0 }
 0x499   : > { %3291 = vst [vmem:[%s6104_s7 + $0x1a0] sm:$0xff] %v4226_v28 }
 0x49a   : > { %3292 = vst [vmem:[%s6104_s7 + $0x1a8] sm:$0xff] %v4227_v27  ;;  %v3210_v58 = vpop.f32.mrb[118].mxu0 }
 0x49b   : > { %v4228_v19 = vadd.f32 %v3210_v58, %v6096_v42  ;;  %v3212_v13 = vpop.f32.mrb[119].mxu0 }
 0x49c   : > { %v4229_v48 = vadd.f32 %v3212_v13, %v6100_v0 }
 0x49d   : > { %3293 = vst [vmem:[%s6104_s7 + $0x1b0] sm:$0xff] %v4228_v19 }
 0x49e   : > { %3294 = vst [vmem:[%s6104_s7 + $0x1b8] sm:$0xff] %v4229_v48  ;;  %v3216_v3 = vpop.f32.mrb[120].mxu0 }
 0x49f   : > { %v4230_v18 = vadd.f32 %v3216_v3, %v6096_v42  ;;  %v3218_v51 = vpop.f32.mrb[121].mxu0 }
 0x4a0   : > { %v4231_v20 = vadd.f32 %v3218_v51, %v6100_v0 }
 0x4a1   : > { %3295 = vst [vmem:[%s6104_s7 + $0x1c0] sm:$0xff] %v4230_v18 }
 0x4a2   : > { %3296 = vst [vmem:[%s6104_s7 + $0x1c8] sm:$0xff] %v4231_v20  ;;  %v3222_v1 = vpop.f32.mrb[122].mxu0 }
 0x4a3   : > { %v4232_v34 = vadd.f32 %v3222_v1, %v6096_v42  ;;  %v3224_v30 = vpop.f32.mrb[123].mxu0 }
 0x4a4   : > { %v4233_v55 = vadd.f32 %v3224_v30, %v6100_v0 }
 0x4a5   : > { %3297 = vst [vmem:[%s6104_s7 + $0x1d0] sm:$0xff] %v4232_v34 }
 0x4a6   : > { %3298 = vst [vmem:[%s6104_s7 + $0x1d8] sm:$0xff] %v4233_v55  ;;  %v3228_v47 = vpop.f32.mrb[124].mxu0 }
 0x4a7   : > { %v4234_v9 = vadd.f32 %v3228_v47, %v6096_v42  ;;  %v3230_v46 = vpop.f32.mrb[125].mxu0 }
 0x4a8   : > { %v4235_v16 = vadd.f32 %v3230_v46, %v6100_v0  ;;  %3310 = sbr.rel (!%p6394_p1) target bundleno = 1227 (0x4cb), region = 64 }
 0x4a9   : > { %3299 = vst [vmem:[%s6104_s7 + $0x1e0] sm:$0xff] %v4234_v9 }
 0x4aa   : > { %3300 = vst [vmem:[%s6104_s7 + $0x1e8] sm:$0xff] %v4235_v16  ;;  %v3234_v49 = vpop.f32.mrb[126].mxu0 }
 0x4ab   : > { %v4236_v10 = vadd.f32 %v3234_v49, %v6096_v42  ;;  %v3236_v22 = vpop.f32.mrb[127].mxu0 }
 0x4ac   : > { %v4237_v12 = vadd.f32 %v3236_v22, %v6100_v0 }
 0x4ad   : > { %3301 = vst [vmem:[%s6104_s7 + $0x1f0] sm:$0xff] %v4236_v10 }
 0x4ae   : > { %3302 = vst [vmem:[%s6104_s7 + $0x1f8] sm:$0xff] %v4237_v12 }
 0x4af   : > { %s6406_s18 = smov (!%p3313_p6, %s3312_s18), 32 }
 0x4b0   : > { %s6236_s11 = sshll.u32 %s6406_s18, 8 }
 0x4b1   : > { %s3318_s14 = ssub.s32 8192, %s6236_s11 }
 0x4b2   : > { %3319 = vsyncadd %s3304_s10, %s3318_s14  ;;  %p3460_p3 = scmp.ne.s32.totalorder %s6236_s11, 0  ;;  %s3469_s30 = sshll.u32 %s5005_s22, 13 }
 0x4b3   : > { %s6246_s15 = scalar_lea.hbm %s6300_s5, %s3469_s30  ;;  %s3325_s26 = sshll.u32 %s6104_s7, 4  ;;  %s6249_s26 = int_to_ptr.vmem [resolvable:$true] %s3325_s26 }
 0x4b4   : > { %s4864_s23 = scalar_lea.vmem %s6249_s26, %s6236_s11  ;;  %s4951_s8 = smov [#allocation11]  }
 0x4b5   : > { %p4865_p5 = scmp.ne.s32.totalorder %s6249_s26, %s4864_s23  ;;  %s4868_s9 = sshll.u32 %s4951_s8, 4  ;;  %s4869_s9 = int_to_ptr.vmem [resolvable:$false] %s4868_s9 }
 0x4b6   : > { %s4870_s22 = scalar_lea.vmem %s4869_s9, 16384  ;;  %p4871_p0 = scmp.lt.s32.totalorder %s6249_s26, %s4869_s9 }
 0x4b7   : > { %p4866_p11 = pnand %p4865_p5, %p3460_p3  ;;  %p4872_p12 = scmp.lt.s32.totalorder %s4870_s22, %s4864_s23 }
 0x4b9   : > { %p4867_p13 = pneg %p4866_p11  ;;  %p4873_p7 = por %p4872_p12, %p4871_p0 }
 0x4bb   : > { %p4874_p2 = pnand %p4873_p7, %p4867_p13 }
 0x4bd   : > { %4877 = shalt.err (!%p4874_p2)
}
 0x4be   : > { %s4878_s12 = scalar_lea.hbm %s6246_s15, %s6236_s11  ;;  %s4882_s6 = scalar_lea.hbm %s6300_s5, 9728 }
 0x4bf   : > { %p4879_p8 = scmp.ne.s32.totalorder %s6246_s15, %s4878_s12  ;;  %p4883_p1 = scmp.lt.u32.totalorder %s6246_s15, %s6300_s5 }
 0x4c0   : > { %p4884_p6 = scmp.lt.u32.totalorder %s4882_s6, %s4878_s12  ;;  %p4886_p11 = scmp.lt.u32.totalorder %s4878_s12, %s6246_s15 }
 0x4c1   : > { %p4880_p9 = pnand %p4879_p8, %p3460_p3 }
 0x4c2   : > { %p4885_p5 = por %p4884_p6, %p4883_p1 }
 0x4c3   : > { %p4881_p10 = pneg %p4880_p9 }
 0x4c4   : > { %p4887_p13 = por %p4886_p11, %p4885_p5 }
 0x4c6   : > { %p4888_p0 = pnand %p4887_p13, %p4881_p10 }
 0x4c8   : > { %4891 = shalt.err (!%p4888_p0)
}
 0x4c9   : > { %s4952_s29 = smov 256   ;;  %s4953_s7 = smov 16  }
 0x4ca   : > { %3331 = dma.vmem_to_hbm [thread:$0]  (%p3460_p3), %s6249_s26, %s6236_s11, %s6246_s15, %s3304_s10, %s4952_s29, %s4952_s29, %s4953_s7  }
 0x4cb PF: > { %s6395_s1 = sld [smem:[#allocation16_spill]]  ;;  %s6396_s18 = sld [smem:[#allocation19_spill]] }
 0x4d1   : > { %s3340_s14 = sand.u32 1, %s6395_s1   ;;  %p6397_p12 = scmp.ne.s32.totalorder %s6396_s18, 0 }
 0x4d2   : > { %s3341_s30 = scalar_lea.sflag [#allocation4], %s3340_s14 }
 0x4d3   : > { %p4529_p7 = pnand %p3442_p4, %p6397_p12 }
 0x4d5   : > { %4921 = dma.done.wait (!%p4529_p7), %s3341_s30, 8192  }
 0x4d6   : > { %4923 = vsyncadd (!%p4529_p7), %s3341_s30, 4294959104  ;;  %s6398_s21 = sld [smem:[#allocation17_spill]]  ;;  %s6399_s16 = sld [smem:[#allocation18_spill]] }
 0x4d7   : > { %s6400_s18 = smov %s4930_s19  ;;  %s6401_s19 = smov %s4934_s20 }
 0x4dc   : > { %p20_p2 = scmp.ge.s32.totalorder %s6398_s21, 4   ;;  %s6402_s20 = smov %s6399_s16 }
 0x4de   :  { %22 = sbr.rel (!%p20_p2) target bundleno = 9 (0x9), region = 101 }
 0x4e5   :  { %3346 = vsyncpa [#allocation3], 1 }
 0x4e6   :  { %3348 = vsyncpa [#allocation3 + $0x1], 1 }
 0x4e7   :  { %3349 = vsyncpa [#allocation6], 1 }
 0x4e8   :  { %3350 = vsyncpa [#allocation9], 1 }
 0x4e9   :  { %3351 = vsyncpa [#allocation4], 1 }
 0x4ea   :  { %3353 = vsyncpa [#allocation4 + $0x1], 1 }

</bundles_post_ra>
